<compile_context>
chip_gen: v6e
topology: v6e:2x2x1
jax: 0.10.0
libtpu: 0.0.40
codegen_flags: <defaults>
</compile_context>

<pallas_src>
import jax
import jax.numpy as jnp
from jax import lax
from jax.experimental import pallas as pl
from jax.experimental.pallas import tpu as pltpu

# ----------------------------- hyper-parameters -------------------------------
BSZ = 2
A_NUM = 2              # self.A_num
N_LAYER = 2            # params.fr_n_layers
D0 = 8                 # params.signal_dim_0 == params.fr_inner_dim_0
D1 = 16                # params.signal_dim_1 == params.fr_inner_dim_1
K_OUT = 6              # params.fr_kernel_out
STRIDE = 2             # params.fr_upsampling
PAD_OUT = 2
OUT_PAD = 1
BN_EPS = 1e-5
HO = (D0 - 1) * STRIDE - 2 * PAD_OUT + K_OUT + OUT_PAD   # 17
WO = (D1 - 1) * STRIDE - 2 * PAD_OUT + K_OUT + OUT_PAD   # 33

F32 = jnp.float32

# Scalar pack (SMEM) layout.
SC_PRE = 0                          # concat_pre 1x1: wr0, wr1, wi0, wi1
SC_CAT = SC_PRE + 4                 # per fr layer l: cr0, cr1, ci0, ci1
SC_BN = SC_CAT + 4 * N_LAYER        # per mod2 layer l: beta1_0, beta1_1, beta2_0, beta2_1
SC_LEN = SC_BN + 4 * N_LAYER


# =============================== fused kernel =================================

def _roll_rows(x, s):
    """Circular roll along axis 0 (sublanes) by a static shift."""
    n = x.shape[0]
    s = s % n
    if s == 0:
        return x
    return jnp.concatenate([x[n - s:, :], x[:n - s, :]], axis=0)


def _fused_kernel(sc_ref, inp_ref, w_in_ref, w_cc_ref, w_fr_f_ref, w_fr_b_ref,
                  w_l3_ref, w_mod2_ref, w_outR_ref, w_outA_ref, out_ref):
    ir = inp_ref[0, 0]                               # (D0, D1) real part
    ii = inp_ref[0, 1]                               # (D0, D1) imag part

    # ---- input_layer: ComplexConv2d2(1, D1*A, (1, D1)) in xcp layout --------
    # One (8,32)@(32,64) real block matmul -> [xcp_r0 | xcp_i0 | xcp_r1 | xcp_i1]
    icat = jnp.concatenate([ir, ii], axis=1)                          # (8, 32)
    xcp = jnp.dot(icat, w_in_ref[...], preferred_element_type=F32)    # (8, 64)
    xr0, xi0 = xcp[:, 0:D1], xcp[:, D1:2 * D1]
    xr1, xi1 = xcp[:, 2 * D1:3 * D1], xcp[:, 3 * D1:4 * D1]

    # ---- lag-1 conjugate product + complex_conv (ComplexConv2d2(A, A, (D1,1)))
    xcp_prev = _roll_rows(xcp, 1)                    # row d -> data of row d-1
    pr0, pi0 = xcp_prev[:, 0:D1], xcp_prev[:, D1:2 * D1]
    pr1, pi1 = xcp_prev[:, 2 * D1:3 * D1], xcp_prev[:, 3 * D1:4 * D1]
    qr0 = pr0 * xr0 + pi0 * xi0
    qi0 = pr0 * xi0 - pi0 * xr0
    qr1 = pr1 * xr1 + pi1 * xi1
    qi1 = pr1 * xi1 - pi1 * xr1
    qcat = jnp.concatenate([qr0, qr1, qi0, qi1], axis=1)              # (8, 64)
    c4 = jnp.dot(qcat, w_cc_ref[...], preferred_element_type=F32)     # (8, 4)
    cr, ci = c4[:, 0:A_NUM], c4[:, A_NUM:2 * A_NUM]   # row 0 is garbage (masked below)

    # ---- e^{j*cumsum(atan2)} via normalized-phasor prefix product ------------
    n2 = cr * cr + ci * ci
    safe = n2 > 0.0
    rinv = lax.rsqrt(jnp.where(safe, n2, 1.0))
    u_r = jnp.where(safe, cr * rinv, 1.0)            # cos(atan2) (atan2(0,0)=0)
    u_i = jnp.where(safe, ci * rinv, 0.0)            # sin(atan2)
    row = lax.broadcasted_iota(jnp.int32, (D0, A_NUM), 0)
    u_r = jnp.where(row == 0, 1.0, u_r)              # angle_compx2[:, :, 0] = 0
    u_i = jnp.where(row == 0, 0.0, u_i)
    for s in (1, 2, 4):                               # inclusive prefix product
        shr = jnp.concatenate([jnp.ones((s, A_NUM), F32), u_r[:D0 - s, :]], axis=0)
        shi = jnp.concatenate([jnp.zeros((s, A_NUM), F32), u_i[:D0 - s, :]], axis=0)
        u_r, u_i = u_r * shr - u_i * shi, u_r * shi + u_i * shr
    # now u_r = cos(cumsum), u_i = sin(cumsum)

    # ---- phase removal + concat_pre (1x1 complex conv, A -> 1) ---------------
    def derotate(xr, xi, a):
        c = u_r[:, a:a + 1]
        s = -u_i[:, a:a + 1]
        return xr * c - xi * s, xr * s + xi * c

    p_r0, p_i0 = derotate(xr0, xi0, 0)
    p_r1, p_i1 = derotate(xr1, xi1, 1)
    wpr0 = sc_ref[SC_PRE + 0]
    wpr1 = sc_ref[SC_PRE + 1]
    wpi0 = sc_ref[SC_PRE + 2]
    wpi1 = sc_ref[SC_PRE + 3]
    g_r = wpr0 * p_r0 + wpr1 * p_r1 - wpi0 * p_i0 - wpi1 * p_i1       # Gnk_real
    g_i = wpr0 * p_i0 + wpr1 * p_i1 + wpi0 * p_r0 + wpi1 * p_r1       # Gnk_imag

    x_r, x_i = g_r, g_i

    # ---- main fr layers (two complex_mod1 branches + concat 1x1) -------------
    for l in range(N_LAYER):
        xstk = jnp.concatenate([x_r, x_i], axis=0)                    # (2*D0, D1)

        def branch(br):
            y = jnp.dot(w_fr_f_ref[2 * l + br], xstk,
                        preferred_element_type=F32)                   # (2*D0, D1)
            y_r, y_i = y[:D0], y[D0:]
            a2 = y_r * y_r + y_i * y_i
            f = 1.0 + jnp.log(a2)        # matches torch (log(0) -> -inf)
            e_r = f * y_r
            e_i = -f * y_i
            estk = jnp.concatenate([e_r, e_i], axis=0)
            z = jnp.dot(w_fr_b_ref[2 * l + br], estk,
                        preferred_element_type=F32)
            z_r, z_i = z[:D0], z[D0:]
            t_r = g_r * z_r - g_i * z_i
            t_i = g_r * z_i + g_i * z_r
            s_r = jnp.sum(t_r, axis=-1, keepdims=True)                # (D0, 1)
            s_i = jnp.sum(t_i, axis=-1, keepdims=True)
            m2 = s_r * s_r + s_i * s_i
            ok = m2 > 0.0
            ri = lax.rsqrt(jnp.where(ok, m2, 1.0))
            cw = jnp.where(ok, s_r * ri, 1.0)     # cos(atan2(s_i, s_r))
            sw = -jnp.where(ok, s_i * ri, 0.0)    # -sin(atan2(s_i, s_r))
            return g_r * cw - g_i * sw, g_r * sw + g_i * cw

        b1r, b1i = branch(0)
        b2r, b2i = branch(1)
        cr0 = sc_ref[SC_CAT + 4 * l + 0]
        cr1 = sc_ref[SC_CAT + 4 * l + 1]
        ci0 = sc_ref[SC_CAT + 4 * l + 2]
        ci1 = sc_ref[SC_CAT + 4 * l + 3]
        x_r = cr0 * b1r + cr1 * b2r - ci0 * b1i - ci1 * b2i
        x_i = cr0 * b1i + cr1 * b2i + ci0 * b1r + ci1 * b2r

    # ---- input_layer3 + per-sample max normalization + magnitude -------------
    xstk = jnp.concatenate([x_r, x_i], axis=0)                        # (2*D0, D1)
    zstk = jnp.dot(w_l3_ref[...], xstk, preferred_element_type=F32)   # (2*A*D0, D1)
    z_r, z_i = zstk[:A_NUM * D0], zstk[A_NUM * D0:]
    ab = jnp.sqrt(z_r * z_r + z_i * z_i)                              # (A*D0, D1)
    x = ab * (1.0 / jnp.max(ab))          # == abs(z/m); no epsilon (matches torch)
    x0, x1 = x[:D0], x[D0:]               # channel a = 0 / 1

    # ---- mod2 residual blocks: circular 3x3 convs as MXU matmuls -------------
    # out[co] = sum_a roll_rows(Xcat, 1-a) @ C[l, stage, co, a]
    # (column circulant + BN scale folded into C at init time)
    for l in range(N_LAYER):
        def circ_conv(a0, a1, stage):
            cat = jnp.concatenate([a0, a1], axis=1)                   # (D0, 2*D1)
            rolls = [_roll_rows(cat, 1 - a) for a in range(3)]
            outs = []
            for co in range(2):
                base = ((l * 2 + stage) * 2 + co) * 3
                acc = jnp.dot(rolls[0], w_mod2_ref[base + 0],
                              preferred_element_type=F32)
                acc = acc + jnp.dot(rolls[1], w_mod2_ref[base + 1],
                                    preferred_element_type=F32)
                acc = acc + jnp.dot(rolls[2], w_mod2_ref[base + 2],
                                    preferred_element_type=F32)
                outs.append(acc)
            return outs

        h0, h1 = circ_conv(x0, x1, 0)
        h0 = jnp.maximum(h0 + sc_ref[SC_BN + 4 * l + 0], 0.0)
        h1 = jnp.maximum(h1 + sc_ref[SC_BN + 4 * l + 1], 0.0)
        r0, r1 = circ_conv(h0, h1, 1)
        x0 = jnp.maximum(x0 + r0 + sc_ref[SC_BN + 4 * l + 2], 0.0)
        x1 = jnp.maximum(x1 + r1 + sc_ref[SC_BN + 4 * l + 3], 0.0)

    # ---- out_layer: ConvTranspose2d(A, 1, K, stride=2, pad=2, out_pad=1) ----
    # out = A_gather (HO, K*D0) @ vstack_kh( Xcat @ R[kh] )  -- 7 MXU matmuls.
    xcat = jnp.concatenate([x0, x1], axis=1)                          # (D0, 2*D1)
    ts = [jnp.dot(xcat, w_outR_ref[kh], preferred_element_type=F32)
          for kh in range(K_OUT)]
    tstk = jnp.concatenate(ts, axis=0)                                # (K*D0, WO)
    out_ref[...] = jnp.dot(w_outA_ref[...], tstk,
                           preferred_element_type=F32)[None]          # (1, HO, WO)


# ================================= wrapper =====================================

def _const_spec(a):
    nd = a.ndim
    return pl.BlockSpec(a.shape, lambda b, _nd=nd: (0,) * _nd)


def forward(params, inp):
    B = inp.shape[0]
    in_specs = [
        pl.BlockSpec(memory_space=pltpu.MemorySpace.SMEM),            # scalar pack
        pl.BlockSpec((1, 2, D0, D1), lambda b: (b, 0, 0, 0)),         # inp
        _const_spec(params['w_in']),
        _const_spec(params['w_cc']),
        _const_spec(params['w_fr_f']),
        _const_spec(params['w_fr_b']),
        _const_spec(params['w_l3']),
        _const_spec(params['w_mod2']),
        _const_spec(params['w_outR']),
        _const_spec(params['w_outA']),
    ]
    return pl.pallas_call(
        _fused_kernel,
        out_shape=jax.ShapeDtypeStruct((B, HO, WO), F32),
        grid=(B,),
        in_specs=in_specs,
        out_specs=pl.BlockSpec((1, HO, WO), lambda b: (b, 0, 0)),
        compiler_params=pltpu.CompilerParams(
            dimension_semantics=("parallel",)),                       # v7x: 1 sample / TC
    )(params['sc'], inp, params['w_in'], params['w_cc'], params['w_fr_f'],
      params['w_fr_b'], params['w_l3'], params['w_mod2'], params['w_outR'],
      params['w_outA'])


# ============================ parameter construction ===========================

def _blk_left(wr, wi):
    """[[Wr, -Wi], [Wi, Wr]] for complex matmul Y = Wblk @ [Xr; Xi]."""
    return jnp.concatenate([jnp.concatenate([wr, -wi], axis=1),
                            jnp.concatenate([wi, wr], axis=1)], axis=0)


def _blk_right(wrT, wiT):
    """[[WrT, WiT], [-WiT, WrT]] for complex matmul [Yr Yi] = [Xr Xi] @ Wblk."""
    return jnp.concatenate([jnp.concatenate([wrT, wiT], axis=1),
                            jnp.concatenate([-wiT, wrT], axis=1)], axis=0)


def init_params(key):
    keys = iter(jax.random.split(key, 64))

    def nrm(shape, scale=0.25):
        return jax.random.normal(next(keys), shape, F32) * scale

    A, K = A_NUM, K_OUT

    # raw weights (same labeling as the torch module's conv_r / conv_i slices)
    in_wr = nrm((A, D1, D1))            # input_layer: [a, m, k]
    in_wi = nrm((A, D1, D1))
    cc_wr = nrm((A, A, D1))             # complex_conv: [co, ci, h]
    cc_wi = nrm((A, A, D1))
    pre_r = nrm((A,))                   # concat_pre 1x1
    pre_i = nrm((A,))
    l3_wr = nrm((A * D0, D0))           # input_layer3
    l3_wi = nrm((A * D0, D0))
    m1_wr = nrm((N_LAYER, 2, D0, D0))   # complex_mod1: [layer, branch]
    m1_wi = nrm((N_LAYER, 2, D0, D0))
    cat_r = nrm((N_LAYER, A))           # concat 1x1
    cat_i = nrm((N_LAYER, A))
    mod2_w = nrm((N_LAYER, 2, A, A, 3, 3))   # [layer, stage, co, ci, kh, kw]
    gamma = 1.0 + nrm((N_LAYER, 2, A), 0.1)  # BatchNorm2d (eval, running stats 0/1)
    beta = nrm((N_LAYER, 2, A), 0.1)
    wt = nrm((A, 1, K, K))              # ConvTranspose2d weight (in, out, kh, kw)

    p = {}

    # input_layer as a right block matmul:  [icat] (8,32) @ w_in (32, 4*D1)
    p['w_in'] = jnp.concatenate(
        [_blk_right(in_wr[a].T, in_wi[a].T) for a in range(A)], axis=1)

    # complex_conv as a right block matmul: qcat (8, 4*D1) @ w_cc (4*D1, 2*A)
    wcc_r = jnp.transpose(cc_wr, (1, 2, 0)).reshape(A * D1, A)
    wcc_i = jnp.transpose(cc_wi, (1, 2, 0)).reshape(A * D1, A)
    p['w_cc'] = jnp.concatenate(
        [jnp.concatenate([wcc_r, wcc_i], axis=1),
         jnp.concatenate([-wcc_i, wcc_r], axis=1)], axis=0)

    # fr-layer complex matmuls as left block matmuls (and their transposes).
    p['w_fr_f'] = jnp.stack([_blk_left(m1_wr[l, b], m1_wi[l, b])
                             for l in range(N_LAYER) for b in range(2)])
    p['w_fr_b'] = jnp.stack([_blk_left(m1_wr[l, b].T, m1_wi[l, b].T)
                             for l in range(N_LAYER) for b in range(2)])

    # input_layer3 block matmul.
    p['w_l3'] = _blk_left(l3_wr, l3_wi)                               # (2*A*D0, 2*D0)

    # mod2 circular 3x3 conv -> column-circulant matmul operands, BN scale folded.
    jj = jnp.arange(D1)
    T = jnp.stack([(jnp.arange(D1)[:, None] == ((jj[None, :] + b - 1) % D1)
                    ).astype(F32) for b in range(3)])                 # (3, D1, D1)
    M = jnp.einsum('lscvab,bkj->lscavkj', mod2_w, T)                  # (L,S,co,a,ci,D1,D1)
    scale = gamma / jnp.sqrt(1.0 + BN_EPS)
    M = M * scale[:, :, :, None, None, None, None]
    p['w_mod2'] = M.reshape(N_LAYER * 2 * A * 3, A * D1, D1)          # (24, 32, 16)

    # ConvTranspose2d as  A_gather @ vstack_kh( Xcat @ R[kh] ).
    w_idx = jnp.arange(D1)
    ow_idx = jnp.arange(WO)
    kw_map = ow_idx[None, :] - STRIDE * w_idx[:, None] + PAD_OUT      # (D1, WO)
    valid = ((kw_map >= 0) & (kw_map < K)).astype(F32)
    kw_c = jnp.clip(kw_map, 0, K - 1)
    R = wt[:, 0][:, :, kw_c] * valid[None, None]                      # (A, K, D1, WO)
    p['w_outR'] = jnp.transpose(R, (1, 0, 2, 3)).reshape(K, A * D1, WO)
    oh_idx = jnp.arange(HO)
    kh_idx = jnp.arange(K)
    h_idx = jnp.arange(D0)
    Amat = (oh_idx[:, None, None] ==
            (STRIDE * h_idx[None, None, :] - PAD_OUT + kh_idx[None, :, None])
            ).astype(F32)                                             # (HO, K, D0)
    p['w_outA'] = Amat.reshape(HO, K * D0)

    # scalar pack (SMEM): concat_pre, concat[l], mod2 BN offsets.
    p['sc'] = jnp.concatenate([
        pre_r, pre_i,
        jnp.concatenate([cat_r, cat_i], axis=1).reshape(-1),
        beta.reshape(-1),
    ]).astype(F32)
    assert p['sc'].shape[0] == SC_LEN
    return p


# ==================================== main =====================================

if __name__ == "__main__":
    key = jax.random.PRNGKey(0)
    k_par, k_inp = jax.random.split(key)
    params = init_params(k_par)
    # inp: (B, 2, signal_dim_0, signal_dim_1); channel 0 = real, channel 1 = imag.
    inp = jax.random.normal(k_inp, (BSZ, 2, D0, D1), F32)

    out = jax.jit(forward)(params, inp)
    out = jax.block_until_ready(out)

    assert out.shape == (BSZ, HO, WO), out.shape
    print("KERNEL_OK")
</pallas_src>

<mosaic_0001>
module attributes {stable_mosaic.version = 11 : i64} {
  func.func @_fused_kernel(%arg0: i32, %arg1: memref<20xf32, #tpu.memory_space<smem>>, %arg2: memref<1x2x8x16xf32, #tpu.memory_space<vmem>>, %arg3: memref<32x64xf32, #tpu.memory_space<vmem>>, %arg4: memref<64x4xf32, #tpu.memory_space<vmem>>, %arg5: memref<4x16x16xf32, #tpu.memory_space<vmem>>, %arg6: memref<4x16x16xf32, #tpu.memory_space<vmem>>, %arg7: memref<32x16xf32, #tpu.memory_space<vmem>>, %arg8: memref<24x32x16xf32, #tpu.memory_space<vmem>>, %arg9: memref<6x32x33xf32, #tpu.memory_space<vmem>>, %arg10: memref<17x48xf32, #tpu.memory_space<vmem>>, %arg11: memref<1x17x33xf32, #tpu.memory_space<vmem>>) attributes {dimension_semantics = [#tpu.dimension_semantics<parallel>], iteration_bounds = array<i64: 2>, scalar_prefetch = 0 : i64, scratch_operands = 0 : i64, tpu.core_type = #tpu.core_type<tc>, window_params = [{transform_indices = @transform_0, window_bounds = array<i64: 20>}, {transform_indices = @transform_1, window_bounds = array<i64: 1, 2, 8, 16>}, {pipeline_mode = #tpu.pipeline_mode<synchronous>, transform_indices = @transform_2, window_bounds = array<i64: 32, 64>}, {pipeline_mode = #tpu.pipeline_mode<synchronous>, transform_indices = @transform_3, window_bounds = array<i64: 64, 4>}, {pipeline_mode = #tpu.pipeline_mode<synchronous>, transform_indices = @transform_4, window_bounds = array<i64: 4, 16, 16>}, {pipeline_mode = #tpu.pipeline_mode<synchronous>, transform_indices = @transform_5, window_bounds = array<i64: 4, 16, 16>}, {pipeline_mode = #tpu.pipeline_mode<synchronous>, transform_indices = @transform_6, window_bounds = array<i64: 32, 16>}, {pipeline_mode = #tpu.pipeline_mode<synchronous>, transform_indices = @transform_7, window_bounds = array<i64: 24, 32, 16>}, {pipeline_mode = #tpu.pipeline_mode<synchronous>, transform_indices = @transform_8, window_bounds = array<i64: 6, 32, 33>}, {pipeline_mode = #tpu.pipeline_mode<synchronous>, transform_indices = @transform_9, window_bounds = array<i64: 17, 48>}, {transform_indices = @transform_10, window_bounds = array<i64: 1, 17, 33>}]} {
    %c0 = arith.constant 0 : index
    %c0_0 = arith.constant 0 : index
    %c0_1 = arith.constant 0 : index
    %c0_2 = arith.constant 0 : index
    %0 = vector.load %arg2[%c0, %c0_0, %c0_1, %c0_2] : memref<1x2x8x16xf32, #tpu.memory_space<vmem>>, vector<1x1x8x16xf32>
    %1 = vector.shape_cast %0 : vector<1x1x8x16xf32> to vector<8x16xf32>
    %c0_3 = arith.constant 0 : index
    %c1 = arith.constant 1 : index
    %c0_4 = arith.constant 0 : index
    %c0_5 = arith.constant 0 : index
    %2 = vector.load %arg2[%c0_3, %c1, %c0_4, %c0_5] : memref<1x2x8x16xf32, #tpu.memory_space<vmem>>, vector<1x1x8x16xf32>
    %3 = vector.shape_cast %2 : vector<1x1x8x16xf32> to vector<8x16xf32>
    %4 = tpu.concatenate %1, %3 in 1 : vector<8x16xf32>, vector<8x16xf32> -> vector<8x32xf32>
    %c0_6 = arith.constant 0 : index
    %c0_7 = arith.constant 0 : index
    %5 = vector.load %arg3[%c0_6, %c0_7] : memref<32x64xf32, #tpu.memory_space<vmem>>, vector<32x64xf32>
    %cst = arith.constant dense<0.000000e+00> : vector<8x64xf32>
    %6 = tpu.matmul %4, %5, %cst {dimension_numbers = #tpu.dot_dimension_numbers<[1], [0], [0], [1], [0, 0, 1, 1], [], []>} : vector<8x32xf32>, vector<32x64xf32>, vector<8x64xf32> -> vector<8x64xf32>
    %7 = vector.extract_strided_slice %6 {offsets = [0, 0], sizes = [8, 16], strides = [1, 1]} : vector<8x64xf32> to vector<8x16xf32>
    %8 = vector.extract_strided_slice %6 {offsets = [0, 16], sizes = [8, 16], strides = [1, 1]} : vector<8x64xf32> to vector<8x16xf32>
    %9 = vector.extract_strided_slice %6 {offsets = [0, 32], sizes = [8, 16], strides = [1, 1]} : vector<8x64xf32> to vector<8x16xf32>
    %10 = vector.extract_strided_slice %6 {offsets = [0, 48], sizes = [8, 16], strides = [1, 1]} : vector<8x64xf32> to vector<8x16xf32>
    %11 = vector.extract_strided_slice %6 {offsets = [7, 0], sizes = [1, 64], strides = [1, 1]} : vector<8x64xf32> to vector<1x64xf32>
    %12 = vector.extract_strided_slice %6 {offsets = [0, 0], sizes = [7, 64], strides = [1, 1]} : vector<8x64xf32> to vector<7x64xf32>
    %13 = tpu.concatenate %11, %12 in 0 : vector<1x64xf32>, vector<7x64xf32> -> vector<8x64xf32>
    %14 = vector.extract_strided_slice %13 {offsets = [0, 0], sizes = [8, 16], strides = [1, 1]} : vector<8x64xf32> to vector<8x16xf32>
    %15 = vector.extract_strided_slice %13 {offsets = [0, 16], sizes = [8, 16], strides = [1, 1]} : vector<8x64xf32> to vector<8x16xf32>
    %16 = vector.extract_strided_slice %13 {offsets = [0, 32], sizes = [8, 16], strides = [1, 1]} : vector<8x64xf32> to vector<8x16xf32>
    %17 = vector.extract_strided_slice %13 {offsets = [0, 48], sizes = [8, 16], strides = [1, 1]} : vector<8x64xf32> to vector<8x16xf32>
    %18 = arith.mulf %14, %7 : vector<8x16xf32>
    %19 = arith.mulf %15, %8 : vector<8x16xf32>
    %20 = arith.addf %18, %19 : vector<8x16xf32>
    %21 = arith.mulf %14, %8 : vector<8x16xf32>
    %22 = arith.mulf %15, %7 : vector<8x16xf32>
    %23 = arith.subf %21, %22 : vector<8x16xf32>
    %24 = arith.mulf %16, %9 : vector<8x16xf32>
    %25 = arith.mulf %17, %10 : vector<8x16xf32>
    %26 = arith.addf %24, %25 : vector<8x16xf32>
    %27 = arith.mulf %16, %10 : vector<8x16xf32>
    %28 = arith.mulf %17, %9 : vector<8x16xf32>
    %29 = arith.subf %27, %28 : vector<8x16xf32>
    %30 = tpu.concatenate %20, %26, %23, %29 in 1 : vector<8x16xf32>, vector<8x16xf32>, vector<8x16xf32>, vector<8x16xf32> -> vector<8x64xf32>
    %c0_8 = arith.constant 0 : index
    %c0_9 = arith.constant 0 : index
    %31 = vector.load %arg4[%c0_8, %c0_9] : memref<64x4xf32, #tpu.memory_space<vmem>>, vector<64x4xf32>
    %cst_10 = arith.constant dense<0.000000e+00> : vector<8x4xf32>
    %32 = tpu.matmul %30, %31, %cst_10 {dimension_numbers = #tpu.dot_dimension_numbers<[1], [0], [0], [1], [0, 0, 1, 1], [], []>} : vector<8x64xf32>, vector<64x4xf32>, vector<8x4xf32> -> vector<8x4xf32>
    %33 = vector.extract_strided_slice %32 {offsets = [0, 0], sizes = [8, 2], strides = [1, 1]} : vector<8x4xf32> to vector<8x2xf32>
    %34 = vector.extract_strided_slice %32 {offsets = [0, 2], sizes = [8, 2], strides = [1, 1]} : vector<8x4xf32> to vector<8x2xf32>
    %35 = arith.mulf %33, %33 : vector<8x2xf32>
    %36 = arith.mulf %34, %34 : vector<8x2xf32>
    %37 = arith.addf %35, %36 : vector<8x2xf32>
    %cst_11 = arith.constant 0.000000e+00 : f32
    %38 = vector.broadcast %cst_11 : f32 to vector<8x2xf32>
    %39 = arith.cmpf ogt, %37, %38 : vector<8x2xf32>
    %cst_12 = arith.constant 1.000000e+00 : f32
    %40 = vector.broadcast %cst_12 : f32 to vector<8x2xf32>
    %41 = arith.select %39, %37, %40 : vector<8x2xi1>, vector<8x2xf32>
    %42 = math.rsqrt %41 : vector<8x2xf32>
    %43 = arith.mulf %33, %42 : vector<8x2xf32>
    %cst_13 = arith.constant 1.000000e+00 : f32
    %44 = vector.broadcast %cst_13 : f32 to vector<8x2xf32>
    %45 = arith.select %39, %43, %44 : vector<8x2xi1>, vector<8x2xf32>
    %46 = arith.mulf %34, %42 : vector<8x2xf32>
    %cst_14 = arith.constant 0.000000e+00 : f32
    %47 = vector.broadcast %cst_14 : f32 to vector<8x2xf32>
    %48 = arith.select %39, %46, %47 : vector<8x2xi1>, vector<8x2xf32>
    %49 = tpu.iota {dimensions = array<i32: 0>} : vector<8x2xi32>
    %c0_i32 = arith.constant 0 : i32
    %50 = vector.broadcast %c0_i32 : i32 to vector<8x2xi32>
    %51 = arith.cmpi eq, %49, %50 : vector<8x2xi32>
    %cst_15 = arith.constant 1.000000e+00 : f32
    %52 = vector.broadcast %cst_15 : f32 to vector<8x2xf32>
    %53 = arith.select %51, %52, %45 : vector<8x2xi1>, vector<8x2xf32>
    %c0_i32_16 = arith.constant 0 : i32
    %54 = vector.broadcast %c0_i32_16 : i32 to vector<8x2xi32>
    %55 = arith.cmpi eq, %49, %54 : vector<8x2xi32>
    %cst_17 = arith.constant 0.000000e+00 : f32
    %56 = vector.broadcast %cst_17 : f32 to vector<8x2xf32>
    %57 = arith.select %55, %56, %48 : vector<8x2xi1>, vector<8x2xf32>
    %cst_18 = arith.constant 1.000000e+00 : f32
    %58 = vector.broadcast %cst_18 : f32 to vector<1x2xf32>
    %59 = vector.extract_strided_slice %53 {offsets = [0, 0], sizes = [7, 2], strides = [1, 1]} : vector<8x2xf32> to vector<7x2xf32>
    %60 = tpu.concatenate %58, %59 in 0 : vector<1x2xf32>, vector<7x2xf32> -> vector<8x2xf32>
    %cst_19 = arith.constant 0.000000e+00 : f32
    %61 = vector.broadcast %cst_19 : f32 to vector<1x2xf32>
    %62 = vector.extract_strided_slice %57 {offsets = [0, 0], sizes = [7, 2], strides = [1, 1]} : vector<8x2xf32> to vector<7x2xf32>
    %63 = tpu.concatenate %61, %62 in 0 : vector<1x2xf32>, vector<7x2xf32> -> vector<8x2xf32>
    %64 = arith.mulf %53, %60 : vector<8x2xf32>
    %65 = arith.mulf %57, %63 : vector<8x2xf32>
    %66 = arith.subf %64, %65 : vector<8x2xf32>
    %67 = arith.mulf %53, %63 : vector<8x2xf32>
    %68 = arith.mulf %57, %60 : vector<8x2xf32>
    %69 = arith.addf %67, %68 : vector<8x2xf32>
    %cst_20 = arith.constant 1.000000e+00 : f32
    %70 = vector.broadcast %cst_20 : f32 to vector<2x2xf32>
    %71 = vector.extract_strided_slice %66 {offsets = [0, 0], sizes = [6, 2], strides = [1, 1]} : vector<8x2xf32> to vector<6x2xf32>
    %72 = tpu.concatenate %70, %71 in 0 : vector<2x2xf32>, vector<6x2xf32> -> vector<8x2xf32>
    %cst_21 = arith.constant 0.000000e+00 : f32
    %73 = vector.broadcast %cst_21 : f32 to vector<2x2xf32>
    %74 = vector.extract_strided_slice %69 {offsets = [0, 0], sizes = [6, 2], strides = [1, 1]} : vector<8x2xf32> to vector<6x2xf32>
    %75 = tpu.concatenate %73, %74 in 0 : vector<2x2xf32>, vector<6x2xf32> -> vector<8x2xf32>
    %76 = arith.mulf %66, %72 : vector<8x2xf32>
    %77 = arith.mulf %69, %75 : vector<8x2xf32>
    %78 = arith.subf %76, %77 : vector<8x2xf32>
    %79 = arith.mulf %66, %75 : vector<8x2xf32>
    %80 = arith.mulf %69, %72 : vector<8x2xf32>
    %81 = arith.addf %79, %80 : vector<8x2xf32>
    %cst_22 = arith.constant 1.000000e+00 : f32
    %82 = vector.broadcast %cst_22 : f32 to vector<4x2xf32>
    %83 = vector.extract_strided_slice %78 {offsets = [0, 0], sizes = [4, 2], strides = [1, 1]} : vector<8x2xf32> to vector<4x2xf32>
    %84 = tpu.concatenate %82, %83 in 0 : vector<4x2xf32>, vector<4x2xf32> -> vector<8x2xf32>
    %cst_23 = arith.constant 0.000000e+00 : f32
    %85 = vector.broadcast %cst_23 : f32 to vector<4x2xf32>
    %86 = vector.extract_strided_slice %81 {offsets = [0, 0], sizes = [4, 2], strides = [1, 1]} : vector<8x2xf32> to vector<4x2xf32>
    %87 = tpu.concatenate %85, %86 in 0 : vector<4x2xf32>, vector<4x2xf32> -> vector<8x2xf32>
    %88 = arith.mulf %78, %84 : vector<8x2xf32>
    %89 = arith.mulf %81, %87 : vector<8x2xf32>
    %90 = arith.subf %88, %89 : vector<8x2xf32>
    %91 = arith.mulf %78, %87 : vector<8x2xf32>
    %92 = arith.mulf %81, %84 : vector<8x2xf32>
    %93 = arith.addf %91, %92 : vector<8x2xf32>
    %94 = vector.extract_strided_slice %90 {offsets = [0, 0], sizes = [8, 1], strides = [1, 1]} : vector<8x2xf32> to vector<8x1xf32>
    %95 = vector.extract_strided_slice %93 {offsets = [0, 0], sizes = [8, 1], strides = [1, 1]} : vector<8x2xf32> to vector<8x1xf32>
    %cst_24 = arith.constant 0.000000e+00 : f32
    %96 = vector.broadcast %cst_24 : f32 to vector<8x1xf32>
    %97 = arith.subf %96, %95 : vector<8x1xf32>
    %98 = vector.broadcast %94 : vector<8x1xf32> to vector<8x16xf32>
    %99 = arith.mulf %7, %98 : vector<8x16xf32>
    %100 = vector.broadcast %97 : vector<8x1xf32> to vector<8x16xf32>
    %101 = arith.mulf %8, %100 : vector<8x16xf32>
    %102 = arith.subf %99, %101 : vector<8x16xf32>
    %103 = vector.broadcast %97 : vector<8x1xf32> to vector<8x16xf32>
    %104 = arith.mulf %7, %103 : vector<8x16xf32>
    %105 = vector.broadcast %94 : vector<8x1xf32> to vector<8x16xf32>
    %106 = arith.mulf %8, %105 : vector<8x16xf32>
    %107 = arith.addf %104, %106 : vector<8x16xf32>
    %108 = vector.extract_strided_slice %90 {offsets = [0, 1], sizes = [8, 1], strides = [1, 1]} : vector<8x2xf32> to vector<8x1xf32>
    %109 = vector.extract_strided_slice %93 {offsets = [0, 1], sizes = [8, 1], strides = [1, 1]} : vector<8x2xf32> to vector<8x1xf32>
    %cst_25 = arith.constant 0.000000e+00 : f32
    %110 = vector.broadcast %cst_25 : f32 to vector<8x1xf32>
    %111 = arith.subf %110, %109 : vector<8x1xf32>
    %112 = vector.broadcast %108 : vector<8x1xf32> to vector<8x16xf32>
    %113 = arith.mulf %9, %112 : vector<8x16xf32>
    %114 = vector.broadcast %111 : vector<8x1xf32> to vector<8x16xf32>
    %115 = arith.mulf %10, %114 : vector<8x16xf32>
    %116 = arith.subf %113, %115 : vector<8x16xf32>
    %117 = vector.broadcast %111 : vector<8x1xf32> to vector<8x16xf32>
    %118 = arith.mulf %9, %117 : vector<8x16xf32>
    %119 = vector.broadcast %108 : vector<8x1xf32> to vector<8x16xf32>
    %120 = arith.mulf %10, %119 : vector<8x16xf32>
    %121 = arith.addf %118, %120 : vector<8x16xf32>
    %c0_26 = arith.constant 0 : index
    %122 = memref.load %arg1[%c0_26] : memref<20xf32, #tpu.memory_space<smem>>
    %c1_27 = arith.constant 1 : index
    %123 = memref.load %arg1[%c1_27] : memref<20xf32, #tpu.memory_space<smem>>
    %c2 = arith.constant 2 : index
    %124 = memref.load %arg1[%c2] : memref<20xf32, #tpu.memory_space<smem>>
    %c3 = arith.constant 3 : index
    %125 = memref.load %arg1[%c3] : memref<20xf32, #tpu.memory_space<smem>>
    %126 = vector.broadcast %122 : f32 to vector<8x16xf32>
    %127 = arith.mulf %126, %102 : vector<8x16xf32>
    %128 = vector.broadcast %123 : f32 to vector<8x16xf32>
    %129 = arith.mulf %128, %116 : vector<8x16xf32>
    %130 = arith.addf %127, %129 : vector<8x16xf32>
    %131 = vector.broadcast %124 : f32 to vector<8x16xf32>
    %132 = arith.mulf %131, %107 : vector<8x16xf32>
    %133 = arith.subf %130, %132 : vector<8x16xf32>
    %134 = vector.broadcast %125 : f32 to vector<8x16xf32>
    %135 = arith.mulf %134, %121 : vector<8x16xf32>
    %136 = arith.subf %133, %135 : vector<8x16xf32>
    %137 = vector.broadcast %122 : f32 to vector<8x16xf32>
    %138 = arith.mulf %137, %107 : vector<8x16xf32>
    %139 = vector.broadcast %123 : f32 to vector<8x16xf32>
    %140 = arith.mulf %139, %121 : vector<8x16xf32>
    %141 = arith.addf %138, %140 : vector<8x16xf32>
    %142 = vector.broadcast %124 : f32 to vector<8x16xf32>
    %143 = arith.mulf %142, %102 : vector<8x16xf32>
    %144 = arith.addf %141, %143 : vector<8x16xf32>
    %145 = vector.broadcast %125 : f32 to vector<8x16xf32>
    %146 = arith.mulf %145, %116 : vector<8x16xf32>
    %147 = arith.addf %144, %146 : vector<8x16xf32>
    %148 = tpu.concatenate %136, %147 in 0 : vector<8x16xf32>, vector<8x16xf32> -> vector<16x16xf32>
    %c0_28 = arith.constant 0 : index
    %c0_29 = arith.constant 0 : index
    %c0_30 = arith.constant 0 : index
    %149 = vector.load %arg5[%c0_28, %c0_29, %c0_30] : memref<4x16x16xf32, #tpu.memory_space<vmem>>, vector<1x16x16xf32>
    %150 = vector.shape_cast %149 : vector<1x16x16xf32> to vector<16x16xf32>
    %cst_31 = arith.constant dense<0.000000e+00> : vector<16x16xf32>
    %151 = tpu.matmul %150, %148, %cst_31 {dimension_numbers = #tpu.dot_dimension_numbers<[1], [0], [0], [1], [0, 0, 1, 1], [], []>} : vector<16x16xf32>, vector<16x16xf32>, vector<16x16xf32> -> vector<16x16xf32>
    %152 = vector.extract_strided_slice %151 {offsets = [0, 0], sizes = [8, 16], strides = [1, 1]} : vector<16x16xf32> to vector<8x16xf32>
    %153 = vector.extract_strided_slice %151 {offsets = [8, 0], sizes = [8, 16], strides = [1, 1]} : vector<16x16xf32> to vector<8x16xf32>
    %154 = arith.mulf %152, %152 : vector<8x16xf32>
    %155 = arith.mulf %153, %153 : vector<8x16xf32>
    %156 = arith.addf %154, %155 : vector<8x16xf32>
    %157 = math.log %156 : vector<8x16xf32>
    %cst_32 = arith.constant 1.000000e+00 : f32
    %158 = vector.broadcast %cst_32 : f32 to vector<8x16xf32>
    %159 = arith.addf %158, %157 : vector<8x16xf32>
    %160 = arith.mulf %159, %152 : vector<8x16xf32>
    %cst_33 = arith.constant 0.000000e+00 : f32
    %161 = vector.broadcast %cst_33 : f32 to vector<8x16xf32>
    %162 = arith.subf %161, %159 : vector<8x16xf32>
    %163 = arith.mulf %162, %153 : vector<8x16xf32>
    %164 = tpu.concatenate %160, %163 in 0 : vector<8x16xf32>, vector<8x16xf32> -> vector<16x16xf32>
    %c0_34 = arith.constant 0 : index
    %c0_35 = arith.constant 0 : index
    %c0_36 = arith.constant 0 : index
    %165 = vector.load %arg6[%c0_34, %c0_35, %c0_36] : memref<4x16x16xf32, #tpu.memory_space<vmem>>, vector<1x16x16xf32>
    %166 = vector.shape_cast %165 : vector<1x16x16xf32> to vector<16x16xf32>
    %cst_37 = arith.constant dense<0.000000e+00> : vector<16x16xf32>
    %167 = tpu.matmul %166, %164, %cst_37 {dimension_numbers = #tpu.dot_dimension_numbers<[1], [0], [0], [1], [0, 0, 1, 1], [], []>} : vector<16x16xf32>, vector<16x16xf32>, vector<16x16xf32> -> vector<16x16xf32>
    %168 = vector.extract_strided_slice %167 {offsets = [0, 0], sizes = [8, 16], strides = [1, 1]} : vector<16x16xf32> to vector<8x16xf32>
    %169 = vector.extract_strided_slice %167 {offsets = [8, 0], sizes = [8, 16], strides = [1, 1]} : vector<16x16xf32> to vector<8x16xf32>
    %170 = arith.mulf %136, %168 : vector<8x16xf32>
    %171 = arith.mulf %147, %169 : vector<8x16xf32>
    %172 = arith.subf %170, %171 : vector<8x16xf32>
    %173 = arith.mulf %136, %169 : vector<8x16xf32>
    %174 = arith.mulf %147, %168 : vector<8x16xf32>
    %175 = arith.addf %173, %174 : vector<8x16xf32>
    %cst_38 = arith.constant dense<0.000000e+00> : vector<8xf32>
    %176 = vector.multi_reduction <add>, %172, %cst_38 [1] : vector<8x16xf32> to vector<8xf32>
    %177 = vector.shape_cast %176 : vector<8xf32> to vector<8x1xf32>
    %cst_39 = arith.constant dense<0.000000e+00> : vector<8xf32>
    %178 = vector.multi_reduction <add>, %175, %cst_39 [1] : vector<8x16xf32> to vector<8xf32>
    %179 = vector.shape_cast %178 : vector<8xf32> to vector<8x1xf32>
    %180 = arith.mulf %177, %177 : vector<8x1xf32>
    %181 = arith.mulf %179, %179 : vector<8x1xf32>
    %182 = arith.addf %180, %181 : vector<8x1xf32>
    %cst_40 = arith.constant 0.000000e+00 : f32
    %183 = vector.broadcast %cst_40 : f32 to vector<8x1xf32>
    %184 = arith.cmpf ogt, %182, %183 : vector<8x1xf32>
    %cst_41 = arith.constant 1.000000e+00 : f32
    %185 = vector.broadcast %cst_41 : f32 to vector<8x1xf32>
    %186 = arith.select %184, %182, %185 : vector<8x1xi1>, vector<8x1xf32>
    %187 = math.rsqrt %186 : vector<8x1xf32>
    %188 = arith.mulf %177, %187 : vector<8x1xf32>
    %cst_42 = arith.constant 1.000000e+00 : f32
    %189 = vector.broadcast %cst_42 : f32 to vector<8x1xf32>
    %190 = arith.select %184, %188, %189 : vector<8x1xi1>, vector<8x1xf32>
    %191 = arith.mulf %179, %187 : vector<8x1xf32>
    %cst_43 = arith.constant 0.000000e+00 : f32
    %192 = vector.broadcast %cst_43 : f32 to vector<8x1xf32>
    %193 = arith.select %184, %191, %192 : vector<8x1xi1>, vector<8x1xf32>
    %cst_44 = arith.constant 0.000000e+00 : f32
    %194 = vector.broadcast %cst_44 : f32 to vector<8x1xf32>
    %195 = arith.subf %194, %193 : vector<8x1xf32>
    %196 = vector.broadcast %190 : vector<8x1xf32> to vector<8x16xf32>
    %197 = arith.mulf %136, %196 : vector<8x16xf32>
    %198 = vector.broadcast %195 : vector<8x1xf32> to vector<8x16xf32>
    %199 = arith.mulf %147, %198 : vector<8x16xf32>
    %200 = arith.subf %197, %199 : vector<8x16xf32>
    %201 = vector.broadcast %195 : vector<8x1xf32> to vector<8x16xf32>
    %202 = arith.mulf %136, %201 : vector<8x16xf32>
    %203 = vector.broadcast %190 : vector<8x1xf32> to vector<8x16xf32>
    %204 = arith.mulf %147, %203 : vector<8x16xf32>
    %205 = arith.addf %202, %204 : vector<8x16xf32>
    %c1_45 = arith.constant 1 : index
    %c0_46 = arith.constant 0 : index
    %c0_47 = arith.constant 0 : index
    %206 = vector.load %arg5[%c1_45, %c0_46, %c0_47] : memref<4x16x16xf32, #tpu.memory_space<vmem>>, vector<1x16x16xf32>
    %207 = vector.shape_cast %206 : vector<1x16x16xf32> to vector<16x16xf32>
    %cst_48 = arith.constant dense<0.000000e+00> : vector<16x16xf32>
    %208 = tpu.matmul %207, %148, %cst_48 {dimension_numbers = #tpu.dot_dimension_numbers<[1], [0], [0], [1], [0, 0, 1, 1], [], []>} : vector<16x16xf32>, vector<16x16xf32>, vector<16x16xf32> -> vector<16x16xf32>
    %209 = vector.extract_strided_slice %208 {offsets = [0, 0], sizes = [8, 16], strides = [1, 1]} : vector<16x16xf32> to vector<8x16xf32>
    %210 = vector.extract_strided_slice %208 {offsets = [8, 0], sizes = [8, 16], strides = [1, 1]} : vector<16x16xf32> to vector<8x16xf32>
    %211 = arith.mulf %209, %209 : vector<8x16xf32>
    %212 = arith.mulf %210, %210 : vector<8x16xf32>
    %213 = arith.addf %211, %212 : vector<8x16xf32>
    %214 = math.log %213 : vector<8x16xf32>
    %cst_49 = arith.constant 1.000000e+00 : f32
    %215 = vector.broadcast %cst_49 : f32 to vector<8x16xf32>
    %216 = arith.addf %215, %214 : vector<8x16xf32>
    %217 = arith.mulf %216, %209 : vector<8x16xf32>
    %cst_50 = arith.constant 0.000000e+00 : f32
    %218 = vector.broadcast %cst_50 : f32 to vector<8x16xf32>
    %219 = arith.subf %218, %216 : vector<8x16xf32>
    %220 = arith.mulf %219, %210 : vector<8x16xf32>
    %221 = tpu.concatenate %217, %220 in 0 : vector<8x16xf32>, vector<8x16xf32> -> vector<16x16xf32>
    %c1_51 = arith.constant 1 : index
    %c0_52 = arith.constant 0 : index
    %c0_53 = arith.constant 0 : index
    %222 = vector.load %arg6[%c1_51, %c0_52, %c0_53] : memref<4x16x16xf32, #tpu.memory_space<vmem>>, vector<1x16x16xf32>
    %223 = vector.shape_cast %222 : vector<1x16x16xf32> to vector<16x16xf32>
    %cst_54 = arith.constant dense<0.000000e+00> : vector<16x16xf32>
    %224 = tpu.matmul %223, %221, %cst_54 {dimension_numbers = #tpu.dot_dimension_numbers<[1], [0], [0], [1], [0, 0, 1, 1], [], []>} : vector<16x16xf32>, vector<16x16xf32>, vector<16x16xf32> -> vector<16x16xf32>
    %225 = vector.extract_strided_slice %224 {offsets = [0, 0], sizes = [8, 16], strides = [1, 1]} : vector<16x16xf32> to vector<8x16xf32>
    %226 = vector.extract_strided_slice %224 {offsets = [8, 0], sizes = [8, 16], strides = [1, 1]} : vector<16x16xf32> to vector<8x16xf32>
    %227 = arith.mulf %136, %225 : vector<8x16xf32>
    %228 = arith.mulf %147, %226 : vector<8x16xf32>
    %229 = arith.subf %227, %228 : vector<8x16xf32>
    %230 = arith.mulf %136, %226 : vector<8x16xf32>
    %231 = arith.mulf %147, %225 : vector<8x16xf32>
    %232 = arith.addf %230, %231 : vector<8x16xf32>
    %cst_55 = arith.constant dense<0.000000e+00> : vector<8xf32>
    %233 = vector.multi_reduction <add>, %229, %cst_55 [1] : vector<8x16xf32> to vector<8xf32>
    %234 = vector.shape_cast %233 : vector<8xf32> to vector<8x1xf32>
    %cst_56 = arith.constant dense<0.000000e+00> : vector<8xf32>
    %235 = vector.multi_reduction <add>, %232, %cst_56 [1] : vector<8x16xf32> to vector<8xf32>
    %236 = vector.shape_cast %235 : vector<8xf32> to vector<8x1xf32>
    %237 = arith.mulf %234, %234 : vector<8x1xf32>
    %238 = arith.mulf %236, %236 : vector<8x1xf32>
    %239 = arith.addf %237, %238 : vector<8x1xf32>
    %cst_57 = arith.constant 0.000000e+00 : f32
    %240 = vector.broadcast %cst_57 : f32 to vector<8x1xf32>
    %241 = arith.cmpf ogt, %239, %240 : vector<8x1xf32>
    %cst_58 = arith.constant 1.000000e+00 : f32
    %242 = vector.broadcast %cst_58 : f32 to vector<8x1xf32>
    %243 = arith.select %241, %239, %242 : vector<8x1xi1>, vector<8x1xf32>
    %244 = math.rsqrt %243 : vector<8x1xf32>
    %245 = arith.mulf %234, %244 : vector<8x1xf32>
    %cst_59 = arith.constant 1.000000e+00 : f32
    %246 = vector.broadcast %cst_59 : f32 to vector<8x1xf32>
    %247 = arith.select %241, %245, %246 : vector<8x1xi1>, vector<8x1xf32>
    %248 = arith.mulf %236, %244 : vector<8x1xf32>
    %cst_60 = arith.constant 0.000000e+00 : f32
    %249 = vector.broadcast %cst_60 : f32 to vector<8x1xf32>
    %250 = arith.select %241, %248, %249 : vector<8x1xi1>, vector<8x1xf32>
    %cst_61 = arith.constant 0.000000e+00 : f32
    %251 = vector.broadcast %cst_61 : f32 to vector<8x1xf32>
    %252 = arith.subf %251, %250 : vector<8x1xf32>
    %253 = vector.broadcast %247 : vector<8x1xf32> to vector<8x16xf32>
    %254 = arith.mulf %136, %253 : vector<8x16xf32>
    %255 = vector.broadcast %252 : vector<8x1xf32> to vector<8x16xf32>
    %256 = arith.mulf %147, %255 : vector<8x16xf32>
    %257 = arith.subf %254, %256 : vector<8x16xf32>
    %258 = vector.broadcast %252 : vector<8x1xf32> to vector<8x16xf32>
    %259 = arith.mulf %136, %258 : vector<8x16xf32>
    %260 = vector.broadcast %247 : vector<8x1xf32> to vector<8x16xf32>
    %261 = arith.mulf %147, %260 : vector<8x16xf32>
    %262 = arith.addf %259, %261 : vector<8x16xf32>
    %c4 = arith.constant 4 : index
    %263 = memref.load %arg1[%c4] : memref<20xf32, #tpu.memory_space<smem>>
    %c5 = arith.constant 5 : index
    %264 = memref.load %arg1[%c5] : memref<20xf32, #tpu.memory_space<smem>>
    %c6 = arith.constant 6 : index
    %265 = memref.load %arg1[%c6] : memref<20xf32, #tpu.memory_space<smem>>
    %c7 = arith.constant 7 : index
    %266 = memref.load %arg1[%c7] : memref<20xf32, #tpu.memory_space<smem>>
    %267 = vector.broadcast %263 : f32 to vector<8x16xf32>
    %268 = arith.mulf %267, %200 : vector<8x16xf32>
    %269 = vector.broadcast %264 : f32 to vector<8x16xf32>
    %270 = arith.mulf %269, %257 : vector<8x16xf32>
    %271 = arith.addf %268, %270 : vector<8x16xf32>
    %272 = vector.broadcast %265 : f32 to vector<8x16xf32>
    %273 = arith.mulf %272, %205 : vector<8x16xf32>
    %274 = arith.subf %271, %273 : vector<8x16xf32>
    %275 = vector.broadcast %266 : f32 to vector<8x16xf32>
    %276 = arith.mulf %275, %262 : vector<8x16xf32>
    %277 = arith.subf %274, %276 : vector<8x16xf32>
    %278 = vector.broadcast %263 : f32 to vector<8x16xf32>
    %279 = arith.mulf %278, %205 : vector<8x16xf32>
    %280 = vector.broadcast %264 : f32 to vector<8x16xf32>
    %281 = arith.mulf %280, %262 : vector<8x16xf32>
    %282 = arith.addf %279, %281 : vector<8x16xf32>
    %283 = vector.broadcast %265 : f32 to vector<8x16xf32>
    %284 = arith.mulf %283, %200 : vector<8x16xf32>
    %285 = arith.addf %282, %284 : vector<8x16xf32>
    %286 = vector.broadcast %266 : f32 to vector<8x16xf32>
    %287 = arith.mulf %286, %257 : vector<8x16xf32>
    %288 = arith.addf %285, %287 : vector<8x16xf32>
    %289 = tpu.concatenate %277, %288 in 0 : vector<8x16xf32>, vector<8x16xf32> -> vector<16x16xf32>
    %c2_62 = arith.constant 2 : index
    %c0_63 = arith.constant 0 : index
    %c0_64 = arith.constant 0 : index
    %290 = vector.load %arg5[%c2_62, %c0_63, %c0_64] : memref<4x16x16xf32, #tpu.memory_space<vmem>>, vector<1x16x16xf32>
    %291 = vector.shape_cast %290 : vector<1x16x16xf32> to vector<16x16xf32>
    %cst_65 = arith.constant dense<0.000000e+00> : vector<16x16xf32>
    %292 = tpu.matmul %291, %289, %cst_65 {dimension_numbers = #tpu.dot_dimension_numbers<[1], [0], [0], [1], [0, 0, 1, 1], [], []>} : vector<16x16xf32>, vector<16x16xf32>, vector<16x16xf32> -> vector<16x16xf32>
    %293 = vector.extract_strided_slice %292 {offsets = [0, 0], sizes = [8, 16], strides = [1, 1]} : vector<16x16xf32> to vector<8x16xf32>
    %294 = vector.extract_strided_slice %292 {offsets = [8, 0], sizes = [8, 16], strides = [1, 1]} : vector<16x16xf32> to vector<8x16xf32>
    %295 = arith.mulf %293, %293 : vector<8x16xf32>
    %296 = arith.mulf %294, %294 : vector<8x16xf32>
    %297 = arith.addf %295, %296 : vector<8x16xf32>
    %298 = math.log %297 : vector<8x16xf32>
    %cst_66 = arith.constant 1.000000e+00 : f32
    %299 = vector.broadcast %cst_66 : f32 to vector<8x16xf32>
    %300 = arith.addf %299, %298 : vector<8x16xf32>
    %301 = arith.mulf %300, %293 : vector<8x16xf32>
    %cst_67 = arith.constant 0.000000e+00 : f32
    %302 = vector.broadcast %cst_67 : f32 to vector<8x16xf32>
    %303 = arith.subf %302, %300 : vector<8x16xf32>
    %304 = arith.mulf %303, %294 : vector<8x16xf32>
    %305 = tpu.concatenate %301, %304 in 0 : vector<8x16xf32>, vector<8x16xf32> -> vector<16x16xf32>
    %c2_68 = arith.constant 2 : index
    %c0_69 = arith.constant 0 : index
    %c0_70 = arith.constant 0 : index
    %306 = vector.load %arg6[%c2_68, %c0_69, %c0_70] : memref<4x16x16xf32, #tpu.memory_space<vmem>>, vector<1x16x16xf32>
    %307 = vector.shape_cast %306 : vector<1x16x16xf32> to vector<16x16xf32>
    %cst_71 = arith.constant dense<0.000000e+00> : vector<16x16xf32>
    %308 = tpu.matmul %307, %305, %cst_71 {dimension_numbers = #tpu.dot_dimension_numbers<[1], [0], [0], [1], [0, 0, 1, 1], [], []>} : vector<16x16xf32>, vector<16x16xf32>, vector<16x16xf32> -> vector<16x16xf32>
    %309 = vector.extract_strided_slice %308 {offsets = [0, 0], sizes = [8, 16], strides = [1, 1]} : vector<16x16xf32> to vector<8x16xf32>
    %310 = vector.extract_strided_slice %308 {offsets = [8, 0], sizes = [8, 16], strides = [1, 1]} : vector<16x16xf32> to vector<8x16xf32>
    %311 = arith.mulf %136, %309 : vector<8x16xf32>
    %312 = arith.mulf %147, %310 : vector<8x16xf32>
    %313 = arith.subf %311, %312 : vector<8x16xf32>
    %314 = arith.mulf %136, %310 : vector<8x16xf32>
    %315 = arith.mulf %147, %309 : vector<8x16xf32>
    %316 = arith.addf %314, %315 : vector<8x16xf32>
    %cst_72 = arith.constant dense<0.000000e+00> : vector<8xf32>
    %317 = vector.multi_reduction <add>, %313, %cst_72 [1] : vector<8x16xf32> to vector<8xf32>
    %318 = vector.shape_cast %317 : vector<8xf32> to vector<8x1xf32>
    %cst_73 = arith.constant dense<0.000000e+00> : vector<8xf32>
    %319 = vector.multi_reduction <add>, %316, %cst_73 [1] : vector<8x16xf32> to vector<8xf32>
    %320 = vector.shape_cast %319 : vector<8xf32> to vector<8x1xf32>
    %321 = arith.mulf %318, %318 : vector<8x1xf32>
    %322 = arith.mulf %320, %320 : vector<8x1xf32>
    %323 = arith.addf %321, %322 : vector<8x1xf32>
    %cst_74 = arith.constant 0.000000e+00 : f32
    %324 = vector.broadcast %cst_74 : f32 to vector<8x1xf32>
    %325 = arith.cmpf ogt, %323, %324 : vector<8x1xf32>
    %cst_75 = arith.constant 1.000000e+00 : f32
    %326 = vector.broadcast %cst_75 : f32 to vector<8x1xf32>
    %327 = arith.select %325, %323, %326 : vector<8x1xi1>, vector<8x1xf32>
    %328 = math.rsqrt %327 : vector<8x1xf32>
    %329 = arith.mulf %318, %328 : vector<8x1xf32>
    %cst_76 = arith.constant 1.000000e+00 : f32
    %330 = vector.broadcast %cst_76 : f32 to vector<8x1xf32>
    %331 = arith.select %325, %329, %330 : vector<8x1xi1>, vector<8x1xf32>
    %332 = arith.mulf %320, %328 : vector<8x1xf32>
    %cst_77 = arith.constant 0.000000e+00 : f32
    %333 = vector.broadcast %cst_77 : f32 to vector<8x1xf32>
    %334 = arith.select %325, %332, %333 : vector<8x1xi1>, vector<8x1xf32>
    %cst_78 = arith.constant 0.000000e+00 : f32
    %335 = vector.broadcast %cst_78 : f32 to vector<8x1xf32>
    %336 = arith.subf %335, %334 : vector<8x1xf32>
    %337 = vector.broadcast %331 : vector<8x1xf32> to vector<8x16xf32>
    %338 = arith.mulf %136, %337 : vector<8x16xf32>
    %339 = vector.broadcast %336 : vector<8x1xf32> to vector<8x16xf32>
    %340 = arith.mulf %147, %339 : vector<8x16xf32>
    %341 = arith.subf %338, %340 : vector<8x16xf32>
    %342 = vector.broadcast %336 : vector<8x1xf32> to vector<8x16xf32>
    %343 = arith.mulf %136, %342 : vector<8x16xf32>
    %344 = vector.broadcast %331 : vector<8x1xf32> to vector<8x16xf32>
    %345 = arith.mulf %147, %344 : vector<8x16xf32>
    %346 = arith.addf %343, %345 : vector<8x16xf32>
    %c3_79 = arith.constant 3 : index
    %c0_80 = arith.constant 0 : index
    %c0_81 = arith.constant 0 : index
    %347 = vector.load %arg5[%c3_79, %c0_80, %c0_81] : memref<4x16x16xf32, #tpu.memory_space<vmem>>, vector<1x16x16xf32>
    %348 = vector.shape_cast %347 : vector<1x16x16xf32> to vector<16x16xf32>
    %cst_82 = arith.constant dense<0.000000e+00> : vector<16x16xf32>
    %349 = tpu.matmul %348, %289, %cst_82 {dimension_numbers = #tpu.dot_dimension_numbers<[1], [0], [0], [1], [0, 0, 1, 1], [], []>} : vector<16x16xf32>, vector<16x16xf32>, vector<16x16xf32> -> vector<16x16xf32>
    %350 = vector.extract_strided_slice %349 {offsets = [0, 0], sizes = [8, 16], strides = [1, 1]} : vector<16x16xf32> to vector<8x16xf32>
    %351 = vector.extract_strided_slice %349 {offsets = [8, 0], sizes = [8, 16], strides = [1, 1]} : vector<16x16xf32> to vector<8x16xf32>
    %352 = arith.mulf %350, %350 : vector<8x16xf32>
    %353 = arith.mulf %351, %351 : vector<8x16xf32>
    %354 = arith.addf %352, %353 : vector<8x16xf32>
    %355 = math.log %354 : vector<8x16xf32>
    %cst_83 = arith.constant 1.000000e+00 : f32
    %356 = vector.broadcast %cst_83 : f32 to vector<8x16xf32>
    %357 = arith.addf %356, %355 : vector<8x16xf32>
    %358 = arith.mulf %357, %350 : vector<8x16xf32>
    %cst_84 = arith.constant 0.000000e+00 : f32
    %359 = vector.broadcast %cst_84 : f32 to vector<8x16xf32>
    %360 = arith.subf %359, %357 : vector<8x16xf32>
    %361 = arith.mulf %360, %351 : vector<8x16xf32>
    %362 = tpu.concatenate %358, %361 in 0 : vector<8x16xf32>, vector<8x16xf32> -> vector<16x16xf32>
    %c3_85 = arith.constant 3 : index
    %c0_86 = arith.constant 0 : index
    %c0_87 = arith.constant 0 : index
    %363 = vector.load %arg6[%c3_85, %c0_86, %c0_87] : memref<4x16x16xf32, #tpu.memory_space<vmem>>, vector<1x16x16xf32>
    %364 = vector.shape_cast %363 : vector<1x16x16xf32> to vector<16x16xf32>
    %cst_88 = arith.constant dense<0.000000e+00> : vector<16x16xf32>
    %365 = tpu.matmul %364, %362, %cst_88 {dimension_numbers = #tpu.dot_dimension_numbers<[1], [0], [0], [1], [0, 0, 1, 1], [], []>} : vector<16x16xf32>, vector<16x16xf32>, vector<16x16xf32> -> vector<16x16xf32>
    %366 = vector.extract_strided_slice %365 {offsets = [0, 0], sizes = [8, 16], strides = [1, 1]} : vector<16x16xf32> to vector<8x16xf32>
    %367 = vector.extract_strided_slice %365 {offsets = [8, 0], sizes = [8, 16], strides = [1, 1]} : vector<16x16xf32> to vector<8x16xf32>
    %368 = arith.mulf %136, %366 : vector<8x16xf32>
    %369 = arith.mulf %147, %367 : vector<8x16xf32>
    %370 = arith.subf %368, %369 : vector<8x16xf32>
    %371 = arith.mulf %136, %367 : vector<8x16xf32>
    %372 = arith.mulf %147, %366 : vector<8x16xf32>
    %373 = arith.addf %371, %372 : vector<8x16xf32>
    %cst_89 = arith.constant dense<0.000000e+00> : vector<8xf32>
    %374 = vector.multi_reduction <add>, %370, %cst_89 [1] : vector<8x16xf32> to vector<8xf32>
    %375 = vector.shape_cast %374 : vector<8xf32> to vector<8x1xf32>
    %cst_90 = arith.constant dense<0.000000e+00> : vector<8xf32>
    %376 = vector.multi_reduction <add>, %373, %cst_90 [1] : vector<8x16xf32> to vector<8xf32>
    %377 = vector.shape_cast %376 : vector<8xf32> to vector<8x1xf32>
    %378 = arith.mulf %375, %375 : vector<8x1xf32>
    %379 = arith.mulf %377, %377 : vector<8x1xf32>
    %380 = arith.addf %378, %379 : vector<8x1xf32>
    %cst_91 = arith.constant 0.000000e+00 : f32
    %381 = vector.broadcast %cst_91 : f32 to vector<8x1xf32>
    %382 = arith.cmpf ogt, %380, %381 : vector<8x1xf32>
    %cst_92 = arith.constant 1.000000e+00 : f32
    %383 = vector.broadcast %cst_92 : f32 to vector<8x1xf32>
    %384 = arith.select %382, %380, %383 : vector<8x1xi1>, vector<8x1xf32>
    %385 = math.rsqrt %384 : vector<8x1xf32>
    %386 = arith.mulf %375, %385 : vector<8x1xf32>
    %cst_93 = arith.constant 1.000000e+00 : f32
    %387 = vector.broadcast %cst_93 : f32 to vector<8x1xf32>
    %388 = arith.select %382, %386, %387 : vector<8x1xi1>, vector<8x1xf32>
    %389 = arith.mulf %377, %385 : vector<8x1xf32>
    %cst_94 = arith.constant 0.000000e+00 : f32
    %390 = vector.broadcast %cst_94 : f32 to vector<8x1xf32>
    %391 = arith.select %382, %389, %390 : vector<8x1xi1>, vector<8x1xf32>
    %cst_95 = arith.constant 0.000000e+00 : f32
    %392 = vector.broadcast %cst_95 : f32 to vector<8x1xf32>
    %393 = arith.subf %392, %391 : vector<8x1xf32>
    %394 = vector.broadcast %388 : vector<8x1xf32> to vector<8x16xf32>
    %395 = arith.mulf %136, %394 : vector<8x16xf32>
    %396 = vector.broadcast %393 : vector<8x1xf32> to vector<8x16xf32>
    %397 = arith.mulf %147, %396 : vector<8x16xf32>
    %398 = arith.subf %395, %397 : vector<8x16xf32>
    %399 = vector.broadcast %393 : vector<8x1xf32> to vector<8x16xf32>
    %400 = arith.mulf %136, %399 : vector<8x16xf32>
    %401 = vector.broadcast %388 : vector<8x1xf32> to vector<8x16xf32>
    %402 = arith.mulf %147, %401 : vector<8x16xf32>
    %403 = arith.addf %400, %402 : vector<8x16xf32>
    %c8 = arith.constant 8 : index
    %404 = memref.load %arg1[%c8] : memref<20xf32, #tpu.memory_space<smem>>
    %c9 = arith.constant 9 : index
    %405 = memref.load %arg1[%c9] : memref<20xf32, #tpu.memory_space<smem>>
    %c10 = arith.constant 10 : index
    %406 = memref.load %arg1[%c10] : memref<20xf32, #tpu.memory_space<smem>>
    %c11 = arith.constant 11 : index
    %407 = memref.load %arg1[%c11] : memref<20xf32, #tpu.memory_space<smem>>
    %408 = vector.broadcast %404 : f32 to vector<8x16xf32>
    %409 = arith.mulf %408, %341 : vector<8x16xf32>
    %410 = vector.broadcast %405 : f32 to vector<8x16xf32>
    %411 = arith.mulf %410, %398 : vector<8x16xf32>
    %412 = arith.addf %409, %411 : vector<8x16xf32>
    %413 = vector.broadcast %406 : f32 to vector<8x16xf32>
    %414 = arith.mulf %413, %346 : vector<8x16xf32>
    %415 = arith.subf %412, %414 : vector<8x16xf32>
    %416 = vector.broadcast %407 : f32 to vector<8x16xf32>
    %417 = arith.mulf %416, %403 : vector<8x16xf32>
    %418 = arith.subf %415, %417 : vector<8x16xf32>
    %419 = vector.broadcast %404 : f32 to vector<8x16xf32>
    %420 = arith.mulf %419, %346 : vector<8x16xf32>
    %421 = vector.broadcast %405 : f32 to vector<8x16xf32>
    %422 = arith.mulf %421, %403 : vector<8x16xf32>
    %423 = arith.addf %420, %422 : vector<8x16xf32>
    %424 = vector.broadcast %406 : f32 to vector<8x16xf32>
    %425 = arith.mulf %424, %341 : vector<8x16xf32>
    %426 = arith.addf %423, %425 : vector<8x16xf32>
    %427 = vector.broadcast %407 : f32 to vector<8x16xf32>
    %428 = arith.mulf %427, %398 : vector<8x16xf32>
    %429 = arith.addf %426, %428 : vector<8x16xf32>
    %430 = tpu.concatenate %418, %429 in 0 : vector<8x16xf32>, vector<8x16xf32> -> vector<16x16xf32>
    %c0_96 = arith.constant 0 : index
    %c0_97 = arith.constant 0 : index
    %431 = vector.load %arg7[%c0_96, %c0_97] : memref<32x16xf32, #tpu.memory_space<vmem>>, vector<32x16xf32>
    %cst_98 = arith.constant dense<0.000000e+00> : vector<32x16xf32>
    %432 = tpu.matmul %431, %430, %cst_98 {dimension_numbers = #tpu.dot_dimension_numbers<[1], [0], [0], [1], [0, 0, 1, 1], [], []>} : vector<32x16xf32>, vector<16x16xf32>, vector<32x16xf32> -> vector<32x16xf32>
    %433 = vector.extract_strided_slice %432 {offsets = [0, 0], sizes = [16, 16], strides = [1, 1]} : vector<32x16xf32> to vector<16x16xf32>
    %434 = vector.extract_strided_slice %432 {offsets = [16, 0], sizes = [16, 16], strides = [1, 1]} : vector<32x16xf32> to vector<16x16xf32>
    %435 = arith.mulf %433, %433 : vector<16x16xf32>
    %436 = arith.mulf %434, %434 : vector<16x16xf32>
    %437 = arith.addf %435, %436 : vector<16x16xf32>
    %438 = math.sqrt %437 : vector<16x16xf32>
    %439 = vector.shape_cast %438 : vector<16x16xf32> to vector<1x16x16xf32>
    %cst_99 = arith.constant dense<0xFF800000> : vector<1xf32>
    %440 = vector.multi_reduction <maximumf>, %439, %cst_99 [1, 2] : vector<1x16x16xf32> to vector<1xf32>
    %441 = vector.shape_cast %440 : vector<1xf32> to vector<1x1x1xf32>
    %442 = vector.extract %441[0, 0, 0] : f32 from vector<1x1x1xf32>
    %cst_100 = arith.constant 1.000000e+00 : f32
    %443 = arith.divf %cst_100, %442 : f32
    %444 = vector.broadcast %443 : f32 to vector<16x16xf32>
    %445 = arith.mulf %438, %444 : vector<16x16xf32>
    %446 = vector.extract_strided_slice %445 {offsets = [0, 0], sizes = [8, 16], strides = [1, 1]} : vector<16x16xf32> to vector<8x16xf32>
    %447 = vector.extract_strided_slice %445 {offsets = [8, 0], sizes = [8, 16], strides = [1, 1]} : vector<16x16xf32> to vector<8x16xf32>
    %448 = tpu.concatenate %446, %447 in 1 : vector<8x16xf32>, vector<8x16xf32> -> vector<8x32xf32>
    %449 = vector.extract_strided_slice %448 {offsets = [7, 0], sizes = [1, 32], strides = [1, 1]} : vector<8x32xf32> to vector<1x32xf32>
    %450 = vector.extract_strided_slice %448 {offsets = [0, 0], sizes = [7, 32], strides = [1, 1]} : vector<8x32xf32> to vector<7x32xf32>
    %451 = tpu.concatenate %449, %450 in 0 : vector<1x32xf32>, vector<7x32xf32> -> vector<8x32xf32>
    %452 = vector.extract_strided_slice %448 {offsets = [1, 0], sizes = [7, 32], strides = [1, 1]} : vector<8x32xf32> to vector<7x32xf32>
    %453 = vector.extract_strided_slice %448 {offsets = [0, 0], sizes = [1, 32], strides = [1, 1]} : vector<8x32xf32> to vector<1x32xf32>
    %454 = tpu.concatenate %452, %453 in 0 : vector<7x32xf32>, vector<1x32xf32> -> vector<8x32xf32>
    %c0_101 = arith.constant 0 : index
    %c0_102 = arith.constant 0 : index
    %c0_103 = arith.constant 0 : index
    %455 = vector.load %arg8[%c0_101, %c0_102, %c0_103] : memref<24x32x16xf32, #tpu.memory_space<vmem>>, vector<1x32x16xf32>
    %456 = vector.shape_cast %455 : vector<1x32x16xf32> to vector<32x16xf32>
    %cst_104 = arith.constant dense<0.000000e+00> : vector<8x16xf32>
    %457 = tpu.matmul %451, %456, %cst_104 {dimension_numbers = #tpu.dot_dimension_numbers<[1], [0], [0], [1], [0, 0, 1, 1], [], []>} : vector<8x32xf32>, vector<32x16xf32>, vector<8x16xf32> -> vector<8x16xf32>
    %c1_105 = arith.constant 1 : index
    %c0_106 = arith.constant 0 : index
    %c0_107 = arith.constant 0 : index
    %458 = vector.load %arg8[%c1_105, %c0_106, %c0_107] : memref<24x32x16xf32, #tpu.memory_space<vmem>>, vector<1x32x16xf32>
    %459 = vector.shape_cast %458 : vector<1x32x16xf32> to vector<32x16xf32>
    %cst_108 = arith.constant dense<0.000000e+00> : vector<8x16xf32>
    %460 = tpu.matmul %448, %459, %cst_108 {dimension_numbers = #tpu.dot_dimension_numbers<[1], [0], [0], [1], [0, 0, 1, 1], [], []>} : vector<8x32xf32>, vector<32x16xf32>, vector<8x16xf32> -> vector<8x16xf32>
    %461 = arith.addf %457, %460 : vector<8x16xf32>
    %c2_109 = arith.constant 2 : index
    %c0_110 = arith.constant 0 : index
    %c0_111 = arith.constant 0 : index
    %462 = vector.load %arg8[%c2_109, %c0_110, %c0_111] : memref<24x32x16xf32, #tpu.memory_space<vmem>>, vector<1x32x16xf32>
    %463 = vector.shape_cast %462 : vector<1x32x16xf32> to vector<32x16xf32>
    %cst_112 = arith.constant dense<0.000000e+00> : vector<8x16xf32>
    %464 = tpu.matmul %454, %463, %cst_112 {dimension_numbers = #tpu.dot_dimension_numbers<[1], [0], [0], [1], [0, 0, 1, 1], [], []>} : vector<8x32xf32>, vector<32x16xf32>, vector<8x16xf32> -> vector<8x16xf32>
    %465 = arith.addf %461, %464 : vector<8x16xf32>
    %c3_113 = arith.constant 3 : index
    %c0_114 = arith.constant 0 : index
    %c0_115 = arith.constant 0 : index
    %466 = vector.load %arg8[%c3_113, %c0_114, %c0_115] : memref<24x32x16xf32, #tpu.memory_space<vmem>>, vector<1x32x16xf32>
    %467 = vector.shape_cast %466 : vector<1x32x16xf32> to vector<32x16xf32>
    %cst_116 = arith.constant dense<0.000000e+00> : vector<8x16xf32>
    %468 = tpu.matmul %451, %467, %cst_116 {dimension_numbers = #tpu.dot_dimension_numbers<[1], [0], [0], [1], [0, 0, 1, 1], [], []>} : vector<8x32xf32>, vector<32x16xf32>, vector<8x16xf32> -> vector<8x16xf32>
    %c4_117 = arith.constant 4 : index
    %c0_118 = arith.constant 0 : index
    %c0_119 = arith.constant 0 : index
    %469 = vector.load %arg8[%c4_117, %c0_118, %c0_119] : memref<24x32x16xf32, #tpu.memory_space<vmem>>, vector<1x32x16xf32>
    %470 = vector.shape_cast %469 : vector<1x32x16xf32> to vector<32x16xf32>
    %cst_120 = arith.constant dense<0.000000e+00> : vector<8x16xf32>
    %471 = tpu.matmul %448, %470, %cst_120 {dimension_numbers = #tpu.dot_dimension_numbers<[1], [0], [0], [1], [0, 0, 1, 1], [], []>} : vector<8x32xf32>, vector<32x16xf32>, vector<8x16xf32> -> vector<8x16xf32>
    %472 = arith.addf %468, %471 : vector<8x16xf32>
    %c5_121 = arith.constant 5 : index
    %c0_122 = arith.constant 0 : index
    %c0_123 = arith.constant 0 : index
    %473 = vector.load %arg8[%c5_121, %c0_122, %c0_123] : memref<24x32x16xf32, #tpu.memory_space<vmem>>, vector<1x32x16xf32>
    %474 = vector.shape_cast %473 : vector<1x32x16xf32> to vector<32x16xf32>
    %cst_124 = arith.constant dense<0.000000e+00> : vector<8x16xf32>
    %475 = tpu.matmul %454, %474, %cst_124 {dimension_numbers = #tpu.dot_dimension_numbers<[1], [0], [0], [1], [0, 0, 1, 1], [], []>} : vector<8x32xf32>, vector<32x16xf32>, vector<8x16xf32> -> vector<8x16xf32>
    %476 = arith.addf %472, %475 : vector<8x16xf32>
    %c12 = arith.constant 12 : index
    %477 = memref.load %arg1[%c12] : memref<20xf32, #tpu.memory_space<smem>>
    %478 = vector.broadcast %477 : f32 to vector<8x16xf32>
    %479 = arith.addf %465, %478 : vector<8x16xf32>
    %cst_125 = arith.constant 0.000000e+00 : f32
    %480 = vector.broadcast %cst_125 : f32 to vector<8x16xf32>
    %481 = arith.maximumf %479, %480 : vector<8x16xf32>
    %c13 = arith.constant 13 : index
    %482 = memref.load %arg1[%c13] : memref<20xf32, #tpu.memory_space<smem>>
    %483 = vector.broadcast %482 : f32 to vector<8x16xf32>
    %484 = arith.addf %476, %483 : vector<8x16xf32>
    %cst_126 = arith.constant 0.000000e+00 : f32
    %485 = vector.broadcast %cst_126 : f32 to vector<8x16xf32>
    %486 = arith.maximumf %484, %485 : vector<8x16xf32>
    %487 = tpu.concatenate %481, %486 in 1 : vector<8x16xf32>, vector<8x16xf32> -> vector<8x32xf32>
    %488 = vector.extract_strided_slice %487 {offsets = [7, 0], sizes = [1, 32], strides = [1, 1]} : vector<8x32xf32> to vector<1x32xf32>
    %489 = vector.extract_strided_slice %487 {offsets = [0, 0], sizes = [7, 32], strides = [1, 1]} : vector<8x32xf32> to vector<7x32xf32>
    %490 = tpu.concatenate %488, %489 in 0 : vector<1x32xf32>, vector<7x32xf32> -> vector<8x32xf32>
    %491 = vector.extract_strided_slice %487 {offsets = [1, 0], sizes = [7, 32], strides = [1, 1]} : vector<8x32xf32> to vector<7x32xf32>
    %492 = vector.extract_strided_slice %487 {offsets = [0, 0], sizes = [1, 32], strides = [1, 1]} : vector<8x32xf32> to vector<1x32xf32>
    %493 = tpu.concatenate %491, %492 in 0 : vector<7x32xf32>, vector<1x32xf32> -> vector<8x32xf32>
    %c6_127 = arith.constant 6 : index
    %c0_128 = arith.constant 0 : index
    %c0_129 = arith.constant 0 : index
    %494 = vector.load %arg8[%c6_127, %c0_128, %c0_129] : memref<24x32x16xf32, #tpu.memory_space<vmem>>, vector<1x32x16xf32>
    %495 = vector.shape_cast %494 : vector<1x32x16xf32> to vector<32x16xf32>
    %cst_130 = arith.constant dense<0.000000e+00> : vector<8x16xf32>
    %496 = tpu.matmul %490, %495, %cst_130 {dimension_numbers = #tpu.dot_dimension_numbers<[1], [0], [0], [1], [0, 0, 1, 1], [], []>} : vector<8x32xf32>, vector<32x16xf32>, vector<8x16xf32> -> vector<8x16xf32>
    %c7_131 = arith.constant 7 : index
    %c0_132 = arith.constant 0 : index
    %c0_133 = arith.constant 0 : index
    %497 = vector.load %arg8[%c7_131, %c0_132, %c0_133] : memref<24x32x16xf32, #tpu.memory_space<vmem>>, vector<1x32x16xf32>
    %498 = vector.shape_cast %497 : vector<1x32x16xf32> to vector<32x16xf32>
    %cst_134 = arith.constant dense<0.000000e+00> : vector<8x16xf32>
    %499 = tpu.matmul %487, %498, %cst_134 {dimension_numbers = #tpu.dot_dimension_numbers<[1], [0], [0], [1], [0, 0, 1, 1], [], []>} : vector<8x32xf32>, vector<32x16xf32>, vector<8x16xf32> -> vector<8x16xf32>
    %500 = arith.addf %496, %499 : vector<8x16xf32>
    %c8_135 = arith.constant 8 : index
    %c0_136 = arith.constant 0 : index
    %c0_137 = arith.constant 0 : index
    %501 = vector.load %arg8[%c8_135, %c0_136, %c0_137] : memref<24x32x16xf32, #tpu.memory_space<vmem>>, vector<1x32x16xf32>
    %502 = vector.shape_cast %501 : vector<1x32x16xf32> to vector<32x16xf32>
    %cst_138 = arith.constant dense<0.000000e+00> : vector<8x16xf32>
    %503 = tpu.matmul %493, %502, %cst_138 {dimension_numbers = #tpu.dot_dimension_numbers<[1], [0], [0], [1], [0, 0, 1, 1], [], []>} : vector<8x32xf32>, vector<32x16xf32>, vector<8x16xf32> -> vector<8x16xf32>
    %504 = arith.addf %500, %503 : vector<8x16xf32>
    %c9_139 = arith.constant 9 : index
    %c0_140 = arith.constant 0 : index
    %c0_141 = arith.constant 0 : index
    %505 = vector.load %arg8[%c9_139, %c0_140, %c0_141] : memref<24x32x16xf32, #tpu.memory_space<vmem>>, vector<1x32x16xf32>
    %506 = vector.shape_cast %505 : vector<1x32x16xf32> to vector<32x16xf32>
    %cst_142 = arith.constant dense<0.000000e+00> : vector<8x16xf32>
    %507 = tpu.matmul %490, %506, %cst_142 {dimension_numbers = #tpu.dot_dimension_numbers<[1], [0], [0], [1], [0, 0, 1, 1], [], []>} : vector<8x32xf32>, vector<32x16xf32>, vector<8x16xf32> -> vector<8x16xf32>
    %c10_143 = arith.constant 10 : index
    %c0_144 = arith.constant 0 : index
    %c0_145 = arith.constant 0 : index
    %508 = vector.load %arg8[%c10_143, %c0_144, %c0_145] : memref<24x32x16xf32, #tpu.memory_space<vmem>>, vector<1x32x16xf32>
    %509 = vector.shape_cast %508 : vector<1x32x16xf32> to vector<32x16xf32>
    %cst_146 = arith.constant dense<0.000000e+00> : vector<8x16xf32>
    %510 = tpu.matmul %487, %509, %cst_146 {dimension_numbers = #tpu.dot_dimension_numbers<[1], [0], [0], [1], [0, 0, 1, 1], [], []>} : vector<8x32xf32>, vector<32x16xf32>, vector<8x16xf32> -> vector<8x16xf32>
    %511 = arith.addf %507, %510 : vector<8x16xf32>
    %c11_147 = arith.constant 11 : index
    %c0_148 = arith.constant 0 : index
    %c0_149 = arith.constant 0 : index
    %512 = vector.load %arg8[%c11_147, %c0_148, %c0_149] : memref<24x32x16xf32, #tpu.memory_space<vmem>>, vector<1x32x16xf32>
    %513 = vector.shape_cast %512 : vector<1x32x16xf32> to vector<32x16xf32>
    %cst_150 = arith.constant dense<0.000000e+00> : vector<8x16xf32>
    %514 = tpu.matmul %493, %513, %cst_150 {dimension_numbers = #tpu.dot_dimension_numbers<[1], [0], [0], [1], [0, 0, 1, 1], [], []>} : vector<8x32xf32>, vector<32x16xf32>, vector<8x16xf32> -> vector<8x16xf32>
    %515 = arith.addf %511, %514 : vector<8x16xf32>
    %516 = arith.addf %446, %504 : vector<8x16xf32>
    %c14 = arith.constant 14 : index
    %517 = memref.load %arg1[%c14] : memref<20xf32, #tpu.memory_space<smem>>
    %518 = vector.broadcast %517 : f32 to vector<8x16xf32>
    %519 = arith.addf %516, %518 : vector<8x16xf32>
    %cst_151 = arith.constant 0.000000e+00 : f32
    %520 = vector.broadcast %cst_151 : f32 to vector<8x16xf32>
    %521 = arith.maximumf %519, %520 : vector<8x16xf32>
    %522 = arith.addf %447, %515 : vector<8x16xf32>
    %c15 = arith.constant 15 : index
    %523 = memref.load %arg1[%c15] : memref<20xf32, #tpu.memory_space<smem>>
    %524 = vector.broadcast %523 : f32 to vector<8x16xf32>
    %525 = arith.addf %522, %524 : vector<8x16xf32>
    %cst_152 = arith.constant 0.000000e+00 : f32
    %526 = vector.broadcast %cst_152 : f32 to vector<8x16xf32>
    %527 = arith.maximumf %525, %526 : vector<8x16xf32>
    %528 = tpu.concatenate %521, %527 in 1 : vector<8x16xf32>, vector<8x16xf32> -> vector<8x32xf32>
    %529 = vector.extract_strided_slice %528 {offsets = [7, 0], sizes = [1, 32], strides = [1, 1]} : vector<8x32xf32> to vector<1x32xf32>
    %530 = vector.extract_strided_slice %528 {offsets = [0, 0], sizes = [7, 32], strides = [1, 1]} : vector<8x32xf32> to vector<7x32xf32>
    %531 = tpu.concatenate %529, %530 in 0 : vector<1x32xf32>, vector<7x32xf32> -> vector<8x32xf32>
    %532 = vector.extract_strided_slice %528 {offsets = [1, 0], sizes = [7, 32], strides = [1, 1]} : vector<8x32xf32> to vector<7x32xf32>
    %533 = vector.extract_strided_slice %528 {offsets = [0, 0], sizes = [1, 32], strides = [1, 1]} : vector<8x32xf32> to vector<1x32xf32>
    %534 = tpu.concatenate %532, %533 in 0 : vector<7x32xf32>, vector<1x32xf32> -> vector<8x32xf32>
    %c12_153 = arith.constant 12 : index
    %c0_154 = arith.constant 0 : index
    %c0_155 = arith.constant 0 : index
    %535 = vector.load %arg8[%c12_153, %c0_154, %c0_155] : memref<24x32x16xf32, #tpu.memory_space<vmem>>, vector<1x32x16xf32>
    %536 = vector.shape_cast %535 : vector<1x32x16xf32> to vector<32x16xf32>
    %cst_156 = arith.constant dense<0.000000e+00> : vector<8x16xf32>
    %537 = tpu.matmul %531, %536, %cst_156 {dimension_numbers = #tpu.dot_dimension_numbers<[1], [0], [0], [1], [0, 0, 1, 1], [], []>} : vector<8x32xf32>, vector<32x16xf32>, vector<8x16xf32> -> vector<8x16xf32>
    %c13_157 = arith.constant 13 : index
    %c0_158 = arith.constant 0 : index
    %c0_159 = arith.constant 0 : index
    %538 = vector.load %arg8[%c13_157, %c0_158, %c0_159] : memref<24x32x16xf32, #tpu.memory_space<vmem>>, vector<1x32x16xf32>
    %539 = vector.shape_cast %538 : vector<1x32x16xf32> to vector<32x16xf32>
    %cst_160 = arith.constant dense<0.000000e+00> : vector<8x16xf32>
    %540 = tpu.matmul %528, %539, %cst_160 {dimension_numbers = #tpu.dot_dimension_numbers<[1], [0], [0], [1], [0, 0, 1, 1], [], []>} : vector<8x32xf32>, vector<32x16xf32>, vector<8x16xf32> -> vector<8x16xf32>
    %541 = arith.addf %537, %540 : vector<8x16xf32>
    %c14_161 = arith.constant 14 : index
    %c0_162 = arith.constant 0 : index
    %c0_163 = arith.constant 0 : index
    %542 = vector.load %arg8[%c14_161, %c0_162, %c0_163] : memref<24x32x16xf32, #tpu.memory_space<vmem>>, vector<1x32x16xf32>
    %543 = vector.shape_cast %542 : vector<1x32x16xf32> to vector<32x16xf32>
    %cst_164 = arith.constant dense<0.000000e+00> : vector<8x16xf32>
    %544 = tpu.matmul %534, %543, %cst_164 {dimension_numbers = #tpu.dot_dimension_numbers<[1], [0], [0], [1], [0, 0, 1, 1], [], []>} : vector<8x32xf32>, vector<32x16xf32>, vector<8x16xf32> -> vector<8x16xf32>
    %545 = arith.addf %541, %544 : vector<8x16xf32>
    %c15_165 = arith.constant 15 : index
    %c0_166 = arith.constant 0 : index
    %c0_167 = arith.constant 0 : index
    %546 = vector.load %arg8[%c15_165, %c0_166, %c0_167] : memref<24x32x16xf32, #tpu.memory_space<vmem>>, vector<1x32x16xf32>
    %547 = vector.shape_cast %546 : vector<1x32x16xf32> to vector<32x16xf32>
    %cst_168 = arith.constant dense<0.000000e+00> : vector<8x16xf32>
    %548 = tpu.matmul %531, %547, %cst_168 {dimension_numbers = #tpu.dot_dimension_numbers<[1], [0], [0], [1], [0, 0, 1, 1], [], []>} : vector<8x32xf32>, vector<32x16xf32>, vector<8x16xf32> -> vector<8x16xf32>
    %c16 = arith.constant 16 : index
    %c0_169 = arith.constant 0 : index
    %c0_170 = arith.constant 0 : index
    %549 = vector.load %arg8[%c16, %c0_169, %c0_170] : memref<24x32x16xf32, #tpu.memory_space<vmem>>, vector<1x32x16xf32>
    %550 = vector.shape_cast %549 : vector<1x32x16xf32> to vector<32x16xf32>
    %cst_171 = arith.constant dense<0.000000e+00> : vector<8x16xf32>
    %551 = tpu.matmul %528, %550, %cst_171 {dimension_numbers = #tpu.dot_dimension_numbers<[1], [0], [0], [1], [0, 0, 1, 1], [], []>} : vector<8x32xf32>, vector<32x16xf32>, vector<8x16xf32> -> vector<8x16xf32>
    %552 = arith.addf %548, %551 : vector<8x16xf32>
    %c17 = arith.constant 17 : index
    %c0_172 = arith.constant 0 : index
    %c0_173 = arith.constant 0 : index
    %553 = vector.load %arg8[%c17, %c0_172, %c0_173] : memref<24x32x16xf32, #tpu.memory_space<vmem>>, vector<1x32x16xf32>
    %554 = vector.shape_cast %553 : vector<1x32x16xf32> to vector<32x16xf32>
    %cst_174 = arith.constant dense<0.000000e+00> : vector<8x16xf32>
    %555 = tpu.matmul %534, %554, %cst_174 {dimension_numbers = #tpu.dot_dimension_numbers<[1], [0], [0], [1], [0, 0, 1, 1], [], []>} : vector<8x32xf32>, vector<32x16xf32>, vector<8x16xf32> -> vector<8x16xf32>
    %556 = arith.addf %552, %555 : vector<8x16xf32>
    %c16_175 = arith.constant 16 : index
    %557 = memref.load %arg1[%c16_175] : memref<20xf32, #tpu.memory_space<smem>>
    %558 = vector.broadcast %557 : f32 to vector<8x16xf32>
    %559 = arith.addf %545, %558 : vector<8x16xf32>
    %cst_176 = arith.constant 0.000000e+00 : f32
    %560 = vector.broadcast %cst_176 : f32 to vector<8x16xf32>
    %561 = arith.maximumf %559, %560 : vector<8x16xf32>
    %c17_177 = arith.constant 17 : index
    %562 = memref.load %arg1[%c17_177] : memref<20xf32, #tpu.memory_space<smem>>
    %563 = vector.broadcast %562 : f32 to vector<8x16xf32>
    %564 = arith.addf %556, %563 : vector<8x16xf32>
    %cst_178 = arith.constant 0.000000e+00 : f32
    %565 = vector.broadcast %cst_178 : f32 to vector<8x16xf32>
    %566 = arith.maximumf %564, %565 : vector<8x16xf32>
    %567 = tpu.concatenate %561, %566 in 1 : vector<8x16xf32>, vector<8x16xf32> -> vector<8x32xf32>
    %568 = vector.extract_strided_slice %567 {offsets = [7, 0], sizes = [1, 32], strides = [1, 1]} : vector<8x32xf32> to vector<1x32xf32>
    %569 = vector.extract_strided_slice %567 {offsets = [0, 0], sizes = [7, 32], strides = [1, 1]} : vector<8x32xf32> to vector<7x32xf32>
    %570 = tpu.concatenate %568, %569 in 0 : vector<1x32xf32>, vector<7x32xf32> -> vector<8x32xf32>
    %571 = vector.extract_strided_slice %567 {offsets = [1, 0], sizes = [7, 32], strides = [1, 1]} : vector<8x32xf32> to vector<7x32xf32>
    %572 = vector.extract_strided_slice %567 {offsets = [0, 0], sizes = [1, 32], strides = [1, 1]} : vector<8x32xf32> to vector<1x32xf32>
    %573 = tpu.concatenate %571, %572 in 0 : vector<7x32xf32>, vector<1x32xf32> -> vector<8x32xf32>
    %c18 = arith.constant 18 : index
    %c0_179 = arith.constant 0 : index
    %c0_180 = arith.constant 0 : index
    %574 = vector.load %arg8[%c18, %c0_179, %c0_180] : memref<24x32x16xf32, #tpu.memory_space<vmem>>, vector<1x32x16xf32>
    %575 = vector.shape_cast %574 : vector<1x32x16xf32> to vector<32x16xf32>
    %cst_181 = arith.constant dense<0.000000e+00> : vector<8x16xf32>
    %576 = tpu.matmul %570, %575, %cst_181 {dimension_numbers = #tpu.dot_dimension_numbers<[1], [0], [0], [1], [0, 0, 1, 1], [], []>} : vector<8x32xf32>, vector<32x16xf32>, vector<8x16xf32> -> vector<8x16xf32>
    %c19 = arith.constant 19 : index
    %c0_182 = arith.constant 0 : index
    %c0_183 = arith.constant 0 : index
    %577 = vector.load %arg8[%c19, %c0_182, %c0_183] : memref<24x32x16xf32, #tpu.memory_space<vmem>>, vector<1x32x16xf32>
    %578 = vector.shape_cast %577 : vector<1x32x16xf32> to vector<32x16xf32>
    %cst_184 = arith.constant dense<0.000000e+00> : vector<8x16xf32>
    %579 = tpu.matmul %567, %578, %cst_184 {dimension_numbers = #tpu.dot_dimension_numbers<[1], [0], [0], [1], [0, 0, 1, 1], [], []>} : vector<8x32xf32>, vector<32x16xf32>, vector<8x16xf32> -> vector<8x16xf32>
    %580 = arith.addf %576, %579 : vector<8x16xf32>
    %c20 = arith.constant 20 : index
    %c0_185 = arith.constant 0 : index
    %c0_186 = arith.constant 0 : index
    %581 = vector.load %arg8[%c20, %c0_185, %c0_186] : memref<24x32x16xf32, #tpu.memory_space<vmem>>, vector<1x32x16xf32>
    %582 = vector.shape_cast %581 : vector<1x32x16xf32> to vector<32x16xf32>
    %cst_187 = arith.constant dense<0.000000e+00> : vector<8x16xf32>
    %583 = tpu.matmul %573, %582, %cst_187 {dimension_numbers = #tpu.dot_dimension_numbers<[1], [0], [0], [1], [0, 0, 1, 1], [], []>} : vector<8x32xf32>, vector<32x16xf32>, vector<8x16xf32> -> vector<8x16xf32>
    %584 = arith.addf %580, %583 : vector<8x16xf32>
    %c21 = arith.constant 21 : index
    %c0_188 = arith.constant 0 : index
    %c0_189 = arith.constant 0 : index
    %585 = vector.load %arg8[%c21, %c0_188, %c0_189] : memref<24x32x16xf32, #tpu.memory_space<vmem>>, vector<1x32x16xf32>
    %586 = vector.shape_cast %585 : vector<1x32x16xf32> to vector<32x16xf32>
    %cst_190 = arith.constant dense<0.000000e+00> : vector<8x16xf32>
    %587 = tpu.matmul %570, %586, %cst_190 {dimension_numbers = #tpu.dot_dimension_numbers<[1], [0], [0], [1], [0, 0, 1, 1], [], []>} : vector<8x32xf32>, vector<32x16xf32>, vector<8x16xf32> -> vector<8x16xf32>
    %c22 = arith.constant 22 : index
    %c0_191 = arith.constant 0 : index
    %c0_192 = arith.constant 0 : index
    %588 = vector.load %arg8[%c22, %c0_191, %c0_192] : memref<24x32x16xf32, #tpu.memory_space<vmem>>, vector<1x32x16xf32>
    %589 = vector.shape_cast %588 : vector<1x32x16xf32> to vector<32x16xf32>
    %cst_193 = arith.constant dense<0.000000e+00> : vector<8x16xf32>
    %590 = tpu.matmul %567, %589, %cst_193 {dimension_numbers = #tpu.dot_dimension_numbers<[1], [0], [0], [1], [0, 0, 1, 1], [], []>} : vector<8x32xf32>, vector<32x16xf32>, vector<8x16xf32> -> vector<8x16xf32>
    %591 = arith.addf %587, %590 : vector<8x16xf32>
    %c23 = arith.constant 23 : index
    %c0_194 = arith.constant 0 : index
    %c0_195 = arith.constant 0 : index
    %592 = vector.load %arg8[%c23, %c0_194, %c0_195] : memref<24x32x16xf32, #tpu.memory_space<vmem>>, vector<1x32x16xf32>
    %593 = vector.shape_cast %592 : vector<1x32x16xf32> to vector<32x16xf32>
    %cst_196 = arith.constant dense<0.000000e+00> : vector<8x16xf32>
    %594 = tpu.matmul %573, %593, %cst_196 {dimension_numbers = #tpu.dot_dimension_numbers<[1], [0], [0], [1], [0, 0, 1, 1], [], []>} : vector<8x32xf32>, vector<32x16xf32>, vector<8x16xf32> -> vector<8x16xf32>
    %595 = arith.addf %591, %594 : vector<8x16xf32>
    %596 = arith.addf %521, %584 : vector<8x16xf32>
    %c18_197 = arith.constant 18 : index
    %597 = memref.load %arg1[%c18_197] : memref<20xf32, #tpu.memory_space<smem>>
    %598 = vector.broadcast %597 : f32 to vector<8x16xf32>
    %599 = arith.addf %596, %598 : vector<8x16xf32>
    %cst_198 = arith.constant 0.000000e+00 : f32
    %600 = vector.broadcast %cst_198 : f32 to vector<8x16xf32>
    %601 = arith.maximumf %599, %600 : vector<8x16xf32>
    %602 = arith.addf %527, %595 : vector<8x16xf32>
    %c19_199 = arith.constant 19 : index
    %603 = memref.load %arg1[%c19_199] : memref<20xf32, #tpu.memory_space<smem>>
    %604 = vector.broadcast %603 : f32 to vector<8x16xf32>
    %605 = arith.addf %602, %604 : vector<8x16xf32>
    %cst_200 = arith.constant 0.000000e+00 : f32
    %606 = vector.broadcast %cst_200 : f32 to vector<8x16xf32>
    %607 = arith.maximumf %605, %606 : vector<8x16xf32>
    %608 = tpu.concatenate %601, %607 in 1 : vector<8x16xf32>, vector<8x16xf32> -> vector<8x32xf32>
    %c0_201 = arith.constant 0 : index
    %c0_202 = arith.constant 0 : index
    %c0_203 = arith.constant 0 : index
    %609 = vector.load %arg9[%c0_201, %c0_202, %c0_203] : memref<6x32x33xf32, #tpu.memory_space<vmem>>, vector<1x32x33xf32>
    %610 = vector.shape_cast %609 : vector<1x32x33xf32> to vector<32x33xf32>
    %cst_204 = arith.constant dense<0.000000e+00> : vector<8x33xf32>
    %611 = tpu.matmul %608, %610, %cst_204 {dimension_numbers = #tpu.dot_dimension_numbers<[1], [0], [0], [1], [0, 0, 1, 1], [], []>} : vector<8x32xf32>, vector<32x33xf32>, vector<8x33xf32> -> vector<8x33xf32>
    %c1_205 = arith.constant 1 : index
    %c0_206 = arith.constant 0 : index
    %c0_207 = arith.constant 0 : index
    %612 = vector.load %arg9[%c1_205, %c0_206, %c0_207] : memref<6x32x33xf32, #tpu.memory_space<vmem>>, vector<1x32x33xf32>
    %613 = vector.shape_cast %612 : vector<1x32x33xf32> to vector<32x33xf32>
    %cst_208 = arith.constant dense<0.000000e+00> : vector<8x33xf32>
    %614 = tpu.matmul %608, %613, %cst_208 {dimension_numbers = #tpu.dot_dimension_numbers<[1], [0], [0], [1], [0, 0, 1, 1], [], []>} : vector<8x32xf32>, vector<32x33xf32>, vector<8x33xf32> -> vector<8x33xf32>
    %c2_209 = arith.constant 2 : index
    %c0_210 = arith.constant 0 : index
    %c0_211 = arith.constant 0 : index
    %615 = vector.load %arg9[%c2_209, %c0_210, %c0_211] : memref<6x32x33xf32, #tpu.memory_space<vmem>>, vector<1x32x33xf32>
    %616 = vector.shape_cast %615 : vector<1x32x33xf32> to vector<32x33xf32>
    %cst_212 = arith.constant dense<0.000000e+00> : vector<8x33xf32>
    %617 = tpu.matmul %608, %616, %cst_212 {dimension_numbers = #tpu.dot_dimension_numbers<[1], [0], [0], [1], [0, 0, 1, 1], [], []>} : vector<8x32xf32>, vector<32x33xf32>, vector<8x33xf32> -> vector<8x33xf32>
    %c3_213 = arith.constant 3 : index
    %c0_214 = arith.constant 0 : index
    %c0_215 = arith.constant 0 : index
    %618 = vector.load %arg9[%c3_213, %c0_214, %c0_215] : memref<6x32x33xf32, #tpu.memory_space<vmem>>, vector<1x32x33xf32>
    %619 = vector.shape_cast %618 : vector<1x32x33xf32> to vector<32x33xf32>
    %cst_216 = arith.constant dense<0.000000e+00> : vector<8x33xf32>
    %620 = tpu.matmul %608, %619, %cst_216 {dimension_numbers = #tpu.dot_dimension_numbers<[1], [0], [0], [1], [0, 0, 1, 1], [], []>} : vector<8x32xf32>, vector<32x33xf32>, vector<8x33xf32> -> vector<8x33xf32>
    %c4_217 = arith.constant 4 : index
    %c0_218 = arith.constant 0 : index
    %c0_219 = arith.constant 0 : index
    %621 = vector.load %arg9[%c4_217, %c0_218, %c0_219] : memref<6x32x33xf32, #tpu.memory_space<vmem>>, vector<1x32x33xf32>
    %622 = vector.shape_cast %621 : vector<1x32x33xf32> to vector<32x33xf32>
    %cst_220 = arith.constant dense<0.000000e+00> : vector<8x33xf32>
    %623 = tpu.matmul %608, %622, %cst_220 {dimension_numbers = #tpu.dot_dimension_numbers<[1], [0], [0], [1], [0, 0, 1, 1], [], []>} : vector<8x32xf32>, vector<32x33xf32>, vector<8x33xf32> -> vector<8x33xf32>
    %c5_221 = arith.constant 5 : index
    %c0_222 = arith.constant 0 : index
    %c0_223 = arith.constant 0 : index
    %624 = vector.load %arg9[%c5_221, %c0_222, %c0_223] : memref<6x32x33xf32, #tpu.memory_space<vmem>>, vector<1x32x33xf32>
    %625 = vector.shape_cast %624 : vector<1x32x33xf32> to vector<32x33xf32>
    %cst_224 = arith.constant dense<0.000000e+00> : vector<8x33xf32>
    %626 = tpu.matmul %608, %625, %cst_224 {dimension_numbers = #tpu.dot_dimension_numbers<[1], [0], [0], [1], [0, 0, 1, 1], [], []>} : vector<8x32xf32>, vector<32x33xf32>, vector<8x33xf32> -> vector<8x33xf32>
    %627 = tpu.concatenate %611, %614, %617, %620, %623, %626 in 0 : vector<8x33xf32>, vector<8x33xf32>, vector<8x33xf32>, vector<8x33xf32>, vector<8x33xf32>, vector<8x33xf32> -> vector<48x33xf32>
    %c0_225 = arith.constant 0 : index
    %c0_226 = arith.constant 0 : index
    %628 = vector.load %arg10[%c0_225, %c0_226] : memref<17x48xf32, #tpu.memory_space<vmem>>, vector<17x48xf32>
    %cst_227 = arith.constant dense<0.000000e+00> : vector<17x33xf32>
    %629 = tpu.matmul %628, %627, %cst_227 {dimension_numbers = #tpu.dot_dimension_numbers<[1], [0], [0], [1], [0, 0, 1, 1], [], []>} : vector<17x48xf32>, vector<48x33xf32>, vector<17x33xf32> -> vector<17x33xf32>
    %630 = vector.shape_cast %629 : vector<17x33xf32> to vector<1x17x33xf32>
    %c0_228 = arith.constant 0 : index
    %c0_229 = arith.constant 0 : index
    %c0_230 = arith.constant 0 : index
    %631 = vector.load %arg11[%c0_228, %c0_229, %c0_230] : memref<1x17x33xf32, #tpu.memory_space<vmem>>, vector<1x17x33xf32>
    tpu.vector_store %arg11[%c0_228, %c0_229, %c0_230], %630 {strides = array<i32>} : memref<1x17x33xf32, #tpu.memory_space<vmem>>, vector<1x17x33xf32>,
    return
  }
  func.func @transform_0(%arg0: i32) -> i32 {
    %c0_i32 = arith.constant 0 : i32
    %c0_i32_0 = arith.constant 0 : i32
    return %c0_i32 : i32
  }
  func.func @transform_1(%arg0: i32) -> (i32, i32, i32, i32) {
    %c0_i32 = arith.constant 0 : i32
    %c0_i32_0 = arith.constant 0 : i32
    %c0_i32_1 = arith.constant 0 : i32
    %c0_i32_2 = arith.constant 0 : i32
    return %arg0, %c0_i32, %c0_i32_0, %c0_i32_1 : i32, i32, i32, i32
  }
  func.func @transform_2(%arg0: i32) -> (i32, i32) {
    %c0_i32 = arith.constant 0 : i32
    %c0_i32_0 = arith.constant 0 : i32
    %c0_i32_1 = arith.constant 0 : i32
    return %c0_i32, %c0_i32_0 : i32, i32
  }
  func.func @transform_3(%arg0: i32) -> (i32, i32) {
    %c0_i32 = arith.constant 0 : i32
    %c0_i32_0 = arith.constant 0 : i32
    %c0_i32_1 = arith.constant 0 : i32
    return %c0_i32, %c0_i32_0 : i32, i32
  }
  func.func @transform_4(%arg0: i32) -> (i32, i32, i32) {
    %c0_i32 = arith.constant 0 : i32
    %c0_i32_0 = arith.constant 0 : i32
    %c0_i32_1 = arith.constant 0 : i32
    %c0_i32_2 = arith.constant 0 : i32
    return %c0_i32, %c0_i32_0, %c0_i32_1 : i32, i32, i32
  }
  func.func @transform_5(%arg0: i32) -> (i32, i32, i32) {
    %c0_i32 = arith.constant 0 : i32
    %c0_i32_0 = arith.constant 0 : i32
    %c0_i32_1 = arith.constant 0 : i32
    %c0_i32_2 = arith.constant 0 : i32
    return %c0_i32, %c0_i32_0, %c0_i32_1 : i32, i32, i32
  }
  func.func @transform_6(%arg0: i32) -> (i32, i32) {
    %c0_i32 = arith.constant 0 : i32
    %c0_i32_0 = arith.constant 0 : i32
    %c0_i32_1 = arith.constant 0 : i32
    return %c0_i32, %c0_i32_0 : i32, i32
  }
  func.func @transform_7(%arg0: i32) -> (i32, i32, i32) {
    %c0_i32 = arith.constant 0 : i32
    %c0_i32_0 = arith.constant 0 : i32
    %c0_i32_1 = arith.constant 0 : i32
    %c0_i32_2 = arith.constant 0 : i32
    return %c0_i32, %c0_i32_0, %c0_i32_1 : i32, i32, i32
  }
  func.func @transform_8(%arg0: i32) -> (i32, i32, i32) {
    %c0_i32 = arith.constant 0 : i32
    %c0_i32_0 = arith.constant 0 : i32
    %c0_i32_1 = arith.constant 0 : i32
    %c0_i32_2 = arith.constant 0 : i32
    return %c0_i32, %c0_i32_0, %c0_i32_1 : i32, i32, i32
  }
  func.func @transform_9(%arg0: i32) -> (i32, i32) {
    %c0_i32 = arith.constant 0 : i32
    %c0_i32_0 = arith.constant 0 : i32
    %c0_i32_1 = arith.constant 0 : i32
    return %c0_i32, %c0_i32_0 : i32, i32
  }
  func.func @transform_10(%arg0: i32) -> (i32, i32, i32) {
    %c0_i32 = arith.constant 0 : i32
    %c0_i32_0 = arith.constant 0 : i32
    %c0_i32_1 = arith.constant 0 : i32
    return %arg0, %c0_i32, %c0_i32_0 : i32, i32, i32
  }
}

</mosaic_0001>

<bundles_post_ra>
// kernel: forward.1
= control target key start
LH: loop header
LB: loop body
LE: loop exit
PB: predicated region body
PF: predicated region fallthrough
CT: control target
= control target key end

     0   :  { %15 = vsyncpa [#allocation3], 0  ;;  %s5307_s13 = smov 0   ;;  %s6203_s0 = inlined_call_operand.vmem [shape: f32[20], index: 0, kind: input, shape index: {}]   ;;  %s6204_s1 = inlined_call_operand.vmem [shape: f32[2,2,8,16], index: 1, kind: input, shape index: {}]   ;;  %s6205_s2 = inlined_call_operand.vmem [shape: f32[32,64], index: 2, kind: input, shape index: {}]   ;;  %s6206_s3 = inlined_call_operand.vmem [shape: f32[64,4], index: 3, kind: input, shape index: {}]   ;;  %s6207_s4 = inlined_call_operand.vmem [shape: f32[4,16,16], index: 4, kind: input, shape index: {}]   ;;  %s6208_s5 = inlined_call_operand.vmem [shape: f32[4,16,16], index: 5, kind: input, shape index: {}]   ;;  %s6209_s6 = inlined_call_operand.vmem [shape: f32[32,16], index: 6, kind: input, shape index: {}]   ;;  %s6210_s7 = inlined_call_operand.vmem [shape: f32[24,32,16], index: 7, kind: input, shape index: {}]   ;;  %s6211_s8 = inlined_call_operand.vmem [shape: f32[6,32,33], index: 8, kind: input, shape index: {}]   ;;  %s6212_s9 = inlined_call_operand.vmem [shape: f32[17,48], index: 9, kind: input, shape index: {}]   ;;  %s6213_s10 = inlined_call_operand.vmem [shape: f32[2,17,33], index: 10, kind: output, shape index: {}]  }
   0x1 LB: > { %s5313_s14 = sadd.s32 4294967295, %s5239_s13   ;;  %p4285_p0 = scmp.ge.s32.totalorder %s5239_s13, 1  ;;  %s5239_s13 = sphi %s5307_s13, %s21_s13  }
   0x2   : > { %p267_p1 = scmp.lt.s32.totalorder %s5239_s13, 3  ;;  %s280_s17 = sshll.u32 %s6203_s0, 4  ;;  %s281_s17 = int_to_ptr.vmem [resolvable:$true] %s280_s17 }
   0x3   : > { %p5166_p3 = scmp.eq.s32.totalorder %s5313_s14, 0  ;;  %s5214_s19 = scalar_lea.vmem %s281_s17, 16 }
   0x4   : > { %p5320_p2 = pnand %p4285_p0, %p267_p1  ;;  %p5215_p6 = scmp.ne.s32.totalorder %s281_s17, %s5214_s19 }
   0x5   : > { %p5222_p10 = scmp.lt.s32.totalorder %s281_s17, %s281_s17  ;;  %p5223_p11 = scmp.lt.s32.totalorder %s5214_s19, %s5214_s19 }
   0x6   : > { %p5162_p4 = pneg %p5320_p2 }
   0x7   : > { %p5224_p12 = por %p5223_p11, %p5222_p10 }
   0x8   : > { %p5163_p5 = pnand %p5166_p3, %p5162_p4 }
   0xa   : > { %p5216_p7 = pneg %p5163_p5 }
   0xc   : > { %p5217_p8 = pnand %p5216_p7, %p5215_p6 }
   0xe   : > { %p5218_p9 = pneg %p5217_p8 }
  0x10   : > { %p5225_p13 = pnand %p5224_p12, %p5218_p9 }
  0x12   : > { %5228 = shalt.err (!%p5225_p13)
}
  0x13   : > { %s5241_s20 = smov [#allocation2]   ;;  %325 = sbr.rel (%p5320_p2) target bundleno = 5474 (0x1562), region = 60 }
  0x14   : > { %5165 = dma.vmem_to_smem (!%p5163_p5), %s281_s17, 16, %s5241_s20, [#allocation3]  }
  0x18   : > { %5234 = dma.done.wait (%p5166_p3), [#allocation3], 16  }
  0x19   : > { %5236 = vsyncadd (%p5166_p3), [#allocation3], 4294967280 }
  0x1a   : > { %331 = sfence }
  0x1b   : > { %p364_p0 = scmp.lt.s32.totalorder %s5313_s14, 1  ;;  %v386_v0 = vld [vmem:[%s6205_s2 + $0x18] sm:$0xff]  ;;  %v5242_v1 = vmov 0.0   ;;  %v385_v2 = vld [vmem:[%s6205_s2 + $0x10] sm:$0xff]  ;;  %vm5243_vm0 = vmmov 0   ;;  %v384_v3 = vld [vmem:[%s6205_s2 + $0x8] sm:$0xff]  ;;  %v603_v45 = vlaneseq }
  0x1c   : > { %4706 = vmatprep.subr.mxu0 %v5242_v1  ;;  %4717 = vmatprep.subr.mxu1 %v5242_v1  ;;  %v383_v4 = vld [vmem:[%s6205_s2] sm:$0xff]  ;;  %s5244_s15 = smov 16   ;;  %vm381_vm1 = vcmask 130048   ;;  %vm387_vm2 = vcmask 261120   ;;  %s5245_s16 = smov 112   ;;  %v507_v13 = vld [vmem:[%s6206_s3 + $0x38] sm:$0xff] }
  0x1d   : > { %s6216_s14 = smov (!%p364_p0, %s5313_s14), 1  ;;  %4707 = vmatpush3.msra.mxu0 %v386_v0  ;;  %4714 = vmatprep.mubr.msk.f32.mxu0 %vm5243_vm0, %v5242_v1  ;;  %v506_v14 = vld [vmem:[%s6206_s3 + $0x30] sm:$0xff]  ;;  %v505_v15 = vld [vmem:[%s6206_s3 + $0x28] sm:$0xff]  ;;  %v504_v16 = vld [vmem:[%s6206_s3 + $0x20] sm:$0xff]  ;;  %s5246_s17 = smov 32   ;;  %vm498_vm3 = vcmask 392192  }
  0x1e   : > { %4708 = vmatprep.subr.mxu0 %v5242_v1  ;;  %4733 = vmatprep.mubr.msk.f32.mxu1 %vm5243_vm0, %v5242_v1  ;;  %s4494_s27 = sshll.u32 %s6216_s14, 4  ;;  %v503_v19 = vld [vmem:[%s6206_s3 + $0x18] sm:$0xff]  ;;  %v502_v21 = vld [vmem:[%s6206_s3 + $0x10] sm:$0xff]  ;;  %v501_v23 = vld [vmem:[%s6206_s3 + $0x8] sm:$0xff]  ;;  %vm508_vm4 = vcmask 523264   ;;  %s5247_s18 = smov 126  }
  0x1f   : > { %4709 = vmatpush3.msra.mxu0 %v385_v2  ;;  %s368_s30 = scalar_lea.vmem %s6204_s1, %s4494_s27  ;;  %4718 = vmatpush3.msra.mxu1 %v507_v13  ;;  %v500_v25 = vld [vmem:[%s6206_s3] sm:$0xff]  ;;  %s5248_s19 = smov 2   ;;  %v5249_v44 = vmov 1   ;;  %v604_v46 = vshrl.u32 %v603_v45, 7  ;;  %vm464_vm7 = vcmask 1040384   ;;  %vm625_vm8 = vcmask 1041408  }
  0x20   : > { %4710 = vmatprep.subr.mxu0 %v5242_v1  ;;  %v4293_v5 = vld [vmem:[%s368_s30 + $0x8] sm:$0xff]  ;;  %v374_v6 = vld [vmem:[%s368_s30] sm:$0xff]  ;;  %4719 = vmatprep.subr.mxu1 %v5242_v1  ;;  %vm640_vm9 = vcmask 1043456   ;;  %s4296_s20 = sld [smem:[#allocation2 + $0x1]]  ;;  %s5251_s24 = smov 96  }
  0x21   : > { %4711 = vmatpush3.msra.mxu0 %v384_v3  ;;  %378 = vrot.lane.b32.xlu0 %v4293_v5, %s5244_s15  ;;  %vm605_vm6 = vcmp.eq.s32.totalorder %v604_v46, 0  ;;  %s4298_s21 = sld [smem:[#allocation2 + $0x3]] }
  0x22   : > { %4712 = vmatprep.subr.mxu0 %v5242_v1  ;;  %4720 = vmatpush3.msra.mxu1 %v506_v14  ;;  %s4297_s25 = sld [smem:[#allocation2 + $0x2]] }
  0x23   : > { %4713 = vmatpush3.msra.mxu0 %v383_v4  ;;  %4721 = vmatprep.subr.mxu1 %v5242_v1  ;;  %s4312_s26 = sld [smem:[#allocation2 + $0x5]] }
  0x24   : > { %4722 = vmatpush3.msra.mxu1 %v505_v15  ;;  %5187 = vset.pattern.permute.xlu1 %v5249_v44  ;;  %s4313_s27 = sld [smem:[#allocation2 + $0x6]] }
  0x25   : > { %4723 = vmatprep.subr.mxu1 %v5242_v1  ;;  %5188 = vset.pattern.permute.xlu0 %v5249_v44  ;;  %s4314_s28 = sld [smem:[#allocation2 + $0x7]] }
  0x26   : > { %4724 = vmatpush3.msra.mxu1 %v504_v16  ;;  %s4332_s29 = sld [smem:[#allocation2 + $0x9]] }
  0x27   : > { %4725 = vmatprep.subr.mxu1 %v5242_v1  ;;  %s4333_s30 = sld [smem:[#allocation2 + $0xa]] }
  0x28   : > { %4726 = vmatpush3.msra.mxu1 %v503_v19  ;;  %s4334_s11 = sld [smem:[#allocation2 + $0xb]] }
  0x29   : > { %4727 = vmatprep.subr.mxu1 %v5242_v1  ;;  %s4430_s12 = sld [smem:[#allocation2 + $0x11]] }
  0x2a   : > { %4728 = vmatpush3.msra.mxu1 %v502_v21 }
  0x2b   : > { %4729 = vmatprep.subr.mxu1 %v5242_v1 }
  0x2c   : > { %4730 = vmatpush3.msra.mxu1 %v501_v23 }
  0x2d   : > { %4731 = vmatprep.subr.mxu1 %v5242_v1 }
  0x2e   : > { %4732 = vmatpush3.msra.mxu1 %v500_v25 }
  0x93   : > { %v379_v7 = vpop.permute.xlu0 %378 }
  0x94   : > { %v382_v8 = vsel %vm381_vm1, %v374_v6, %v379_v7 }
  0x95   : > { %4715 = vmatmul.mubr.msk.f32.vlgmr.msra.gmra.mxu0 %vm387_vm2, %v382_v8 }
 0x155   : > { %v5367_v9 = vpop.f32.mrf.mxu0 }
 0x156   : > { %472 = vrot.lane.b32.xlu1 %v5367_v9, %s5245_s16  ;;  %476 = vrot.lane.b32.xlu0 %v5367_v9, %s5244_s15  ;;  %v462_v10 = vrot.slane %v5367_v9, 7 }
 0x157   : > { %v4716_v11 = vpop.f32.mrf.mxu0 }
 0x158   : > { %v466_v12 = vmul.f32 %v462_v10, %v5367_v9 }
 0x15a   : > { %468 = vrot.lane.b32.xlu1 %v466_v12, %s5245_s16 }
 0x1c8   : > { %v473_v17 = vpop.permute.xlu1 %472  ;;  %v477_v18 = vpop.permute.xlu0 %476 }
 0x1c9   : > { %v479_v20 = vmul.f32 %v477_v18, %v462_v10  ;;  %v475_v26 = vmul.f32 %v473_v17, %v462_v10 }
 0x1cb   : > { %481 = vrot.lane.b32.xlu0 %v479_v20, %s5245_s16 }
 0x1cc   : > { %v469_v22 = vpop.permute.xlu1 %468 }
 0x1cd   : > { %v471_v24 = vadd.f32 %v469_v22, %v466_v12  ;;  %v5250_v22 = vmov 0  }
 0x1cf   : > { %486 = vrot.lane.b32.xlu1 %v471_v24, %s5245_s16 }
 0x23d   : > { %v482_v27 = vpop.permute.xlu0 %481 }
 0x23e   : > { %v484_v28 = vsub.f32 %v475_v26, %v482_v27 }
 0x240   : > { %490 = vrot.lane.b32.xlu0 %v484_v28, %s5246_s17  ;;  %493 = vrot.lane.b32.xlu1 %v484_v28, %s5244_s15  ;;  %s4398_s17 = sld [smem:[#allocation2 + $0xf]] }
 0x241   : > { %v487_v29 = vpop.permute.xlu1 %486 }
 0x242   : > { %v496_v30 = vsel %vm381_vm1, %v471_v24, %v487_v29 }
 0x2b2   : > { %v491_v31 = vpop.permute.xlu0 %490  ;;  %v494_v32 = vpop.permute.xlu1 %493 }
 0x2b3   : > { %v497_v33 = vsel %vm387_vm2, %v496_v30, %v491_v31  ;;  %v701_v31 = vstv %s4296_s20  ;;  %s4397_s20 = sld [smem:[#allocation2 + $0xe]] }
 0x2b4   : > { %v499_v34 = vsel %vm498_vm3, %v497_v33, %v494_v32  ;;  %v733_v33 = vld [vmem:[%s6207_s4] sm:$0xff] }
 0x2b5   : > { %4734 = vmatmul.mubr.msk.f32.vlgmr.msra.gmra.mxu1 %vm508_vm4, %v499_v34  ;;  %4740 = vmatprep.mubr.msk.f32.mxu0 %vm381_vm1, %v733_v33 }
 0x375   : > { %v578_v35 = vpop.f32.mrf.mxu1 }
 0x376   : > { %v582_v36 = vmul.f32 %v578_v35, %v578_v35 }
 0x377   : > { %v4735_v37 = vpop.f32.mrf.mxu1 }
 0x378   : > { %584 = vrot.lane.b32.xlu0 %v582_v36, %s5247_s18 }
 0x3ea   : > { %v585_v38 = vpop.permute.xlu0 %584 }
 0x3eb   : > { %v587_v39 = vadd.f32 %v585_v38, %v582_v36 }
 0x3ed   : > { %vm588_vm5 = vcmp.gt.f32.partialorder %v587_v39, 0.0 }
 0x3ee   : > { %v589_v40 = vsel %vm588_vm5, %v587_v39, 1.0 }
 0x3ef   : > { %5190 = vrsqrt.f32 %v589_v40 }
 0x3fc   : > { %v5191_v41 = vpop.eup %5190 }
 0x3fd   : > { %594 = vrot.lane.b32.xlu1 %v5191_v41, %s5248_s19  ;;  %v591_v47 = vmul.f32 %v5191_v41, %v578_v35 }
 0x3ff   : > { %v592_v48 = vsel %vm588_vm5, %v591_v47, 1.0  ;;  %v708_v47 = vstv %s4297_s25  ;;  %s4311_s25 = sld [smem:[#allocation2 + $0x4]] }
 0x400   : > { %v606_v49 = vsel %vm605_vm6, 1.0, %v592_v48 }
 0x401   : > { %v609_v50 = vrot.slane %v606_v49, 7 }
 0x403   : > { %v611_v54 = vsel %vm464_vm7, 1.0, %v609_v50 }
 0x404   : > { %v616_v57 = vmul.f32 %v611_v54, %v606_v49 }
 0x46f   : > { %v595_v42 = vpop.permute.xlu1 %594 }
 0x470   : > { %v597_v43 = vmul.f32 %v595_v42, %v578_v35 }
 0x472   : > { %599 = vrot.lane.b32.xlu0 %v597_v43, %s5247_s18  ;;  %s4366_s18 = sld [smem:[#allocation2 + $0xd]] }
 0x4e4   : > { %v600_v51 = vpop.permute.xlu0 %599 }
 0x4e5   : > { %v602_v52 = vsel %vm588_vm5, %v600_v51, 0.0 }
 0x4e6   : > { %v607_v53 = vsel %vm605_vm6, 0.0, %v602_v52 }
 0x4e7   : > { %v613_v55 = vrot.slane %v607_v53, 7  ;;  %v620_v60 = vmul.f32 %v611_v54, %v607_v53 }
 0x4e9   : > { %v615_v56 = vsel %vm464_vm7, 0.0, %v613_v55 }
 0x4ea   : > { %v617_v58 = vmul.f32 %v615_v56, %v607_v53  ;;  %v619_v59 = vmul.f32 %v615_v56, %v606_v49 }
 0x4ec   : > { %v618_v61 = vsub.f32 %v616_v57, %v617_v58  ;;  %v621_v62 = vadd.f32 %v620_v60, %v619_v59 }
 0x4ee   : > { %v623_v63 = vrot.slane %v618_v61, 6  ;;  %v628_v0 = vrot.slane %v621_v62, 6 }
 0x4f0   : > { %v626_v2 = vsel %vm625_vm8, 1.0, %v623_v63  ;;  %v630_v3 = vsel %vm625_vm8, 0.0, %v628_v0 }
 0x4f1   : > { %v631_v4 = vmul.f32 %v626_v2, %v618_v61  ;;  %v632_v5 = vmul.f32 %v630_v3, %v621_v62  ;;  %v634_v6 = vmul.f32 %v630_v3, %v618_v61  ;;  %v635_v7 = vmul.f32 %v626_v2, %v621_v62  ;;  %v734_v61 = vld [vmem:[%s6207_s4 + $0x8] sm:$0xff]  ;;  %v825_v62 = vld [vmem:[%s6208_s5] sm:$0xff] }
 0x4f3   : > { %v633_v8 = vsub.f32 %v631_v4, %v632_v5  ;;  %v636_v10 = vadd.f32 %v635_v7, %v634_v6 }
 0x4f5   : > { %v638_v11 = vrot.slane %v633_v8, 4  ;;  %v643_v12 = vrot.slane %v636_v10, 4 }
 0x4f7   : > { %v641_v13 = vsel %vm640_vm9, 1.0, %v638_v11  ;;  %v645_v14 = vsel %vm640_vm9, 0.0, %v643_v12  ;;  %v826_v12 = vld [vmem:[%s6208_s5 + $0x8] sm:$0xff] }
 0x4f8   : > { %v646_v15 = vmul.f32 %v641_v13, %v633_v8  ;;  %v647_v16 = vmul.f32 %v645_v14, %v636_v10  ;;  %v649_v17 = vmul.f32 %v645_v14, %v633_v8  ;;  %v650_v18 = vmul.f32 %v641_v13, %v636_v10  ;;  %v4303_v13 = vld [vmem:[%s6207_s4 + $0x10] sm:$0xff]  ;;  %v4304_v14 = vld [vmem:[%s6207_s4 + $0x18] sm:$0xff] }
 0x4fa   : > { %v648_v19 = vsub.f32 %v646_v15, %v647_v16  ;;  %v651_v20 = vadd.f32 %v650_v18, %v649_v17  ;;  %v4307_v15 = vld [vmem:[%s6208_s5 + $0x10] sm:$0xff] }
 0x4fb   : > { %4761 = vmatprep.mubr.msk.f32.mxu1 %vm381_vm1, %v4307_v15 }
 0x4fc   : > { %676 = vperm.xlu1 %5187, %v648_v19   ;;  %v652_v21 = vsub.f32 0.0, %v651_v20 }
 0x4fe   : > { %681 = vperm.xlu0 %5188, %v652_v21  }
 0x500   : > { %5189 = vset.pattern.permute.xlu1 %v5250_v22 }
 0x501   : > { %655 = vperm.xlu1 %5189, %v648_v19  }
 0x505   : > { %661 = vperm.xlu1 %5189, %v652_v21  }
 0x577   : > { %v677_v23 = vpop.permute.xlu1 %676 }
 0x578   : > { %v679_v24 = vmul.f32 %v677_v23, %v5367_v9 }
 0x579   : > { %v682_v25 = vpop.permute.xlu0 %681 }
 0x57a   : > { %v684_v26 = vmul.f32 %v682_v25, %v5367_v9  ;;  %691 = vrot.lane.b32.xlu0 %v679_v24, %s5245_s16 }
 0x57c   : > { %686 = vrot.lane.b32.xlu1 %v684_v26, %s5245_s16  ;;  %v656_v27 = vpop.permute.xlu1 %655 }
 0x57d   : > { %v658_v28 = vmul.f32 %v656_v27, %v5367_v9 }
 0x57f   : > { %671 = vrot.lane.b32.xlu0 %v658_v28, %s5245_s16 }
 0x580   : > { %v662_v29 = vpop.permute.xlu1 %661 }
 0x581   : > { %v664_v30 = vmul.f32 %v662_v29, %v5367_v9  ;;  %v711_v9 = vstv %s4298_s21  ;;  %s4365_s21 = sld [smem:[#allocation2 + $0xc]] }
 0x583   : > { %666 = vrot.lane.b32.xlu1 %v664_v30, %s5245_s16  ;;  %s695_s16 = sld [smem:[#allocation2]] }
 0x589   : > { %v699_v44 = vstv %s695_s16 }
 0x5ec   : > { %v692_v32 = vpop.permute.xlu0 %691 }
 0x5ed   : > { %v694_v34 = vadd.f32 %v692_v32, %v684_v26 }
 0x5ee   : > { %v687_v35 = vpop.permute.xlu1 %686 }
 0x5ef   : > { %v719_v36 = vmul.f32 %v701_v31, %v694_v34  ;;  %v689_v37 = vsub.f32 %v679_v24, %v687_v35  ;;  %v712_v40 = vmul.f32 %v711_v9, %v694_v34 }
 0x5f1   : > { %v702_v38 = vmul.f32 %v701_v31, %v689_v37  ;;  %721 = vrot.lane.b32.xlu0 %v719_v36, %s5251_s24  ;;  %v727_v39 = vmul.f32 %v711_v9, %v689_v37  ;;  %v672_v41 = vpop.permute.xlu0 %671  ;;  %v4308_v37 = vld [vmem:[%s6208_s5 + $0x18] sm:$0xff] }
 0x5f2   : > { %v674_v43 = vadd.f32 %v672_v41, %v664_v30 }
 0x5f3   : > { %704 = vrot.lane.b32.xlu1 %v702_v38, %s5251_s24 }
 0x5f4   : > { %v718_v46 = vmul.f32 %v699_v44, %v674_v43  ;;  %v709_v53 = vmul.f32 %v708_v47, %v674_v43 }
 0x5f5   : > { %729 = vrot.lane.b32.xlu0 %v727_v39, %s5251_s24  ;;  %v667_v42 = vpop.permute.xlu1 %666 }
 0x5f6   : > { %v669_v45 = vsub.f32 %v658_v28, %v667_v42 }
 0x5f7   : > { %714 = vrot.lane.b32.xlu1 %v712_v40, %s5251_s24 }
 0x5f8   : > { %v725_v49 = vmul.f32 %v708_v47, %v669_v45  ;;  %v700_v51 = vmul.f32 %v699_v44, %v669_v45  ;;  %v4315_v47 = vld [vmem:[%s6207_s4 + $0x20] sm:$0xff] }
 0x663   : > { %v722_v48 = vpop.permute.xlu0 %721 }
 0x664   : > { %v724_v50 = vadd.f32 %v722_v48, %v718_v46 }
 0x665   : > { %v705_v52 = vpop.permute.xlu1 %704 }
 0x666   : > { %v707_v54 = vadd.f32 %v705_v52, %v700_v51  ;;  %v726_v55 = vadd.f32 %v725_v49, %v724_v50 }
 0x667   : > { %v730_v56 = vpop.permute.xlu0 %729 }
 0x668   : > { %v5428_v57 = vadd.f32 %v730_v56, %v726_v55  ;;  %v710_v58 = vsub.f32 %v707_v54, %v709_v53 }
 0x669   : > { %v715_v59 = vpop.permute.xlu1 %714 }
 0x66a   : > { %v5430_v60 = vsub.f32 %v710_v58, %v715_v59  ;;  %4736 = vmatprep.subr.mxu0 %v5428_v57 }
 0x66b   : > { %4737 = vmatpush3.msra.mxu0 %v5428_v57 }
 0x66c   : > { %4738 = vmatprep.subr.mxu0 %v5430_v60 }
 0x66d   : > { %4739 = vmatpush3.msra.mxu0 %v5430_v60 }
 0x66e   : > { %4741 = vmatmul.mubr.msk.f32.vlgmr.msra.gmra.mxu0 %vm381_vm1, %v734_v61 }
 0x66f   : > { %4747 = vmatprep.mubr.msk.f32.mxu0 %vm381_vm1, %v825_v62 }
 0x72e   : > { %v4742_v63 = vpop.f32.mrf.mxu0 }
 0x72f   : > { %v817_v2 = vmul.f32 %v4742_v63, %v4742_v63 }
 0x730   : > { %v807_v0 = vpop.f32.mrf.mxu0 }
 0x731   : > { %v816_v3 = vmul.f32 %v807_v0, %v807_v0 }
 0x733   : > { %v818_v4 = vadd.f32 %v817_v2, %v816_v3 }
 0x735   : > { %5192 = vlog2.f32 %v818_v4 }
 0x742   : > { %v5193_v5 = vpop.eup %5192 }
 0x743   : > { %v820_v6 = vmul.f32 0.6931472, %v5193_v5 }
 0x745   : > { %v821_v7 = vadd.f32 1.0, %v820_v6 }
 0x747   : > { %v823_v8 = vsub.f32 0.0, %v821_v7  ;;  %v822_v11 = vmul.f32 %v821_v7, %v807_v0 }
 0x749   : > { %v824_v10 = vmul.f32 %v4742_v63, %v823_v8 }
 0x74b   : > { %4743 = vmatprep.subr.mxu0 %v824_v10 }
 0x74c   : > { %4744 = vmatpush3.msra.mxu0 %v824_v10 }
 0x74d   : > { %4745 = vmatprep.subr.mxu0 %v822_v11 }
 0x74e   : > { %4746 = vmatpush3.msra.mxu0 %v822_v11 }
 0x74f   : > { %4748 = vmatmul.mubr.msk.f32.vlgmr.msra.gmra.mxu0 %vm381_vm1, %v826_v12  ;;  %4750 = vmatprep.subr.mxu0 %v5428_v57 }
 0x750   : > { %4751 = vmatpush3.msra.mxu0 %v5428_v57  ;;  %4754 = vmatprep.mubr.msk.f32.mxu0 %vm381_vm1, %v4303_v13 }
 0x751   : > { %4752 = vmatprep.subr.mxu0 %v5430_v60 }
 0x752   : > { %4753 = vmatpush3.msra.mxu0 %v5430_v60 }
 0x753   : > { %4755 = vmatmul.mubr.msk.f32.vlgmr.msra.gmra.mxu0 %vm381_vm1, %v4304_v14 }
 0x754   : > { %4768 = vmatprep.mubr.msk.f32.mxu0 %vm381_vm1, %v4315_v47 }
 0x80f   : > { %v4749_v16 = vpop.f32.mrf.mxu0 }
 0x810   : > { %v909_v18 = vmul.f32 %v4749_v16, %v5428_v57  ;;  %v911_v19 = vmul.f32 %v4749_v16, %v5430_v60 }
 0x811   : > { %v899_v17 = vpop.f32.mrf.mxu0 }
 0x812   : > { %v908_v20 = vmul.f32 %v899_v17, %v5430_v60  ;;  %v912_v21 = vmul.f32 %v899_v17, %v5428_v57 }
 0x813   : > { %v4756_v22 = vpop.f32.mrf.mxu0 }
 0x814   : > { %v913_v23 = vadd.f32 %v912_v21, %v911_v19  ;;  %v910_v24 = vsub.f32 %v908_v20, %v909_v18  ;;  %v1022_v26 = vmul.f32 %v4756_v22, %v4756_v22 }
 0x815   : > { %v1012_v25 = vpop.f32.mrf.mxu0 }
 0x816   : > { %v1021_v27 = vmul.f32 %v1012_v25, %v1012_v25  ;;  %v917_v28 = vsel %vm381_vm1, %v913_v23, 0.0  ;;  %v914_v29 = vsel %vm381_vm1, %v910_v24, 0.0  ;;  %v1149_v23 = vstv %s4312_s26 }
 0x817   : > { %918 = vadd.xlane.f32.xlu1 %v917_v28  ;;  %915 = vadd.xlane.f32.xlu0 %v914_v29 }
 0x818   : > { %v1023_v30 = vadd.f32 %v1022_v26, %v1021_v27  ;;  %v1152_v26 = vstv %s4313_s27 }
 0x81a   : > { %5194 = vlog2.f32 %v1023_v30 }
 0x827   : > { %v5195_v31 = vpop.eup %5194 }
 0x828   : > { %v1025_v32 = vmul.f32 0.6931472, %v5195_v31  ;;  %v1155_v31 = vstv %s4314_s28  ;;  %s4331_s28 = sld [smem:[#allocation2 + $0x8]] }
 0x82a   : > { %v1026_v33 = vadd.f32 1.0, %v1025_v32 }
 0x82c   : > { %v1028_v34 = vsub.f32 0.0, %v1026_v33  ;;  %v1027_v36 = vmul.f32 %v1026_v33, %v1012_v25 }
 0x82e   : > { %v1029_v35 = vmul.f32 %v4756_v22, %v1028_v34  ;;  %v1147_v22 = vstv %s4311_s25 }
 0x830   : > { %4757 = vmatprep.subr.mxu1 %v1029_v35 }
 0x831   : > { %4758 = vmatpush3.msra.mxu1 %v1029_v35 }
 0x832   : > { %4759 = vmatprep.subr.mxu1 %v1027_v36 }
 0x833   : > { %4760 = vmatpush3.msra.mxu1 %v1027_v36 }
 0x834   : > { %4762 = vmatmul.mubr.msk.f32.vlgmr.msra.gmra.mxu1 %vm381_vm1, %v4308_v37 }
 0x8a0   : > { %v919_v48 = vpop.xlane.xlu1 %918  ;;  %v916_v49 = vpop.xlane.xlu0 %915 }
 0x8a1   : > { %v921_v50 = vmul.f32 %v919_v48, %v919_v48  ;;  %v920_v51 = vmul.f32 %v916_v49, %v916_v49 }
 0x8a3   : > { %v922_v52 = vadd.f32 %v921_v50, %v920_v51 }
 0x8a5   : > { %vm923_vm10 = vcmp.gt.f32.partialorder %v922_v52, 0.0 }
 0x8a6   : > { %v924_v53 = vsel %vm923_vm10, %v922_v52, 1.0 }
 0x8a7   : > { %5196 = vrsqrt.f32 %v924_v53 }
 0x8b4   : > { %v5197_v62 = vpop.eup %5196 }
 0x8b5   : > { %v928_v63 = vmul.f32 %v5197_v62, %v919_v48  ;;  %v926_v2 = vmul.f32 %v5197_v62, %v916_v49 }
 0x8b7   : > { %v929_v0 = vsel %vm923_vm10, %v928_v63, 0.0  ;;  %v927_v5 = vsel %vm923_vm10, %v926_v2, 1.0 }
 0x8b8   : > { %v930_v3 = vsub.f32 0.0, %v929_v0  ;;  %v931_v11 = vmul.f32 %v927_v5, %v5430_v60  ;;  %v935_v12 = vmul.f32 %v927_v5, %v5428_v57 }
 0x8ba   : > { %v932_v6 = vmul.f32 %v930_v3, %v5428_v57  ;;  %v934_v7 = vmul.f32 %v930_v3, %v5430_v60 }
 0x8bc   : > { %v933_v16 = vsub.f32 %v931_v11, %v932_v6  ;;  %v936_v17 = vadd.f32 %v935_v12, %v934_v7  ;;  %v4327_v6 = vld [vmem:[%s6208_s5 + $0x30] sm:$0xff] }
 0x8be   : > { %v1148_v27 = vmul.f32 %v1147_v22, %v933_v16  ;;  %v1158_v28 = vmul.f32 %v1147_v22, %v936_v17  ;;  %v1153_v32 = vmul.f32 %v1152_v26, %v936_v17  ;;  %v1161_v33 = vmul.f32 %v1152_v26, %v933_v16 }
 0x8f4   : > { %v4763_v38 = vpop.f32.mrf.mxu1 }
 0x8f5   : > { %v1115_v39 = vmul.f32 %v4763_v38, %v5428_v57  ;;  %v1117_v42 = vmul.f32 %v4763_v38, %v5430_v60 }
 0x8f6   : > { %v1105_v9 = vpop.f32.mrf.mxu1 }
 0x8f7   : > { %v1114_v40 = vmul.f32 %v1105_v9, %v5430_v60  ;;  %v1118_v41 = vmul.f32 %v1105_v9, %v5428_v57 }
 0x8f9   : > { %v1116_v43 = vsub.f32 %v1114_v40, %v1115_v39  ;;  %v1119_v45 = vadd.f32 %v1118_v41, %v1117_v42  ;;  %v4316_v41 = vld [vmem:[%s6207_s4 + $0x28] sm:$0xff]  ;;  %v4323_v42 = vld [vmem:[%s6207_s4 + $0x30] sm:$0xff] }
 0x8fb   : > { %v1120_v44 = vsel %vm381_vm1, %v1116_v43, 0.0  ;;  %v1123_v46 = vsel %vm381_vm1, %v1119_v45, 0.0  ;;  %v4324_v43 = vld [vmem:[%s6207_s4 + $0x38] sm:$0xff] }
 0x8fc   : > { %1121 = vadd.xlane.f32.xlu0 %v1120_v44  ;;  %v4319_v44 = vld [vmem:[%s6208_s5 + $0x20] sm:$0xff] }
 0x8fd   : > { %4775 = vmatprep.mubr.msk.f32.mxu1 %vm381_vm1, %v4319_v44 }
 0x900   : > { %1124 = vadd.xlane.f32.xlu0 %v1123_v46 }
 0x985   : > { %v1122_v54 = vpop.xlane.xlu0 %1121 }
 0x986   : > { %v1126_v56 = vmul.f32 %v1122_v54, %v1122_v54 }
 0x989   : > { %v1125_v55 = vpop.xlane.xlu0 %1124 }
 0x98a   : > { %v1127_v58 = vmul.f32 %v1125_v55, %v1125_v55 }
 0x98c   : > { %v1128_v59 = vadd.f32 %v1127_v58, %v1126_v56 }
 0x98e   : > { %vm1129_vm11 = vcmp.gt.f32.partialorder %v1128_v59, 0.0 }
 0x98f   : > { %v1130_v61 = vsel %vm1129_vm11, %v1128_v59, 1.0 }
 0x990   : > { %5198 = vrsqrt.f32 %v1130_v61 }
 0x99d   : > { %v5199_v4 = vpop.eup %5198 }
 0x99e   : > { %v1132_v8 = vmul.f32 %v5199_v4, %v1122_v54  ;;  %v1134_v10 = vmul.f32 %v5199_v4, %v1125_v55  ;;  %v4320_v4 = vld [vmem:[%s6208_s5 + $0x28] sm:$0xff] }
 0x9a0   : > { %v1133_v13 = vsel %vm1129_vm11, %v1132_v8, 1.0  ;;  %v1135_v14 = vsel %vm1129_vm11, %v1134_v10, 0.0  ;;  %v4328_v8 = vld [vmem:[%s6208_s5 + $0x38] sm:$0xff] }
 0x9a1   : > { %v1136_v15 = vsub.f32 0.0, %v1135_v14  ;;  %v1137_v18 = vmul.f32 %v1133_v13, %v5430_v60  ;;  %v1141_v21 = vmul.f32 %v1133_v13, %v5428_v57 }
 0x9a3   : > { %v1138_v19 = vmul.f32 %v1136_v15, %v5428_v57  ;;  %v1140_v20 = vmul.f32 %v1136_v15, %v5430_v60 }
 0x9a5   : > { %v1139_v24 = vsub.f32 %v1137_v18, %v1138_v19  ;;  %v1142_v25 = vadd.f32 %v1141_v21, %v1140_v20 }
 0x9a7   : > { %v1150_v29 = vmul.f32 %v1149_v23, %v1139_v24  ;;  %v1159_v30 = vmul.f32 %v1149_v23, %v1142_v25  ;;  %v1163_v37 = vmul.f32 %v1155_v31, %v1139_v24  ;;  %v1156_v39 = vmul.f32 %v1155_v31, %v1142_v25 }
 0x9a9   : > { %v1160_v34 = vadd.f32 %v1159_v30, %v1158_v28  ;;  %v1151_v35 = vadd.f32 %v1150_v29, %v1148_v27  ;;  %v1599_v30 = vld [vmem:[%s6209_s6] sm:$0xff] }
 0x9ab   : > { %v1162_v36 = vadd.f32 %v1161_v33, %v1160_v34  ;;  %v1154_v38 = vsub.f32 %v1151_v35, %v1153_v32 }
 0x9ad   : > { %v1164_v9 = vadd.f32 %v1163_v37, %v1162_v36  ;;  %v1157_v40 = vsub.f32 %v1154_v38, %v1156_v39 }
 0x9af   : > { %4764 = vmatprep.subr.mxu0 %v1164_v9 }
 0x9b0   : > { %4765 = vmatpush3.msra.mxu0 %v1164_v9 }
 0x9b1   : > { %4766 = vmatprep.subr.mxu0 %v1157_v40 }
 0x9b2   : > { %4767 = vmatpush3.msra.mxu0 %v1157_v40 }
 0x9b3   : > { %4769 = vmatmul.mubr.msk.f32.vlgmr.msra.gmra.mxu0 %vm381_vm1, %v4316_v41  ;;  %4778 = vmatprep.subr.mxu0 %v1164_v9 }
 0x9b4   : > { %4779 = vmatpush3.msra.mxu0 %v1164_v9  ;;  %4782 = vmatprep.mubr.msk.f32.mxu0 %vm381_vm1, %v4323_v42 }
 0x9b5   : > { %4780 = vmatprep.subr.mxu0 %v1157_v40 }
 0x9b6   : > { %4781 = vmatpush3.msra.mxu0 %v1157_v40 }
 0x9b7   : > { %4783 = vmatmul.mubr.msk.f32.vlgmr.msra.gmra.mxu0 %vm381_vm1, %v4324_v43 }
 0x9b8   : > { %4796 = vmatprep.mubr.msk.f32.mxu0 %vm381_vm1, %v1599_v30 }
 0xa73   : > { %v4770_v45 = vpop.f32.mrf.mxu0 }
 0xa74   : > { %v1250_v47 = vmul.f32 %v4770_v45, %v4770_v45 }
 0xa75   : > { %v1240_v46 = vpop.f32.mrf.mxu0 }
 0xa76   : > { %v1249_v48 = vmul.f32 %v1240_v46, %v1240_v46 }
 0xa77   : > { %v4784_v49 = vpop.f32.mrf.mxu0 }
 0xa78   : > { %v1251_v50 = vadd.f32 %v1250_v47, %v1249_v48  ;;  %v1456_v52 = vmul.f32 %v4784_v49, %v4784_v49 }
 0xa79   : > { %v1446_v51 = vpop.f32.mrf.mxu0 }
 0xa7a   : > { %5200 = vlog2.f32 %v1251_v50  ;;  %v1455_v53 = vmul.f32 %v1446_v51, %v1446_v51 }
 0xa7c   : > { %v1457_v54 = vadd.f32 %v1456_v52, %v1455_v53 }
 0xa7e   : > { %5202 = vlog2.f32 %v1457_v54 }
 0xa87   : > { %v5201_v55 = vpop.eup %5200 }
 0xa88   : > { %v1253_v56 = vmul.f32 0.6931472, %v5201_v55 }
 0xa8a   : > { %v1254_v58 = vadd.f32 1.0, %v1253_v56 }
 0xa8b   : > { %v5203_v59 = vpop.eup %5202 }
 0xa8c   : > { %v1256_v61 = vsub.f32 0.0, %v1254_v58  ;;  %v1459_v62 = vmul.f32 0.6931472, %v5203_v59  ;;  %v1255_v2 = vmul.f32 %v1254_v58, %v1240_v46 }
 0xa8e   : > { %v1460_v63 = vadd.f32 1.0, %v1459_v62  ;;  %v1257_v0 = vmul.f32 %v4770_v45, %v1256_v61 }
 0xa90   : > { %v1462_v3 = vsub.f32 0.0, %v1460_v63  ;;  %4771 = vmatprep.subr.mxu1 %v1257_v0  ;;  %v1461_v7 = vmul.f32 %v1460_v63, %v1446_v51 }
 0xa91   : > { %4772 = vmatpush3.msra.mxu1 %v1257_v0 }
 0xa92   : > { %4773 = vmatprep.subr.mxu1 %v1255_v2  ;;  %v1463_v5 = vmul.f32 %v4784_v49, %v1462_v3  ;;  %v1581_v3 = vstv %s4331_s28 }
 0xa93   : > { %4774 = vmatpush3.msra.mxu1 %v1255_v2 }
 0xa94   : > { %4776 = vmatmul.mubr.msk.f32.vlgmr.msra.gmra.mxu1 %vm381_vm1, %v4320_v4  ;;  %4785 = vmatprep.subr.mxu1 %v1463_v5  ;;  %v1583_v4 = vstv %s4332_s29 }
 0xa95   : > { %4786 = vmatpush3.msra.mxu1 %v1463_v5  ;;  %4789 = vmatprep.mubr.msk.f32.mxu1 %vm381_vm1, %v4327_v6 }
 0xa96   : > { %4787 = vmatprep.subr.mxu1 %v1461_v7 }
 0xa97   : > { %4788 = vmatpush3.msra.mxu1 %v1461_v7  ;;  %v1586_v7 = vstv %s4333_s30 }
 0xa98   : > { %4790 = vmatmul.mubr.msk.f32.vlgmr.msra.gmra.mxu1 %vm381_vm1, %v4328_v8  ;;  %4824 = vmatprep.subr.mxu1 %v5242_v1 }
 0xa99   : > { %4832 = vmatprep.mubr.msk.f32.mxu1 %vm5243_vm0, %v5242_v1 }
 0xb54   : > { %v4777_v10 = vpop.f32.mrf.mxu1 }
 0xb55   : > { %v1343_v12 = vmul.f32 %v4777_v10, %v5428_v57  ;;  %v1345_v13 = vmul.f32 %v4777_v10, %v5430_v60 }
 0xb56   : > { %v1333_v11 = vpop.f32.mrf.mxu1 }
 0xb57   : > { %v1342_v14 = vmul.f32 %v1333_v11, %v5430_v60  ;;  %v1346_v15 = vmul.f32 %v1333_v11, %v5428_v57 }
 0xb58   : > { %v4791_v16 = vpop.f32.mrf.mxu1 }
 0xb59   : > { %v1347_v17 = vadd.f32 %v1346_v15, %v1345_v13  ;;  %v1344_v18 = vsub.f32 %v1342_v14, %v1343_v12  ;;  %v1549_v19 = vmul.f32 %v4791_v16, %v5428_v57  ;;  %v1551_v20 = vmul.f32 %v4791_v16, %v5430_v60 }
 0xb5a   : > { %v1539_v21 = vpop.f32.mrf.mxu1  ;;  %v1589_v13 = vstv %s4334_s11 }
 0xb5b   : > { %v1548_v22 = vmul.f32 %v1539_v21, %v5430_v60  ;;  %v1552_v23 = vmul.f32 %v1539_v21, %v5428_v57  ;;  %v1351_v24 = vsel %vm381_vm1, %v1347_v17, 0.0  ;;  %v1348_v25 = vsel %vm381_vm1, %v1344_v18, 0.0 }
 0xb5c   : > { %1352 = vadd.xlane.f32.xlu0 %v1351_v24  ;;  %1349 = vadd.xlane.f32.xlu1 %v1348_v25  ;;  %v1602_v24 = vld [vmem:[%s6209_s6 + $0x18] sm:$0xff] }
 0xb5d   : > { %v1553_v26 = vadd.f32 %v1552_v23, %v1551_v20  ;;  %v1550_v27 = vsub.f32 %v1548_v22, %v1549_v19  ;;  %v1600_v22 = vld [vmem:[%s6209_s6 + $0x8] sm:$0xff]  ;;  %v1601_v23 = vld [vmem:[%s6209_s6 + $0x10] sm:$0xff] }
 0xb5f   : > { %v1557_v28 = vsel %vm381_vm1, %v1553_v26, 0.0  ;;  %v1554_v29 = vsel %vm381_vm1, %v1550_v27, 0.0 }
 0xb60   : > { %1558 = vadd.xlane.f32.xlu0 %v1557_v28  ;;  %1555 = vadd.xlane.f32.xlu1 %v1554_v29 }
 0xbe5   : > { %v1353_v31 = vpop.xlane.xlu0 %1352  ;;  %v1350_v32 = vpop.xlane.xlu1 %1349 }
 0xbe6   : > { %v1355_v33 = vmul.f32 %v1353_v31, %v1353_v31  ;;  %v1354_v34 = vmul.f32 %v1350_v32, %v1350_v32 }
 0xbe8   : > { %v1356_v35 = vadd.f32 %v1355_v33, %v1354_v34 }
 0xbe9   : > { %v1559_v36 = vpop.xlane.xlu0 %1558  ;;  %v1556_v37 = vpop.xlane.xlu1 %1555 }
 0xbea   : > { %vm1357_vm12 = vcmp.gt.f32.partialorder %v1356_v35, 0.0  ;;  %v1561_v38 = vmul.f32 %v1559_v36, %v1559_v36  ;;  %v1560_v9 = vmul.f32 %v1556_v37, %v1556_v37 }
 0xbeb   : > { %v1358_v39 = vsel %vm1357_vm12, %v1356_v35, 1.0 }
 0xbec   : > { %5204 = vrsqrt.f32 %v1358_v39  ;;  %v1562_v40 = vadd.f32 %v1561_v38, %v1560_v9 }
 0xbee   : > { %vm1563_vm13 = vcmp.gt.f32.partialorder %v1562_v40, 0.0 }
 0xbef   : > { %v1564_v41 = vsel %vm1563_vm13, %v1562_v40, 1.0 }
 0xbf0   : > { %5206 = vrsqrt.f32 %v1564_v41 }
 0xbf9   : > { %v5205_v42 = vpop.eup %5204 }
 0xbfa   : > { %v1360_v43 = vmul.f32 %v5205_v42, %v1350_v32  ;;  %v1362_v44 = vmul.f32 %v5205_v42, %v1353_v31 }
 0xbfc   : > { %v1363_v45 = vsel %vm1357_vm12, %v1362_v44, 0.0  ;;  %v1361_v47 = vsel %vm1357_vm12, %v1360_v43, 1.0 }
 0xbfd   : > { %v5207_v46 = vpop.eup %5206  ;;  %v1364_v48 = vsub.f32 0.0, %v1363_v45  ;;  %v1365_v53 = vmul.f32 %v1361_v47, %v5430_v60  ;;  %v1369_v54 = vmul.f32 %v1361_v47, %v5428_v57 }
 0xbfe   : > { %v1566_v49 = vmul.f32 %v5207_v46, %v1556_v37  ;;  %v1568_v50 = vmul.f32 %v5207_v46, %v1559_v36 }
 0xbff   : > { %v1366_v51 = vmul.f32 %v1364_v48, %v5428_v57  ;;  %v1368_v52 = vmul.f32 %v1364_v48, %v5430_v60 }
 0xc00   : > { %v1567_v55 = vsel %vm1563_vm13, %v1566_v49, 1.0  ;;  %v1569_v56 = vsel %vm1563_vm13, %v1568_v50, 0.0  ;;  %v4342_v50 = vld [vmem:[%s6210_s7 + $0x38] sm:$0xff] }
 0xc01   : > { %v1570_v58 = vsub.f32 0.0, %v1569_v56  ;;  %v1367_v59 = vsub.f32 %v1365_v53, %v1366_v51  ;;  %v1370_v61 = vadd.f32 %v1369_v54, %v1368_v52  ;;  %v1571_v62 = vmul.f32 %v1567_v55, %v5430_v60  ;;  %v4341_v51 = vld [vmem:[%s6210_s7 + $0x30] sm:$0xff]  ;;  %v4348_v52 = vld [vmem:[%s6210_s7 + $0x58] sm:$0xff]  ;;  %v4346_v56 = vld [vmem:[%s6210_s7 + $0x48] sm:$0xff] }
 0xc02   : > { %v1575_v2 = vmul.f32 %v1567_v55, %v5428_v57  ;;  %4825 = vmatpush3.msra.mxu1 %v4348_v52  ;;  %v4347_v53 = vld [vmem:[%s6210_s7 + $0x50] sm:$0xff]  ;;  %v4340_v55 = vld [vmem:[%s6210_s7 + $0x28] sm:$0xff] }
 0xc03   : > { %v1572_v63 = vmul.f32 %v1570_v58, %v5428_v57  ;;  %v1574_v0 = vmul.f32 %v1570_v58, %v5430_v60  ;;  %v1582_v8 = vmul.f32 %v1581_v3, %v1367_v59  ;;  %v1592_v10 = vmul.f32 %v1581_v3, %v1370_v61  ;;  %4826 = vmatprep.subr.mxu1 %v5242_v1 }
 0xc04   : > { %v1595_v15 = vmul.f32 %v1586_v7, %v1367_v59  ;;  %v1587_v17 = vmul.f32 %v1586_v7, %v1370_v61  ;;  %4827 = vmatpush3.msra.mxu1 %v4347_v53  ;;  %v4339_v59 = vld [vmem:[%s6210_s7 + $0x20] sm:$0xff]  ;;  %v1754_v7 = vld [vmem:[%s6210_s7 + $0x18] sm:$0xff] }
 0xc05   : > { %v1573_v5 = vsub.f32 %v1571_v62, %v1572_v63  ;;  %v1576_v6 = vadd.f32 %v1575_v2, %v1574_v0  ;;  %4828 = vmatprep.subr.mxu1 %v5242_v1  ;;  %v4345_v2 = vld [vmem:[%s6210_s7 + $0x40] sm:$0xff] }
 0xc06   : > { %4829 = vmatpush3.msra.mxu1 %v4346_v56 }
 0xc07   : > { %v1584_v11 = vmul.f32 %v1583_v4, %v1573_v5  ;;  %v1593_v12 = vmul.f32 %v1583_v4, %v1576_v6  ;;  %v1597_v19 = vmul.f32 %v1589_v13, %v1573_v5  ;;  %v1590_v21 = vmul.f32 %v1589_v13, %v1576_v6  ;;  %4830 = vmatprep.subr.mxu1 %v5242_v1  ;;  %v1752_v13 = vld [vmem:[%s6210_s7 + $0x8] sm:$0xff] }
 0xc08   : > { %4831 = vmatpush3.msra.mxu1 %v4345_v2  ;;  %v4387_v2 = vld [vmem:[%s6210_s7 + $0x148] sm:$0xff] }
 0xc09   : > { %v1594_v14 = vadd.f32 %v1593_v12, %v1592_v10  ;;  %v1585_v16 = vadd.f32 %v1584_v11, %v1582_v8  ;;  %4846 = vmatprep.subr.mxu1 %v5242_v1  ;;  %v1753_v11 = vld [vmem:[%s6210_s7 + $0x10] sm:$0xff]  ;;  %v4353_v12 = vld [vmem:[%s6210_s7 + $0x78] sm:$0xff] }
 0xc0b   : > { %v1596_v18 = vadd.f32 %v1595_v15, %v1594_v14  ;;  %v1588_v20 = vsub.f32 %v1585_v16, %v1587_v17  ;;  %v4352_v14 = vld [vmem:[%s6210_s7 + $0x70] sm:$0xff]  ;;  %v1751_v15 = vld [vmem:[%s6210_s7] sm:$0xff]  ;;  %v4351_v16 = vld [vmem:[%s6210_s7 + $0x68] sm:$0xff] }
 0xc0d   : > { %v1598_v60 = vadd.f32 %v1597_v19, %v1596_v18  ;;  %v1591_v57 = vsub.f32 %v1588_v20, %v1590_v21  ;;  %v4357_v18 = vld [vmem:[%s6210_s7 + $0x98] sm:$0xff]  ;;  %v4350_v19 = vld [vmem:[%s6210_s7 + $0x60] sm:$0xff]  ;;  %v4356_v20 = vld [vmem:[%s6210_s7 + $0x90] sm:$0xff] }
 0xc0e   : > { %v4354_v21 = vld [vmem:[%s6210_s7 + $0x80] sm:$0xff] }
 0xc0f   : > { %4792 = vmatprep.subr.mxu0 %v1598_v60 }
 0xc10   : > { %4793 = vmatpush3.msra.mxu0 %v1598_v60  ;;  %v4355_v60 = vld [vmem:[%s6210_s7 + $0x88] sm:$0xff] }
 0xc11   : > { %4794 = vmatprep.subr.mxu0 %v1591_v57 }
 0xc12   : > { %4795 = vmatpush3.msra.mxu0 %v1591_v57  ;;  %v4363_v57 = vld [vmem:[%s6210_s7 + $0xb8] sm:$0xff] }
 0xc13   : > { %4797 = vmatmul.mubr.msk.f32.vlgmr.msra.gmra.mxu0 %vm381_vm1, %v1600_v22  ;;  %4802 = vmatprep.subr.mxu0 %v5242_v1  ;;  %v4362_v22 = vld [vmem:[%s6210_s7 + $0xb0] sm:$0xff] }
 0xc14   : > { %4799 = vmatprep.mubr.msk.f32.mxu0 %vm381_vm1, %v1601_v23  ;;  %4803 = vmatpush3.msra.mxu0 %v4342_v50  ;;  %v4361_v23 = vld [vmem:[%s6210_s7 + $0xa8] sm:$0xff] }
 0xc15   : > { %4804 = vmatprep.subr.mxu0 %v5242_v1 }
 0xc16   : > { %4805 = vmatpush3.msra.mxu0 %v4341_v51  ;;  %v2211_v51 = vstv %s4365_s21  ;;  %s5153_s21 = smul.u32 24, %s6216_s14 }
 0xc17   : > { %4800 = vmatmul.mubr.msk.f32.gmra.mxu0 %vm381_vm1, %v1602_v24  ;;  %4806 = vmatprep.subr.mxu0 %v5242_v1  ;;  %v4360_v24 = vld [vmem:[%s6210_s7 + $0xa0] sm:$0xff] }
 0xc18   : > { %4810 = vmatprep.mubr.msk.f32.mxu0 %vm5243_vm0, %v5242_v1  ;;  %4807 = vmatpush3.msra.mxu0 %v4340_v55  ;;  %v4380_v55 = vld [vmem:[%s6210_s7 + $0x118] sm:$0xff]  ;;  %s373_s23 = scalar_lea.vmem %s6213_s10, %s5153_s21 }
 0xc19   : > { %4808 = vmatprep.subr.mxu0 %v5242_v1 }
 0xc1a   : > { %4809 = vmatpush3.msra.mxu0 %v4339_v59  ;;  %v4379_v59 = vld [vmem:[%s6210_s7 + $0x110] sm:$0xff] }
 0xc1b   : > { %4813 = vmatprep.subr.mxu0 %v5242_v1 }
 0xcd3   : > { %v4798_v25 = vpop.f32.mrf.mxu0 }
 0xcd4   : > { %v1701_v28 = vmul.f32 %v4798_v25, %v4798_v25  ;;  %v4374_v25 = vld [vmem:[%s6210_s7 + $0xf8] sm:$0xff] }
 0xcd5   : > { %v1681_v26 = vpop.f32.mrf.mxu0 }
 0xcd6   : > { %v1700_v31 = vmul.f32 %v1681_v26, %v1681_v26  ;;  %v4373_v26 = vld [vmem:[%s6210_s7 + $0xf0] sm:$0xff] }
 0xcd7   : > { %v4801_v27 = vpop.f32.mrf.mxu0 }
 0xcd8   : > { %v1703_v29 = vmul.f32 %v4801_v27, %v4801_v27  ;;  %v4370_v27 = vld [vmem:[%s6210_s7 + $0xd8] sm:$0xff] }
 0xcd9   : > { %v1691_v30 = vpop.f32.mrf.mxu0 }
 0xcda   : > { %v1705_v32 = vadd.f32 %v1703_v29, %v1701_v28  ;;  %v1702_v33 = vmul.f32 %v1691_v30, %v1691_v30  ;;  %v4369_v28 = vld [vmem:[%s6210_s7 + $0xd0] sm:$0xff]  ;;  %v4372_v29 = vld [vmem:[%s6210_s7 + $0xe8] sm:$0xff] }
 0xcdb   : > { %v4368_v30 = vld [vmem:[%s6210_s7 + $0xc8] sm:$0xff] }
 0xcdc   : > { %5208 = vrsqrt.f32 %v1705_v32  ;;  %v1704_v34 = vadd.f32 %v1702_v33, %v1700_v31  ;;  %vm1715_vm14 = vcmp.eq.f32.partialorder %v1705_v32, inf  ;;  %v1718_v38 = vand.u32 2147483648, %v1705_v32  ;;  %v4371_v31 = vld [vmem:[%s6210_s7 + $0xe0] sm:$0xff] }
 0xcdd   : > { %vm1717_vm15 = vcmp.eq.f32.partialorder %v1705_v32, 0.0 }
 0xcde   : > { %5210 = vrsqrt.f32 %v1704_v34  ;;  %vm1708_vm4 = vcmp.eq.f32.partialorder %v1704_v34, inf  ;;  %v1711_v40 = vand.u32 2147483648, %v1704_v34  ;;  %vm1710_vm5 = vcmp.eq.f32.partialorder %v1704_v34, 0.0 }
 0xce9   : > { %v5209_v35 = vpop.eup %5208 }
 0xcea   : > { %v1714_v36 = vmul.f32 %v5209_v35, %v1705_v32 }
 0xceb   : > { %v5211_v37 = vpop.eup %5210 }
 0xcec   : > { %v1707_v9 = vmul.f32 %v5211_v37, %v1704_v34  ;;  %v1716_v39 = vsel %vm1715_vm14, %v1705_v32, %v1714_v36 }
 0xced   : > { %v1719_v41 = vsel %vm1717_vm15, %v1718_v38, %v1716_v39 }
 0xcee   : > { %v1709_v42 = vsel %vm1708_vm4, %v1704_v34, %v1707_v9  ;;  %v1721_v45 = vsel %vm381_vm1, %v1719_v41, -inf }
 0xcef   : > { %v1712_v43 = vsel %vm1710_vm5, %v1711_v40, %v1709_v42 }
 0xcf0   : > { %v1720_v44 = vsel %vm381_vm1, %v1712_v43, -inf }
 0xcf1   : > { %v1722_v46 = vmax.f32 %v1720_v44, %v1721_v45 }
 0xcf3   : > { %1723 = vmax.xlane.f32.xlu1 %v1722_v46  ;;  %v2215_v46 = vstv %s4366_s18  ;;  %s4461_s18 = sld [smem:[#allocation2 + $0x12]] }
 0xd7c   : > { %v1724_v47 = vpop.xlane.xlu1 %1723 }
 0xd7d   : > { %v1725_v48 = vrot.slane %v1724_v47, 4 }
 0xd7f   : > { %v1726_v49 = vmax.f32 %v1724_v47, %v1725_v48 }
 0xd81   : > { %v1727_v54 = vrot.slane %v1726_v49, 2 }
 0xd83   : > { %v1728_v58 = vmax.f32 %v1726_v49, %v1727_v54 }
 0xd85   : > { %v1729_v61 = vrot.slane %v1728_v58, 1 }
 0xd87   : > { %v1730_v62 = vmax.f32 %v1728_v58, %v1729_v61  ;;  %v4389_v61 = vld [vmem:[%s6210_s7 + $0x158] sm:$0xff] }
 0xd89   : > { %5154 = vpush %v1730_v62  ;;  %v4378_v62 = vld [vmem:[%s6210_s7 + $0x108] sm:$0xff] }
 0xdba   : > { %s5155_s19 = spop %5154 }
 0xdbb   : > { %v1732_v63 = vstv %s5155_s19  ;;  %s4429_s19 = sld [smem:[#allocation2 + $0x10]] }
 0xdbc   : > { %5212 = vrcp.f32 %v1732_v63  ;;  %v4388_v63 = vld [vmem:[%s6210_s7 + $0x150] sm:$0xff] }
 0xdc9   : > { %v5213_v0 = vpop.eup %5212 }
 0xdca   : > { %5156 = vpush %v5213_v0  ;;  %v4377_v0 = vld [vmem:[%s6210_s7 + $0x100] sm:$0xff] }
 0xdfb   : > { %s5157_s22 = spop %5156 }
 0xdfc   : > { %v1735_v3 = vstv %s5157_s22 }
 0xdfd   : > { %v5608_v4 = vmul.f32 %v1735_v3, %v1719_v41  ;;  %v5612_v5 = vmul.f32 %v1735_v3, %v1712_v43  ;;  %v4367_v43 = vld [vmem:[%s6210_s7 + $0xc0] sm:$0xff] }
 0xdff   : > { %1739 = vrot.lane.b32.xlu0 %v5608_v4, %s5244_s15 }
 0xe71   : > { %v1740_v6 = vpop.permute.xlu0 %1739 }
 0xe72   : > { %v1742_v8 = vsel %vm381_vm1, %v5612_v5, %v1740_v6  ;;  %v4386_v6 = vld [vmem:[%s6210_s7 + $0x140] sm:$0xff] }
 0xe73   : > { %v1747_v10 = vrot.slane %v1742_v8, 1  ;;  %4811 = vmatmul.mubr.msk.f32.vlgmr.msra.gmra.mxu0 %vm387_vm2, %v1742_v8  ;;  %v1744_v17 = vrot.slane %v1742_v8, 7 }
 0xe74   : > { %4814 = vmatpush3.msra.mxu0 %v1754_v7  ;;  %4821 = vmatprep.mubr.msk.f32.mxu0 %vm5243_vm0, %v5242_v1  ;;  %v4385_v7 = vld [vmem:[%s6210_s7 + $0x138] sm:$0xff] }
 0xe75   : > { %4815 = vmatprep.subr.mxu0 %v5242_v1  ;;  %4833 = vmatmul.mubr.msk.f32.vlgmr.msra.gmra.mxu1 %vm387_vm2, %v1747_v10 }
 0xe76   : > { %4816 = vmatpush3.msra.mxu0 %v1753_v11  ;;  %4847 = vmatpush3.msra.mxu1 %v4353_v12  ;;  %v4383_v11 = vld [vmem:[%s6210_s7 + $0x128] sm:$0xff]  ;;  %v4394_v12 = vld [vmem:[%s6210_s7 + $0x170] sm:$0xff] }
 0xe77   : > { %4817 = vmatprep.subr.mxu0 %v5242_v1  ;;  %4848 = vmatprep.subr.mxu1 %v5242_v1 }
 0xe78   : > { %4818 = vmatpush3.msra.mxu0 %v1752_v13  ;;  %4849 = vmatpush3.msra.mxu1 %v4352_v14  ;;  %v4382_v13 = vld [vmem:[%s6210_s7 + $0x120] sm:$0xff]  ;;  %v4393_v14 = vld [vmem:[%s6210_s7 + $0x168] sm:$0xff] }
 0xe79   : > { %4819 = vmatprep.subr.mxu0 %v5242_v1  ;;  %4850 = vmatprep.subr.mxu1 %v5242_v1 }
 0xe7a   : > { %4820 = vmatpush3.msra.mxu0 %v1751_v15  ;;  %4851 = vmatpush3.msra.mxu1 %v4351_v16  ;;  %v4392_v15 = vld [vmem:[%s6210_s7 + $0x160] sm:$0xff]  ;;  %v4406_v16 = vld [vmem:[%s6210_s7 + $0x1b8] sm:$0xff] }
 0xe7b   : > { %4822 = vmatmul.mubr.msk.f32.vlgmr.msra.gmra.mxu0 %vm387_vm2, %v1744_v17  ;;  %4835 = vmatprep.subr.mxu0 %v5242_v1 }
 0xe7c   : > { %4852 = vmatprep.subr.mxu1 %v5242_v1  ;;  %4836 = vmatpush3.msra.mxu0 %v4357_v18  ;;  %v4402_v18 = vld [vmem:[%s6210_s7 + $0x198] sm:$0xff] }
 0xe7d   : > { %4853 = vmatpush3.msra.mxu1 %v4350_v19  ;;  %4854 = vmatprep.mubr.msk.f32.mxu1 %vm5243_vm0, %v5242_v1  ;;  %v4401_v19 = vld [vmem:[%s6210_s7 + $0x190] sm:$0xff] }
 0xe7e   : > { %4837 = vmatprep.subr.mxu0 %v5242_v1  ;;  %4855 = vmatmul.mubr.msk.f32.vlgmr.msra.gmra.mxu1 %vm387_vm2, %v1744_v17  ;;  %v4405_v17 = vld [vmem:[%s6210_s7 + $0x1b0] sm:$0xff] }
 0xe7f   : > { %4838 = vmatpush3.msra.mxu0 %v4356_v20  ;;  %4843 = vmatprep.mubr.msk.f32.mxu0 %vm5243_vm0, %v5242_v1  ;;  %v4404_v20 = vld [vmem:[%s6210_s7 + $0x1a8] sm:$0xff] }
 0xe80   : > { %4839 = vmatprep.subr.mxu0 %v5242_v1  ;;  %4868 = vmatprep.subr.mxu1 %v5242_v1 }
 0xe81   : > { %4840 = vmatpush3.msra.mxu0 %v4355_v60  ;;  %4876 = vmatprep.mubr.msk.f32.mxu1 %vm5243_vm0, %v5242_v1  ;;  %v4400_v60 = vld [vmem:[%s6210_s7 + $0x188] sm:$0xff] }
 0xe82   : > { %4841 = vmatprep.subr.mxu0 %v5242_v1  ;;  %4869 = vmatpush3.msra.mxu1 %v4374_v25 }
 0xe83   : > { %4842 = vmatpush3.msra.mxu0 %v4354_v21  ;;  %4870 = vmatprep.subr.mxu1 %v5242_v1  ;;  %v4403_v21 = vld [vmem:[%s6210_s7 + $0x1a0] sm:$0xff] }
 0xe84   : > { %4844 = vmatmul.mubr.msk.f32.vlgmr.msra.gmra.mxu0 %vm387_vm2, %v1742_v8  ;;  %4857 = vmatprep.subr.mxu0 %v5242_v1  ;;  %v4384_v8 = vld [vmem:[%s6210_s7 + $0x130] sm:$0xff] }
 0xe85   : > { %4858 = vmatpush3.msra.mxu0 %v4363_v57  ;;  %4865 = vmatprep.mubr.msk.f32.mxu0 %vm5243_vm0, %v5242_v1 }
 0xe86   : > { %4859 = vmatprep.subr.mxu0 %v5242_v1  ;;  %4871 = vmatpush3.msra.mxu1 %v4373_v26 }
 0xe87   : > { %4860 = vmatpush3.msra.mxu0 %v4362_v22  ;;  %4872 = vmatprep.subr.mxu1 %v5242_v1 }
 0xe88   : > { %4861 = vmatprep.subr.mxu0 %v5242_v1  ;;  %4873 = vmatpush3.msra.mxu1 %v4372_v29 }
 0xe89   : > { %4862 = vmatpush3.msra.mxu0 %v4361_v23  ;;  %4874 = vmatprep.subr.mxu1 %v5242_v1 }
 0xe8a   : > { %4863 = vmatprep.subr.mxu0 %v5242_v1  ;;  %4875 = vmatpush3.msra.mxu1 %v4371_v31  ;;  %v4399_v31 = vld [vmem:[%s6210_s7 + $0x180] sm:$0xff] }
 0xe8b   : > { %4864 = vmatpush3.msra.mxu0 %v4360_v24  ;;  %4890 = vmatprep.subr.mxu1 %v5242_v1 }
 0xe8c   : > { %4866 = vmatmul.mubr.msk.f32.vlgmr.msra.gmra.mxu0 %vm387_vm2, %v1747_v10  ;;  %4879 = vmatprep.subr.mxu0 %v5242_v1  ;;  %v4395_v10 = vld [vmem:[%s6210_s7 + $0x178] sm:$0xff] }
 0xe8d   : > { %4887 = vmatprep.mubr.msk.f32.mxu0 %vm5243_vm0, %v5242_v1  ;;  %4880 = vmatpush3.msra.mxu0 %v4370_v27 }
 0xe8e   : > { %4881 = vmatprep.subr.mxu0 %v5242_v1 }
 0xe8f   : > { %4882 = vmatpush3.msra.mxu0 %v4369_v28 }
 0xe90   : > { %4883 = vmatprep.subr.mxu0 %v5242_v1 }
 0xe91   : > { %4884 = vmatpush3.msra.mxu0 %v4368_v30 }
 0xe92   : > { %4885 = vmatprep.subr.mxu0 %v5242_v1 }
 0xe93   : > { %4886 = vmatpush3.msra.mxu0 %v4367_v43 }
 0xe94   : > { %4901 = vmatprep.subr.mxu0 %v5242_v1 }
 0xf33   : > { %v1828_v32 = vpop.f32.mrf.mxu0 }
 0xf35   : > { %v4812_v33 = vpop.f32.mrf.mxu0  ;;  %v1979_v34 = vpop.f32.mrf.mxu1 }
 0xf37   : > { %v4834_v35 = vpop.f32.mrf.mxu1 }
 0xf3b   : > { %v1901_v36 = vpop.f32.mrf.mxu0 }
 0xf3c   : > { %v1902_v37 = vadd.f32 %v1901_v36, %v1828_v32 }
 0xf3d   : > { %v4823_v38 = vpop.f32.mrf.mxu0 }
 0xf3e   : > { %v1983_v9 = vadd.f32 %v1979_v34, %v1902_v37  ;;  %v2130_v39 = vpop.f32.mrf.mxu1  ;;  %v2697_v38 = vstv %s4398_s17  ;;  %s4462_s17 = sld [smem:[#allocation2 + $0x13]] }
 0xf40   : > { %v4856_v40 = vpop.f32.mrf.mxu1  ;;  %v2212_v52 = vadd.f32 %v2211_v51, %v1983_v9  ;;  %v4409_v51 = vld [vmem:[%s6210_s7 + $0x1c0] sm:$0xff] }
 0xf42   : > { %v2213_v53 = vmax.f32 %v2212_v52, 0.0  ;;  %v4419_v52 = vld [vmem:[%s6210_s7 + $0x208] sm:$0xff] }
 0xf44   : > { %v2060_v41 = vpop.f32.mrf.mxu0 }
 0xf45   : > { %v2131_v44 = vadd.f32 %v2130_v39, %v2060_v41 }
 0xf46   : > { %v4845_v42 = vpop.f32.mrf.mxu0 }
 0xf47   : > { %v2692_v42 = vstv %s4397_s20 }
 0xf4c   : > { %v2205_v45 = vpop.f32.mrf.mxu0 }
 0xf4d   : > { %v2209_v47 = vadd.f32 %v2205_v45, %v2131_v44 }
 0xf4e   : > { %v4867_v48 = vpop.f32.mrf.mxu0 }
 0xf4f   : > { %v2216_v49 = vadd.f32 %v2215_v46, %v2209_v47  ;;  %v4421_v48 = vld [vmem:[%s6210_s7 + $0x218] sm:$0xff] }
 0xf51   : > { %v2217_v50 = vmax.f32 %v2216_v49, 0.0  ;;  %v4410_v49 = vld [vmem:[%s6210_s7 + $0x1c8] sm:$0xff] }
 0xf53   : > { %2219 = vrot.lane.b32.xlu1 %v2217_v50, %s5244_s15  ;;  %v4420_v50 = vld [vmem:[%s6210_s7 + $0x210] sm:$0xff] }
 0xfc5   : > { %v2220_v54 = vpop.permute.xlu1 %2219 }
 0xfc6   : > { %v2222_v56 = vsel %vm381_vm1, %v2213_v53, %v2220_v54  ;;  %v4418_v54 = vld [vmem:[%s6210_s7 + $0x200] sm:$0xff] }
 0xfc7   : > { %v2224_v58 = vrot.slane %v2222_v56, 7  ;;  %4877 = vmatmul.mubr.msk.f32.vlgmr.msra.gmra.mxu1 %vm387_vm2, %v2222_v56  ;;  %v2227_v3 = vrot.slane %v2222_v56, 1 }
 0xfc8   : > { %4891 = vmatpush3.msra.mxu1 %v4380_v55  ;;  %4898 = vmatprep.mubr.msk.f32.mxu1 %vm5243_vm0, %v5242_v1  ;;  %v4417_v55 = vld [vmem:[%s6210_s7 + $0x1f8] sm:$0xff] }
 0xfc9   : > { %4892 = vmatprep.subr.mxu1 %v5242_v1  ;;  %4888 = vmatmul.mubr.msk.f32.vlgmr.msra.gmra.mxu0 %vm387_vm2, %v2224_v58 }
 0xfca   : > { %4893 = vmatpush3.msra.mxu1 %v4379_v59  ;;  %4902 = vmatpush3.msra.mxu0 %v4389_v61  ;;  %v4415_v59 = vld [vmem:[%s6210_s7 + $0x1e8] sm:$0xff]  ;;  %v4426_v61 = vld [vmem:[%s6210_s7 + $0x230] sm:$0xff] }
 0xfcb   : > { %4894 = vmatprep.subr.mxu1 %v5242_v1  ;;  %4903 = vmatprep.subr.mxu0 %v5242_v1 }
 0xfcc   : > { %4895 = vmatpush3.msra.mxu1 %v4378_v62  ;;  %4904 = vmatpush3.msra.mxu0 %v4388_v63  ;;  %v4414_v62 = vld [vmem:[%s6210_s7 + $0x1e0] sm:$0xff]  ;;  %v4425_v63 = vld [vmem:[%s6210_s7 + $0x228] sm:$0xff] }
 0xfcd   : > { %4896 = vmatprep.subr.mxu1 %v5242_v1  ;;  %4905 = vmatprep.subr.mxu0 %v5242_v1 }
 0xfce   : > { %4897 = vmatpush3.msra.mxu1 %v4377_v0  ;;  %4906 = vmatpush3.msra.mxu0 %v4387_v2  ;;  %v4424_v0 = vld [vmem:[%s6210_s7 + $0x220] sm:$0xff]  ;;  %v4438_v2 = vld [vmem:[%s6210_s7 + $0x278] sm:$0xff] }
 0xfcf   : > { %4899 = vmatmul.mubr.msk.f32.vlgmr.msra.gmra.mxu1 %vm387_vm2, %v2227_v3  ;;  %4907 = vmatprep.subr.mxu0 %v5242_v1 }
 0xfd0   : > { %4912 = vmatprep.subr.mxu1 %v5242_v1  ;;  %4908 = vmatpush3.msra.mxu0 %v4386_v6  ;;  %v4434_v6 = vld [vmem:[%s6210_s7 + $0x258] sm:$0xff] }
 0xfd1   : > { %4909 = vmatprep.mubr.msk.f32.mxu0 %vm5243_vm0, %v5242_v1  ;;  %4913 = vmatpush3.msra.mxu1 %v4385_v7  ;;  %v4433_v7 = vld [vmem:[%s6210_s7 + $0x250] sm:$0xff] }
 0xfd2   : > { %4910 = vmatmul.mubr.msk.f32.vlgmr.msra.gmra.mxu0 %vm387_vm2, %v2222_v56  ;;  %4914 = vmatprep.subr.mxu1 %v5242_v1  ;;  %v4416_v56 = vld [vmem:[%s6210_s7 + $0x1f0] sm:$0xff] }
 0xfd3   : > { %4923 = vmatprep.subr.mxu0 %v5242_v1  ;;  %4915 = vmatpush3.msra.mxu1 %v4384_v8  ;;  %v4436_v8 = vld [vmem:[%s6210_s7 + $0x268] sm:$0xff] }
 0xfd4   : > { %4924 = vmatpush3.msra.mxu0 %v4395_v10  ;;  %4916 = vmatprep.subr.mxu1 %v5242_v1  ;;  %v4432_v10 = vld [vmem:[%s6210_s7 + $0x248] sm:$0xff] }
 0xfd5   : > { %4925 = vmatprep.subr.mxu0 %v5242_v1  ;;  %4917 = vmatpush3.msra.mxu1 %v4383_v11  ;;  %v4435_v11 = vld [vmem:[%s6210_s7 + $0x260] sm:$0xff] }
 0xfd6   : > { %4926 = vmatpush3.msra.mxu0 %v4394_v12  ;;  %4918 = vmatprep.subr.mxu1 %v5242_v1 }
 0xfd7   : > { %4927 = vmatprep.subr.mxu0 %v5242_v1  ;;  %4919 = vmatpush3.msra.mxu1 %v4382_v13 }
 0xfd8   : > { %4920 = vmatprep.mubr.msk.f32.mxu1 %vm5243_vm0, %v5242_v1  ;;  %4928 = vmatpush3.msra.mxu0 %v4393_v14 }
 0xfd9   : > { %4921 = vmatmul.mubr.msk.f32.vlgmr.msra.gmra.mxu1 %vm387_vm2, %v2224_v58  ;;  %4929 = vmatprep.subr.mxu0 %v5242_v1  ;;  %v4427_v58 = vld [vmem:[%s6210_s7 + $0x238] sm:$0xff] }
 0xfda   : > { %4930 = vmatpush3.msra.mxu0 %v4392_v15  ;;  %4931 = vmatprep.mubr.msk.f32.mxu0 %vm5243_vm0, %v5242_v1 }
 0xfdb   : > { %4932 = vmatmul.mubr.msk.f32.vlgmr.msra.gmra.mxu0 %vm387_vm2, %v2227_v3  ;;  %4934 = vmatprep.subr.mxu1 %v5242_v1  ;;  %v4437_v3 = vld [vmem:[%s6210_s7 + $0x270] sm:$0xff] }
 0xfdc   : > { %4945 = vmatprep.subr.mxu0 %v5242_v1  ;;  %4942 = vmatprep.mubr.msk.f32.mxu1 %vm5243_vm0, %v5242_v1 }
 0xfdd   : > { %4953 = vmatprep.mubr.msk.f32.mxu0 %vm5243_vm0, %v5242_v1  ;;  %4935 = vmatpush3.msra.mxu1 %v4406_v16 }
 0xfde   : > { %4946 = vmatpush3.msra.mxu0 %v4402_v18  ;;  %4936 = vmatprep.subr.mxu1 %v5242_v1 }
 0xfdf   : > { %4947 = vmatprep.subr.mxu0 %v5242_v1  ;;  %4937 = vmatpush3.msra.mxu1 %v4405_v17 }
 0xfe0   : > { %4948 = vmatpush3.msra.mxu0 %v4401_v19  ;;  %4938 = vmatprep.subr.mxu1 %v5242_v1 }
 0xfe1   : > { %4949 = vmatprep.subr.mxu0 %v5242_v1  ;;  %4939 = vmatpush3.msra.mxu1 %v4404_v20 }
 0xfe2   : > { %4950 = vmatpush3.msra.mxu0 %v4400_v60  ;;  %4940 = vmatprep.subr.mxu1 %v5242_v1 }
 0xfe3   : > { %4951 = vmatprep.subr.mxu0 %v5242_v1  ;;  %4941 = vmatpush3.msra.mxu1 %v4403_v21  ;;  %v4431_v21 = vld [vmem:[%s6210_s7 + $0x240] sm:$0xff] }
 0xfe4   : > { %4956 = vmatprep.subr.mxu1 %v5242_v1  ;;  %4952 = vmatpush3.msra.mxu0 %v4399_v31 }
 0xfe5   : > { %4967 = vmatprep.subr.mxu0 %v5242_v1 }
0x1087   : > { %v2308_v57 = vpop.f32.mrf.mxu1 }
0x1089   : > { %v4878_v22 = vpop.f32.mrf.mxu1  ;;  %v2381_v23 = vpop.f32.mrf.mxu0 }
0x108a   : > { %v2382_v24 = vadd.f32 %v2381_v23, %v2308_v57 }
0x108b   : > { %v4889_v25 = vpop.f32.mrf.mxu0 }
0x108c   : > { %v3177_v25 = vstv %s4430_s12 }
0x108f   : > { %v2459_v26 = vpop.f32.mrf.mxu1 }
0x1090   : > { %v2463_v27 = vadd.f32 %v2459_v26, %v2382_v24 }
0x1091   : > { %v4900_v28 = vpop.f32.mrf.mxu1 }
0x1092   : > { %v2540_v29 = vpop.f32.mrf.mxu0  ;;  %v2690_v41 = vadd.f32 %v2463_v27, %v5612_v5  ;;  %v4411_v5 = vld [vmem:[%s6210_s7 + $0x1d0] sm:$0xff] }
0x1094   : > { %v4911_v30 = vpop.f32.mrf.mxu0  ;;  %v5854_v43 = vadd.f32 %v2692_v42, %v2690_v41  ;;  %v4452_v41 = vld [vmem:[%s6210_s7 + $0x2d0] sm:$0xff]  ;;  %v4441_v42 = vld [vmem:[%s6210_s7 + $0x280] sm:$0xff] }
0x1095   : > { %v3173_v30 = vstv %s4429_s19 }
0x1096   : > { %v2694_v44 = vmax.f32 %v5854_v43, 0.0  ;;  %v4471_v43 = vld [vmem:[%s6211_s8 + $0x50] sm:$0xff] }
0x1099   : > { %v2610_v32 = vpop.f32.mrf.mxu1 }
0x109a   : > { %v2611_v33 = vadd.f32 %v2610_v32, %v2540_v29 }
0x109b   : > { %v4922_v34 = vpop.f32.mrf.mxu1  ;;  %v2685_v35 = vpop.f32.mrf.mxu0 }
0x109c   : > { %v2689_v36 = vadd.f32 %v2685_v35, %v2611_v33  ;;  %v4444_v34 = vld [vmem:[%s6210_s7 + $0x298] sm:$0xff] }
0x109d   : > { %v4933_v37 = vpop.f32.mrf.mxu0 }
0x109e   : > { %v2695_v9 = vadd.f32 %v2689_v36, %v5608_v4  ;;  %v4412_v4 = vld [vmem:[%s6210_s7 + $0x1d8] sm:$0xff]  ;;  %v4443_v37 = vld [vmem:[%s6210_s7 + $0x290] sm:$0xff] }
0x10a0   : > { %v5847_v39 = vadd.f32 %v2697_v38, %v2695_v9  ;;  %v4453_v38 = vld [vmem:[%s6210_s7 + $0x2d8] sm:$0xff]  ;;  %v4442_v9 = vld [vmem:[%s6210_s7 + $0x288] sm:$0xff] }
0x10a2   : > { %v2699_v40 = vmax.f32 %v5847_v39, 0.0  ;;  %v4477_v39 = vld [vmem:[%s6211_s8 + $0x78] sm:$0xff] }
0x10a4   : > { %2701 = vrot.lane.b32.xlu1 %v2699_v40, %s5244_s15 }
0x1116   : > { %v2702_v45 = vpop.permute.xlu1 %2701 }
0x1117   : > { %v2704_v46 = vsel %vm381_vm1, %v2694_v44, %v2702_v45  ;;  %v4451_v45 = vld [vmem:[%s6210_s7 + $0x2c8] sm:$0xff] }
0x1118   : > { %v2706_v47 = vrot.slane %v2704_v46, 7  ;;  %4943 = vmatmul.mubr.msk.f32.vlgmr.msra.gmra.mxu1 %vm387_vm2, %v2704_v46  ;;  %v2709_v53 = vrot.slane %v2704_v46, 1 }
0x1119   : > { %4957 = vmatpush3.msra.mxu1 %v4412_v4  ;;  %4964 = vmatprep.mubr.msk.f32.mxu1 %vm5243_vm0, %v5242_v1 }
0x111a   : > { %4958 = vmatprep.subr.mxu1 %v5242_v1  ;;  %4954 = vmatmul.mubr.msk.f32.vlgmr.msra.gmra.mxu0 %vm387_vm2, %v2706_v47 }
0x111b   : > { %4959 = vmatpush3.msra.mxu1 %v4411_v5  ;;  %4968 = vmatpush3.msra.mxu0 %v4421_v48  ;;  %v4448_v5 = vld [vmem:[%s6210_s7 + $0x2b0] sm:$0xff]  ;;  %v4459_v48 = vld [vmem:[%s6210_s7 + $0x2f8] sm:$0xff] }
0x111c   : > { %4960 = vmatprep.subr.mxu1 %v5242_v1  ;;  %4969 = vmatprep.subr.mxu0 %v5242_v1 }
0x111d   : > { %4961 = vmatpush3.msra.mxu1 %v4410_v49  ;;  %4970 = vmatpush3.msra.mxu0 %v4420_v50  ;;  %v4447_v49 = vld [vmem:[%s6210_s7 + $0x2a8] sm:$0xff]  ;;  %v4458_v50 = vld [vmem:[%s6210_s7 + $0x2f0] sm:$0xff] }
0x111e   : > { %4962 = vmatprep.subr.mxu1 %v5242_v1  ;;  %4971 = vmatprep.subr.mxu0 %v5242_v1 }
0x111f   : > { %4963 = vmatpush3.msra.mxu1 %v4409_v51  ;;  %4972 = vmatpush3.msra.mxu0 %v4419_v52  ;;  %v4446_v51 = vld [vmem:[%s6210_s7 + $0x2a0] sm:$0xff]  ;;  %v4457_v52 = vld [vmem:[%s6210_s7 + $0x2e8] sm:$0xff] }
0x1120   : > { %4965 = vmatmul.mubr.msk.f32.vlgmr.msra.gmra.mxu1 %vm387_vm2, %v2709_v53  ;;  %4973 = vmatprep.subr.mxu0 %v5242_v1 }
0x1121   : > { %4978 = vmatprep.subr.mxu1 %v5242_v1  ;;  %4974 = vmatpush3.msra.mxu0 %v4418_v54  ;;  %v3670_v54 = vld [vmem:[%s6211_s8 + $0x18] sm:$0xff] }
0x1122   : > { %4975 = vmatprep.mubr.msk.f32.mxu0 %vm5243_vm0, %v5242_v1  ;;  %4979 = vmatpush3.msra.mxu1 %v4417_v55  ;;  %v4467_v55 = vld [vmem:[%s6211_s8 + $0x38] sm:$0xff] }
0x1123   : > { %4976 = vmatmul.mubr.msk.f32.vlgmr.msra.gmra.mxu0 %vm387_vm2, %v2704_v46  ;;  %4980 = vmatprep.subr.mxu1 %v5242_v1  ;;  %v4450_v46 = vld [vmem:[%s6210_s7 + $0x2c0] sm:$0xff] }
0x1124   : > { %4989 = vmatprep.subr.mxu0 %v5242_v1  ;;  %4981 = vmatpush3.msra.mxu1 %v4416_v56  ;;  %v3669_v56 = vld [vmem:[%s6211_s8 + $0x10] sm:$0xff] }
0x1125   : > { %4990 = vmatpush3.msra.mxu0 %v4427_v58  ;;  %4982 = vmatprep.subr.mxu1 %v5242_v1  ;;  %v4466_v58 = vld [vmem:[%s6211_s8 + $0x30] sm:$0xff] }
0x1126   : > { %4991 = vmatprep.subr.mxu0 %v5242_v1  ;;  %4983 = vmatpush3.msra.mxu1 %v4415_v59  ;;  %v3668_v59 = vld [vmem:[%s6211_s8 + $0x8] sm:$0xff] }
0x1127   : > { %4992 = vmatpush3.msra.mxu0 %v4426_v61  ;;  %4984 = vmatprep.subr.mxu1 %v5242_v1  ;;  %v4465_v61 = vld [vmem:[%s6211_s8 + $0x28] sm:$0xff] }
0x1128   : > { %4993 = vmatprep.subr.mxu0 %v5242_v1  ;;  %4985 = vmatpush3.msra.mxu1 %v4414_v62  ;;  %v3667_v62 = vld [vmem:[%s6211_s8] sm:$0xff] }
0x1129   : > { %4986 = vmatprep.mubr.msk.f32.mxu1 %vm5243_vm0, %v5242_v1  ;;  %4994 = vmatpush3.msra.mxu0 %v4425_v63  ;;  %v4464_v63 = vld [vmem:[%s6211_s8 + $0x20] sm:$0xff] }
0x112a   : > { %4987 = vmatmul.mubr.msk.f32.vlgmr.msra.gmra.mxu1 %vm387_vm2, %v2706_v47  ;;  %4995 = vmatprep.subr.mxu0 %v5242_v1  ;;  %v4449_v47 = vld [vmem:[%s6210_s7 + $0x2b8] sm:$0xff] }
0x112b   : > { %4996 = vmatpush3.msra.mxu0 %v4424_v0  ;;  %4997 = vmatprep.mubr.msk.f32.mxu0 %vm5243_vm0, %v5242_v1 }
0x112c   : > { %4998 = vmatmul.mubr.msk.f32.vlgmr.msra.gmra.mxu0 %vm387_vm2, %v2709_v53  ;;  %5000 = vmatprep.subr.mxu1 %v5242_v1  ;;  %v4456_v53 = vld [vmem:[%s6210_s7 + $0x2e0] sm:$0xff] }
0x112d   : > { %5011 = vmatprep.subr.mxu0 %v5242_v1  ;;  %5008 = vmatprep.mubr.msk.f32.mxu1 %vm5243_vm0, %v5242_v1 }
0x112e   : > { %5019 = vmatprep.mubr.msk.f32.mxu0 %vm5243_vm0, %v5242_v1  ;;  %5001 = vmatpush3.msra.mxu1 %v4438_v2 }
0x112f   : > { %5012 = vmatpush3.msra.mxu0 %v4434_v6  ;;  %5002 = vmatprep.subr.mxu1 %v5242_v1 }
0x1130   : > { %5013 = vmatprep.subr.mxu0 %v5242_v1  ;;  %5003 = vmatpush3.msra.mxu1 %v4437_v3 }
0x1131   : > { %5014 = vmatpush3.msra.mxu0 %v4433_v7  ;;  %5004 = vmatprep.subr.mxu1 %v5242_v1 }
0x1132   : > { %5015 = vmatprep.subr.mxu0 %v5242_v1  ;;  %5005 = vmatpush3.msra.mxu1 %v4436_v8 }
0x1133   : > { %5016 = vmatpush3.msra.mxu0 %v4432_v10  ;;  %5006 = vmatprep.subr.mxu1 %v5242_v1 }
0x1134   : > { %5017 = vmatprep.subr.mxu0 %v5242_v1  ;;  %5007 = vmatpush3.msra.mxu1 %v4435_v11 }
0x1135   : > { %5022 = vmatprep.subr.mxu1 %v5242_v1  ;;  %5018 = vmatpush3.msra.mxu0 %v4431_v21 }
0x1136   : > { %5033 = vmatprep.subr.mxu0 %v5242_v1 }
0x11d8   : > { %v2790_v12 = vpop.f32.mrf.mxu1 }
0x11da   : > { %v4944_v13 = vpop.f32.mrf.mxu1  ;;  %v2863_v14 = vpop.f32.mrf.mxu0 }
0x11db   : > { %v2864_v15 = vadd.f32 %v2863_v14, %v2790_v12 }
0x11dc   : > { %v4955_v16 = vpop.f32.mrf.mxu0 }
0x11e0   : > { %v2941_v17 = vpop.f32.mrf.mxu1 }
0x11e1   : > { %v2945_v18 = vadd.f32 %v2941_v17, %v2864_v15 }
0x11e2   : > { %v4966_v19 = vpop.f32.mrf.mxu1 }
0x11e3   : > { %v3022_v20 = vpop.f32.mrf.mxu0  ;;  %v3174_v31 = vadd.f32 %v3173_v30, %v2945_v18  ;;  %v4469_v30 = vld [vmem:[%s6211_s8 + $0x40] sm:$0xff] }
0x11e5   : > { %v4977_v60 = vpop.f32.mrf.mxu0  ;;  %v3175_v32 = vmax.f32 %v3174_v31, 0.0  ;;  %v4474_v31 = vld [vmem:[%s6211_s8 + $0x60] sm:$0xff] }
0x11ea   : > { %v3092_v57 = vpop.f32.mrf.mxu1 }
0x11eb   : > { %v3093_v22 = vadd.f32 %v3092_v57, %v3022_v20  ;;  %v3659_v20 = vstv %s4462_s17 }
0x11ec   : > { %v4988_v23 = vpop.f32.mrf.mxu1  ;;  %v3167_v24 = vpop.f32.mrf.mxu0 }
0x11ed   : > { %v3171_v26 = vadd.f32 %v3167_v24, %v3093_v22  ;;  %v3654_v23 = vstv %s4461_s18 }
0x11ee   : > { %v4999_v27 = vpop.f32.mrf.mxu0 }
0x11ef   : > { %v3178_v28 = vadd.f32 %v3177_v25, %v3171_v26  ;;  %v4472_v27 = vld [vmem:[%s6211_s8 + $0x58] sm:$0xff] }
0x11f1   : > { %v3179_v29 = vmax.f32 %v3178_v28, 0.0  ;;  %v4470_v28 = vld [vmem:[%s6211_s8 + $0x48] sm:$0xff] }
0x11f3   : > { %3181 = vrot.lane.b32.xlu0 %v3179_v29, %s5244_s15  ;;  %v4475_v29 = vld [vmem:[%s6211_s8 + $0x68] sm:$0xff] }
0x1265   : > { %v3182_v33 = vpop.permute.xlu0 %3181 }
0x1266   : > { %v3184_v35 = vsel %vm381_vm1, %v3175_v32, %v3182_v33  ;;  %v4482_v32 = vld [vmem:[%s6211_s8 + $0x98] sm:$0xff] }
0x1267   : > { %v3186_v36 = vrot.slane %v3184_v35, 7  ;;  %5009 = vmatmul.mubr.msk.f32.vlgmr.msra.gmra.mxu1 %vm387_vm2, %v3184_v35  ;;  %v3189_v4 = vrot.slane %v3184_v35, 1  ;;  %v4487_v33 = vld [vmem:[%s6211_s8 + $0xb8] sm:$0xff] }
0x1268   : > { %5023 = vmatpush3.msra.mxu1 %v4444_v34  ;;  %5030 = vmatprep.mubr.msk.f32.mxu1 %vm5243_vm0, %v5242_v1  ;;  %v4481_v34 = vld [vmem:[%s6211_s8 + $0x90] sm:$0xff] }
0x1269   : > { %5024 = vmatprep.subr.mxu1 %v5242_v1  ;;  %5020 = vmatmul.mubr.msk.f32.vlgmr.msra.gmra.mxu0 %vm387_vm2, %v3186_v36 }
0x126a   : > { %5025 = vmatpush3.msra.mxu1 %v4443_v37  ;;  %5034 = vmatpush3.msra.mxu0 %v4453_v38  ;;  %v4485_v37 = vld [vmem:[%s6211_s8 + $0xa8] sm:$0xff]  ;;  %v4479_v38 = vld [vmem:[%s6211_s8 + $0x80] sm:$0xff] }
0x126b   : > { %5026 = vmatprep.subr.mxu1 %v5242_v1  ;;  %5035 = vmatprep.subr.mxu0 %v5242_v1 }
0x126c   : > { %5027 = vmatpush3.msra.mxu1 %v4442_v9  ;;  %5036 = vmatpush3.msra.mxu0 %v4452_v41  ;;  %v4484_v9 = vld [vmem:[%s6211_s8 + $0xa0] sm:$0xff] }
0x126d   : > { %5028 = vmatprep.subr.mxu1 %v5242_v1  ;;  %5037 = vmatprep.subr.mxu0 %v5242_v1 }
0x126e   : > { %5029 = vmatpush3.msra.mxu1 %v4441_v42  ;;  %5038 = vmatpush3.msra.mxu0 %v4451_v45 }
0x126f   : > { %5031 = vmatmul.mubr.msk.f32.vlgmr.msra.gmra.mxu1 %vm387_vm2, %v3189_v4  ;;  %5039 = vmatprep.subr.mxu0 %v5242_v1 }
0x1270   : > { %5044 = vmatprep.subr.mxu1 %v5242_v1  ;;  %5040 = vmatpush3.msra.mxu0 %v4450_v46 }
0x1271   : > { %5041 = vmatprep.mubr.msk.f32.mxu0 %vm5243_vm0, %v5242_v1  ;;  %5045 = vmatpush3.msra.mxu1 %v4449_v47 }
0x1272   : > { %5042 = vmatmul.mubr.msk.f32.vlgmr.msra.gmra.mxu0 %vm387_vm2, %v3184_v35  ;;  %5046 = vmatprep.subr.mxu1 %v5242_v1  ;;  %v4486_v35 = vld [vmem:[%s6211_s8 + $0xb0] sm:$0xff] }
0x1273   : > { %5055 = vmatprep.subr.mxu0 %v5242_v1  ;;  %5047 = vmatpush3.msra.mxu1 %v4448_v5 }
0x1274   : > { %5056 = vmatpush3.msra.mxu0 %v4459_v48  ;;  %5048 = vmatprep.subr.mxu1 %v5242_v1 }
0x1275   : > { %5057 = vmatprep.subr.mxu0 %v5242_v1  ;;  %5049 = vmatpush3.msra.mxu1 %v4447_v49 }
0x1276   : > { %5058 = vmatpush3.msra.mxu0 %v4458_v50  ;;  %5050 = vmatprep.subr.mxu1 %v5242_v1 }
0x1277   : > { %5059 = vmatprep.subr.mxu0 %v5242_v1  ;;  %5051 = vmatpush3.msra.mxu1 %v4446_v51 }
0x1278   : > { %5052 = vmatprep.mubr.msk.f32.mxu1 %vm5243_vm0, %v5242_v1  ;;  %5060 = vmatpush3.msra.mxu0 %v4457_v52 }
0x1279   : > { %5053 = vmatmul.mubr.msk.f32.vlgmr.msra.gmra.mxu1 %vm387_vm2, %v3186_v36  ;;  %5061 = vmatprep.subr.mxu0 %v5242_v1  ;;  %v4480_v36 = vld [vmem:[%s6211_s8 + $0x88] sm:$0xff] }
0x127a   : > { %5062 = vmatpush3.msra.mxu0 %v4456_v53  ;;  %5063 = vmatprep.mubr.msk.f32.mxu0 %vm5243_vm0, %v5242_v1  ;;  %v4119_v53 = vld [vmem:[%s6212_s9] sm:$0xff] }
0x127b   : > { %5064 = vmatmul.mubr.msk.f32.vlgmr.msra.gmra.mxu0 %vm387_vm2, %v3189_v4  ;;  %5066 = vmatprep.subr.mxu1 %v5242_v1 }
0x127c   : > { %5077 = vmatprep.subr.mxu0 %v5242_v1  ;;  %5074 = vmatprep.mubr.msk.f32.mxu1 %vm5243_vm0, %v5242_v1 }
0x127d   : > { %5085 = vmatprep.mubr.msk.f32.mxu0 %vm5243_vm0, %v5242_v1  ;;  %5067 = vmatpush3.msra.mxu1 %v3670_v54  ;;  %v4120_v54 = vld [vmem:[%s6212_s9 + $0x8] sm:$0xff] }
0x127e   : > { %5078 = vmatpush3.msra.mxu0 %v4467_v55  ;;  %5068 = vmatprep.subr.mxu1 %v5242_v1  ;;  %v4121_v55 = vld [vmem:[%s6212_s9 + $0x10] sm:$0x1] }
0x127f   : > { %5079 = vmatprep.subr.mxu0 %v5242_v1  ;;  %5069 = vmatpush3.msra.mxu1 %v3669_v56 }
0x1280   : > { %5080 = vmatpush3.msra.mxu0 %v4466_v58  ;;  %5070 = vmatprep.subr.mxu1 %v5242_v1 }
0x1281   : > { %5081 = vmatprep.subr.mxu0 %v5242_v1  ;;  %5071 = vmatpush3.msra.mxu1 %v3668_v59 }
0x1282   : > { %5082 = vmatpush3.msra.mxu0 %v4465_v61  ;;  %5072 = vmatprep.subr.mxu1 %v5242_v1 }
0x1283   : > { %5083 = vmatprep.subr.mxu0 %v5242_v1  ;;  %5073 = vmatpush3.msra.mxu1 %v3667_v62 }
0x1284   : > { %5084 = vmatpush3.msra.mxu0 %v4464_v63  ;;  %5088 = vmatprep.subr.mxu1 %v5242_v1 }
0x1285   : > { %5099 = vmatprep.subr.mxu0 %v5242_v1 }
0x1327   : > { %v3270_v0 = vpop.f32.mrf.mxu1 }
0x1329   : > { %v5010_v2 = vpop.f32.mrf.mxu1  ;;  %v3343_v3 = vpop.f32.mrf.mxu0 }
0x132a   : > { %v3344_v6 = vadd.f32 %v3343_v3, %v3270_v0 }
0x132b   : > { %v5021_v7 = vpop.f32.mrf.mxu0 }
0x132f   : > { %v3421_v8 = vpop.f32.mrf.mxu1 }
0x1330   : > { %v3425_v10 = vadd.f32 %v3421_v8, %v3344_v6 }
0x1331   : > { %v5032_v11 = vpop.f32.mrf.mxu1 }
0x1332   : > { %v3502_v12 = vpop.f32.mrf.mxu0  ;;  %v3652_v22 = vadd.f32 %v3425_v10, %v2694_v44  ;;  %v4476_v44 = vld [vmem:[%s6211_s8 + $0x70] sm:$0xff] }
0x1334   : > { %v5043_v13 = vpop.f32.mrf.mxu0  ;;  %v3655_v24 = vadd.f32 %v3654_v23, %v3652_v22 }
0x1336   : > { %v3656_v25 = vmax.f32 %v3655_v24, 0.0 }
0x1339   : > { %v3572_v14 = vpop.f32.mrf.mxu1 }
0x133a   : > { %v3573_v15 = vadd.f32 %v3572_v14, %v3502_v12 }
0x133b   : > { %v5054_v16 = vpop.f32.mrf.mxu1  ;;  %v3647_v17 = vpop.f32.mrf.mxu0 }
0x133c   : > { %v3651_v18 = vadd.f32 %v3647_v17, %v3573_v15 }
0x133d   : > { %v5065_v19 = vpop.f32.mrf.mxu0 }
0x133e   : > { %v3657_v60 = vadd.f32 %v3651_v18, %v2699_v40 }
0x1340   : > { %v3660_v21 = vadd.f32 %v3659_v20, %v3657_v60 }
0x1342   : > { %v3661_v57 = vmax.f32 %v3660_v21, 0.0 }
0x1344   : > { %3663 = vrot.lane.b32.xlu1 %v3661_v57, %s5244_s15 }
0x13b6   : > { %v3664_v26 = vpop.permute.xlu1 %3663 }
0x13b7   : > { %v3666_v40 = vsel %vm381_vm1, %v3656_v25, %v3664_v26  ;;  %vm4211_vm1 = vcmask 269312  }
0x13b8   : > { %5075 = vmatmul.mubr.msk.f32.vlgmr.msra.gmra.mxu1 %vm387_vm2, %v3666_v40  ;;  %5086 = vmatmul.mubr.msk.f32.vlgmr.msra.gmra.mxu0 %vm387_vm2, %v3666_v40 }
0x13b9   : > { %5089 = vmatpush3.msra.mxu1 %v4472_v27  ;;  %5100 = vmatpush3.msra.mxu0 %v4477_v39 }
0x13ba   : > { %5090 = vmatprep.subr.mxu1 %v5242_v1  ;;  %5101 = vmatprep.subr.mxu0 %v5242_v1 }
0x13bb   : > { %5091 = vmatpush3.msra.mxu1 %v4471_v43  ;;  %5102 = vmatpush3.msra.mxu0 %v4476_v44 }
0x13bc   : > { %5092 = vmatprep.subr.mxu1 %v5242_v1  ;;  %5103 = vmatprep.subr.mxu0 %v5242_v1 }
0x13bd   : > { %5093 = vmatpush3.msra.mxu1 %v4470_v28  ;;  %5104 = vmatpush3.msra.mxu0 %v4475_v29 }
0x13be   : > { %5094 = vmatprep.subr.mxu1 %v5242_v1  ;;  %5105 = vmatprep.subr.mxu0 %v5242_v1 }
0x13bf   : > { %5095 = vmatpush3.msra.mxu1 %v4469_v30  ;;  %5096 = vmatprep.mubr.msk.f32.mxu1 %vm5243_vm0, %v5242_v1 }
0x13c0   : > { %5106 = vmatpush3.msra.mxu0 %v4474_v31  ;;  %5107 = vmatprep.mubr.msk.f32.mxu0 %vm5243_vm0, %v5242_v1 }
0x13c1   : > { %5097 = vmatmul.mubr.msk.f32.vlgmr.msra.gmra.mxu1 %vm387_vm2, %v3666_v40  ;;  %5108 = vmatmul.mubr.msk.f32.vlgmr.msra.gmra.mxu0 %vm387_vm2, %v3666_v40 }
0x13c2   : > { %5110 = vmatprep.subr.mxu1 %v5242_v1  ;;  %5121 = vmatprep.subr.mxu0 %v5242_v1 }
0x13c3   : > { %5111 = vmatpush3.msra.mxu1 %v4482_v32  ;;  %5122 = vmatpush3.msra.mxu0 %v4487_v33 }
0x13c4   : > { %5112 = vmatprep.subr.mxu1 %v5242_v1  ;;  %5123 = vmatprep.subr.mxu0 %v5242_v1 }
0x13c5   : > { %5113 = vmatpush3.msra.mxu1 %v4481_v34  ;;  %5124 = vmatpush3.msra.mxu0 %v4486_v35 }
0x13c6   : > { %5114 = vmatprep.subr.mxu1 %v5242_v1  ;;  %5125 = vmatprep.subr.mxu0 %v5242_v1 }
0x13c7   : > { %5115 = vmatpush3.msra.mxu1 %v4480_v36  ;;  %5126 = vmatpush3.msra.mxu0 %v4485_v37 }
0x13c8   : > { %5116 = vmatprep.subr.mxu1 %v5242_v1  ;;  %5127 = vmatprep.subr.mxu0 %v5242_v1 }
0x13c9   : > { %5117 = vmatpush3.msra.mxu1 %v4479_v38  ;;  %5118 = vmatprep.mubr.msk.f32.mxu1 %vm5243_vm0, %v5242_v1 }
0x13ca   : > { %5128 = vmatpush3.msra.mxu0 %v4484_v9  ;;  %5129 = vmatprep.mubr.msk.f32.mxu0 %vm5243_vm0, %v5242_v1 }
0x13cb   : > { %5119 = vmatmul.mubr.msk.f32.vlgmr.msra.gmra.mxu1 %vm387_vm2, %v3666_v40  ;;  %5130 = vmatmul.mubr.msk.f32.vlgmr.msra.gmra.mxu0 %vm387_vm2, %v3666_v40  ;;  %vm4214_vm2 = vcmask 262144  }
0x13cc   : > { %5132 = vmatprep.subr.mxu1 %v5242_v1  ;;  %5144 = vmatprep.mubr.msk.f32.mxu1 %vm5243_vm0, %v5242_v1 }
0x1478   : > { %v3740_v41 = vpop.f32.mrf.mxu1  ;;  %v3815_v42 = vpop.f32.mrf.mxu0 }
0x147a   : > { %v5076_v45 = vpop.f32.mrf.mxu1  ;;  %v5087_v4 = vpop.f32.mrf.mxu0 }
0x1481   : > { %v3890_v46 = vpop.f32.mrf.mxu1  ;;  %v3965_v47 = vpop.f32.mrf.mxu0 }
0x1483   : > { %v5098_v5 = vpop.f32.mrf.mxu1  ;;  %v5109_v48 = vpop.f32.mrf.mxu0 }
0x148b   : > { %v4040_v49 = vpop.f32.mrf.mxu1  ;;  %v4115_v50 = vpop.f32.mrf.mxu0 }
0x148c   : > { %5133 = vmatpush3.msra.mxu1 %v4115_v50 }
0x148d   : > { %v5120_v51 = vpop.f32.mrf.mxu1  ;;  %v5131_v52 = vpop.f32.mrf.mxu0  ;;  %5134 = vmatprep.subr.mxu1 %v5242_v1 }
0x148e   : > { %5135 = vmatpush3.msra.mxu1 %v4040_v49 }
0x148f   : > { %5136 = vmatprep.subr.mxu1 %v5242_v1 }
0x1490   : > { %5137 = vmatpush3.msra.mxu1 %v3965_v47 }
0x1491   : > { %5138 = vmatprep.subr.mxu1 %v5242_v1 }
0x1492   : > { %5139 = vmatpush3.msra.mxu1 %v3890_v46 }
0x1493   : > { %5140 = vmatprep.subr.mxu1 %v5242_v1 }
0x1494   : > { %5141 = vmatpush3.msra.mxu1 %v3815_v42 }
0x1495   : > { %5142 = vmatprep.subr.mxu1 %v5242_v1 }
0x1496   : > { %5143 = vmatpush3.msra.mxu1 %v3740_v41 }
0x1497   : > { %5145 = vmatmul.mubr.msk.f32.vlgmr.msra.gmra.mxu1 %vm498_vm3, %v4119_v53 }
0x1498   : > { %5147 = vmatprep.mubr.msk.f32.mxu1 %vm5243_vm0, %v5242_v1 }
0x149b   : > { %5148 = vmatmul.mubr.msk.f32.gmra.mxu1 %vm498_vm3, %v4120_v54 }
0x149c   : > { %5150 = vmatprep.mubr.msk.f32.mxu1 %vm5243_vm0, %v5242_v1 }
0x149f   : > { %5151 = vmatmul.mubr.msk.f32.gmra.mxu1 %vm498_vm3, %v4121_v55 }
0x1557   : > { %v4197_v56 = vpop.f32.mrf.mxu1 }
0x1558   : > { %4212 = vst.msk [vmem:[%s373_s23] sm:$0xff] %vm4211_vm1, %v4197_v56 }
0x1559   : > { %v5146_v58 = vpop.f32.mrf.mxu1 }
0x155b   : > { %v4202_v59 = vpop.f32.mrf.mxu1 }
0x155c   : > { %4213 = vst.msk [vmem:[%s373_s23 + $0x8] sm:$0xff] %vm4211_vm1, %v4202_v59 }
0x155d   : > { %v5149_v61 = vpop.f32.mrf.mxu1 }
0x155f   : > { %v4207_v1 = vpop.f32.mrf.mxu1 }
0x1560   : > { %4215 = vst.msk [vmem:[%s373_s23 + $0x10] sm:$0x1] %vm4214_vm2, %v4207_v1 }
0x1561   : > { %v5152_v62 = vpop.f32.mrf.mxu1 }
0x1562 PF: > { %s21_s13 = sadd.s32 1, %s5239_s13  }
0x1563   : > { %p18_p1 = scmp.ge.s32.totalorder %s21_s13, 4  }
0x1565   :  { %20 = sbr.rel (!%p18_p1) target bundleno = 1 (0x1), region = 130 }
0x156a   :  { %4237 = vsyncpa [#allocation3], 1 }
0x156b   :  { %4239 = vsyncpa [#allocation3 + $0x1], 1 }

</bundles_post_ra>
